<compile_context>
chip_gen: v5e
topology: v5e:2x2
jax: 0.10.0
libtpu: 0.0.40
codegen_flags: <defaults>
</compile_context>

<pallas_src>
import math

import jax
import jax.numpy as jnp
from jax.experimental import pallas as pl
from jax.experimental.pallas import tpu as pltpu

# ---- Poincare-ball numerical constants (float32) -----------------------------------
MIN_NORM = 1e-15          # clamp_min on norms / denominators
PROJ_EPS = 4e-3           # boundary eps for float32 projection onto the ball
MAX_NORM = 1e6            # manifold.max_norm used in torch.clamp(..., max=max_norm)
ATANH_CLIP = 1.0 - 1e-6   # safer margin than 1-1e-7 (avoids f32 round-to-1 overflow)


def _round_up(v, m):
    return (v + m - 1) // m * m


def _vmem_limit_bytes():
    """Generation-dependent scoped-VMEM budget (per perf review)."""
    try:
        cap = int(pltpu.get_tpu_info().vmem_capacity_bytes)
    except Exception:  # conservative fallback if the query is unavailable
        cap = 64 * 1024 * 1024
    if cap >= 100 * 1024 * 1024:      # v5e / v6e: 128 MiB physical VMEM
        return 100 * 1024 * 1024
    return 48 * 1024 * 1024           # v7x: 64 MiB physical VMEM


def _pick_tile(padded, requested):
    """Largest multiple of 128 that divides `padded` and is <= `requested` (min 128)."""
    q = padded // 128
    best = 1
    for d in range(1, q + 1):
        if q % d == 0 and 128 * d <= requested:
            best = d
    return 128 * best


# ======================================================================================
# Pure-JAX reference helpers (also used in the wrapper to hoist the constant hyp_bias)
# ======================================================================================
def _ref_norm(x):
    return jnp.sqrt(jnp.sum(x * x, axis=-1, keepdims=True))


def _ref_artanh(x):
    x = jnp.clip(x, -ATANH_CLIP, ATANH_CLIP)
    return 0.5 * jnp.log((1.0 + x) / (1.0 - x))


def _ref_logmap0(p, c):
    sqrt_c = math.sqrt(c)
    p_norm = jnp.maximum(_ref_norm(p), MIN_NORM)
    return _ref_artanh(sqrt_c * p_norm) * p / (sqrt_c * p_norm)


def _ref_expmap0(u, c):
    sqrt_c = math.sqrt(c)
    u_norm = jnp.maximum(_ref_norm(u), MIN_NORM)
    return jnp.tanh(sqrt_c * u_norm) * u / (sqrt_c * u_norm)


def _ref_proj(x, c):
    sqrt_c = math.sqrt(c)
    norm = jnp.maximum(_ref_norm(x), MIN_NORM)
    maxnorm = (1.0 - PROJ_EPS) / sqrt_c
    return jnp.where(norm > maxnorm, x / norm * maxnorm, x)


def _ref_mobius_add(x, y, c):
    x2 = jnp.sum(x * x, axis=-1, keepdims=True)
    y2 = jnp.sum(y * y, axis=-1, keepdims=True)
    xy = jnp.sum(x * y, axis=-1, keepdims=True)
    num = (1.0 + 2.0 * c * xy + c * y2) * x + (1.0 - c * x2) * y
    denom = 1.0 + 2.0 * c * xy + c * c * x2 * y2
    return num / jnp.maximum(denom, MIN_NORM)


def _ref_mobius_matvec(w, x, c):
    sqrt_c = math.sqrt(c)
    x_norm = jnp.maximum(_ref_norm(x), MIN_NORM)
    mx = jnp.dot(x, w.T, preferred_element_type=jnp.float32)
    mx_norm = jnp.maximum(_ref_norm(mx), MIN_NORM)
    res = jnp.tanh(mx_norm / x_norm * _ref_artanh(sqrt_c * x_norm)) * mx / (mx_norm * sqrt_c)
    return jnp.where(mx_norm <= MIN_NORM, 0.0, res)


def _ref_forward(x, w, b, adj, c_in, c_out):
    """Pure f32 reference of the full HyperbolicGraphConvolution forward."""
    res = _ref_mobius_matvec(w, x, c_in)
    res = _ref_proj(res, c_in)
    hyp_bias = _ref_proj(_ref_expmap0(b, c_in), c_in)       # proj_tan0 = identity
    res = _ref_proj(_ref_mobius_add(res, hyp_bias, c_in), c_in)
    x_tangent = _ref_logmap0(res, c_in)
    support_t = jnp.minimum(
        jnp.dot(adj, x_tangent, preferred_element_type=jnp.float32), MAX_NORM)
    h = _ref_proj(_ref_expmap0(support_t, c_in), c_in)
    xt = jnp.minimum(jnp.maximum(_ref_logmap0(h, c_in), 0.0), MAX_NORM)
    return _ref_expmap0(xt, c_out)


# ======================================================================================
# In-kernel helpers (EUP approx reciprocal; only traced inside pallas kernels)
# ======================================================================================
def _rcp(x):
    return pl.reciprocal(x, approx=True)


def _artanh_k(x):
    x = jnp.clip(x, -ATANH_CLIP, ATANH_CLIP)
    return 0.5 * jnp.log((1.0 + x) * _rcp(1.0 - x))


def _row_norm(x):
    return jnp.sqrt(jnp.sum(x * x, axis=-1, keepdims=True))


# ======================================================================================
# Phase 1: HypLinear + logmap0  (row-tiled, bf16 MXU operands, folded per-row scalars)
# ======================================================================================
def _make_linear_kernel(c_in):
    sqrt_c = math.sqrt(c_in)
    maxnorm = (1.0 - PROJ_EPS) / sqrt_c
    c = c_in

    def kernel(x_ref, wt_ref, hb_ref, hbsq_ref, xt_ref):
        x = x_ref[...]                    # (tm1, din_p) f32 hyperbolic points
        wt = wt_ref[...]                  # (din_p, dout_p) bf16, pre-transposed weight
        hb = hb_ref[...]                  # (1, dout_p) f32 constant hyperbolic bias point
        y2 = hbsq_ref[0]                  # scalar ||hyp_bias||^2 (hoisted, SMEM)

        # ---- mobius_matvec: bf16 MXU operands, f32 accumulate; norms stay f32 ----
        x_norm = jnp.maximum(_row_norm(x), MIN_NORM)
        mx = jnp.dot(x.astype(jnp.bfloat16), wt,
                     preferred_element_type=jnp.float32)          # (tm1, dout_p) f32
        mx_norm = jnp.maximum(_row_norm(mx), MIN_NORM)

        t = jnp.tanh(mx_norm * _rcp(x_norm) * _artanh_k(sqrt_c * x_norm))
        res_norm = jnp.maximum(t / sqrt_c, MIN_NORM)              # analytic ||res||
        # res = coef_res * mx, with mobius_matvec scale + proj rescale + zero-row guard
        # all folded into one per-row coefficient (never materialize res).
        coef_res = t * _rcp(mx_norm * sqrt_c)
        coef_res = jnp.where(res_norm > maxnorm,
                             coef_res * (maxnorm * _rcp(res_norm)), coef_res)
        coef_res = jnp.where(mx_norm <= MIN_NORM, 0.0, coef_res)
        res_norm = jnp.minimum(res_norm, maxnorm)

        # ---- mobius_add(res, hyp_bias): add = (A/den)*res + (B/den)*hb ----
        x2 = res_norm * res_norm
        xy = coef_res * jnp.sum(mx * hb, axis=-1, keepdims=True)
        a_num = 1.0 + 2.0 * c * xy + c * y2
        b_num = 1.0 - c * x2
        inv_den = _rcp(jnp.maximum(1.0 + 2.0 * c * xy + (c * c) * x2 * y2, MIN_NORM))
        add = (a_num * inv_den * coef_res) * mx + (b_num * inv_den) * hb

        # ---- proj(add) then logmap0 folded into a single per-row coefficient ----
        add_norm = jnp.maximum(_row_norm(add), MIN_NORM)
        p_norm = jnp.minimum(add_norm, maxnorm)
        coef_log = jnp.where(add_norm > maxnorm, maxnorm * _rcp(add_norm), 1.0)
        coef_log = coef_log * _artanh_k(sqrt_c * p_norm) * _rcp(sqrt_c * p_norm)

        xt_ref[...] = (coef_log * add).astype(xt_ref.dtype)       # bf16 tangent vectors

    return kernel


# ======================================================================================
# Phase 2: tiled adjacency aggregation (K-accumulated into the resident output) + HypAct
# ======================================================================================
def _make_agg_kernel(c_in, c_out):
    sqrt_ci = math.sqrt(c_in)
    sqrt_co = math.sqrt(c_out)
    maxnorm_i = (1.0 - PROJ_EPS) / sqrt_ci

    def kernel(adj_ref, xt_ref, out_ref):
        k = pl.program_id(1)

        # bf16 x bf16 -> f32 on the MXU; accumulate directly into the resident out block
        partial = jnp.dot(adj_ref[...], xt_ref[...],
                          preferred_element_type=jnp.float32)

        @pl.when(k == 0)
        def _init():
            out_ref[...] = partial

        @pl.when(k > 0)
        def _accumulate():
            out_ref[...] += partial

        @pl.when(k == pl.num_programs(1) - 1)
        def _finalize():
            support_t = jnp.minimum(out_ref[...], MAX_NORM)   # torch.clamp(max=max_norm)

            # expmap0(c_in) -> proj(c_in) -> logmap0(c_in): one folded per-row coefficient
            u_norm = jnp.maximum(_row_norm(support_t), MIN_NORM)
            t = jnp.tanh(sqrt_ci * u_norm)
            h_norm = jnp.maximum(t / sqrt_ci, MIN_NORM)       # analytic ||expmap0||
            coef = t * _rcp(sqrt_ci * u_norm)
            coef = jnp.where(h_norm > maxnorm_i,
                             coef * (maxnorm_i * _rcp(h_norm)), coef)
            p_norm = jnp.minimum(h_norm, maxnorm_i)
            coef = coef * _artanh_k(sqrt_ci * p_norm) * _rcp(sqrt_ci * p_norm)

            # HypAct: relu + clamp(max) on the tangent, then expmap0(., c_out)
            xt = jnp.minimum(jnp.maximum(coef * support_t, 0.0), MAX_NORM)
            v_norm = jnp.maximum(_row_norm(xt), MIN_NORM)
            out_ref[...] = (jnp.tanh(sqrt_co * v_norm) * _rcp(sqrt_co * v_norm)) * xt

    return kernel


# ======================================================================================
# Wrapper
# ======================================================================================
def hyperbolic_graph_conv(x, adj, w, b, c_in, c_out, *, tm=512, tk=1024):
    """x:(N,Din) hyperbolic points, adj:(N,N) dense row-normalized, w:(Dout,Din),
    b:(1,Dout) or (Dout,).  Returns (N,Dout) f32."""
    c_in = float(c_in)
    c_out = float(c_out)
    N, Din = x.shape
    Dout = w.shape[0]
    assert adj.shape == (N, N)

    vmem_limit = _vmem_limit_bytes()

    # Decoupled, minimal padding: everything pads only to multiples of 128; tiles are
    # 128-multiple divisors of the padded sizes (zero padding does not change row norms).
    n_p = _round_up(N, 128)
    din_p = _round_up(Din, 128)
    dout_p = _round_up(Dout, 128)

    # Phase-2 row / K tiles (keep >= 2 row tiles so megacore can shard the parallel axis).
    tm_eff = _pick_tile(n_p, tm)
    if n_p // tm_eff < 2 and n_p >= 256:
        tm_eff = _pick_tile(n_p, n_p // 2)
    tk_eff = _pick_tile(n_p, tk)
    # Phase-1 row tile.
    tm1 = _pick_tile(n_p, min(tm, 512))
    if n_p // tm1 < 2 and n_p >= 256:
        tm1 = _pick_tile(n_p, n_p // 2)

    f32 = jnp.float32
    bf16 = jnp.bfloat16
    x_p = jnp.zeros((n_p, din_p), f32).at[:N, :Din].set(x.astype(f32))
    adj_p = jnp.zeros((n_p, n_p), bf16).at[:N, :N].set(adj.astype(bf16))
    # Weight passed pre-transposed AND in bf16: bf16 MXU operands + half the HBM/VMEM.
    wt_p = jnp.zeros((din_p, dout_p), bf16).at[:Din, :Dout].set(w.astype(f32).T.astype(bf16))
    b_p = jnp.zeros((1, dout_p), f32).at[:, :Dout].set(
        jnp.reshape(b.astype(f32), (1, Dout)))

    # Hoisted constants: hyp_bias = proj(expmap0(proj_tan0(b))) and ||hyp_bias||^2.
    hyp_bias = _ref_proj(_ref_expmap0(b_p, c_in), c_in)
    hb_sq = jnp.sum(hyp_bias * hyp_bias, axis=-1).astype(f32)      # shape (1,), SMEM scalar

    # ---- Phase 1: HypLinear + logmap0, row-tiled ----
    # TODO(synk): for very large Din*Dout, single-buffer the grid-invariant weight
    # (pipeline_mode=pl.Buffered(1)) or add a K grid over din_p with an f32 accumulator.
    xt = pl.pallas_call(
        _make_linear_kernel(c_in),
        out_shape=jax.ShapeDtypeStruct((n_p, dout_p), bf16),
        grid=(n_p // tm1,),
        in_specs=[
            pl.BlockSpec((tm1, din_p), lambda i: (i, 0)),
            pl.BlockSpec((din_p, dout_p), lambda i: (0, 0)),
            pl.BlockSpec((1, dout_p), lambda i: (0, 0)),
            pl.BlockSpec(memory_space=pltpu.MemorySpace.SMEM),
        ],
        out_specs=pl.BlockSpec((tm1, dout_p), lambda i: (i, 0)),
        compiler_params=pltpu.CompilerParams(
            dimension_semantics=("parallel",),
            vmem_limit_bytes=vmem_limit),
    )(x_p, wt_p, hyp_bias, hb_sq)

    # ---- Phase 2: adj @ x_tangent streamed over K tiles, finalize with HypAct ----
    # TODO(synk): block-sparse adjacency (scalar-prefetched nonzero tile lists) and
    # int8 (v5e/v6e) / fp8 (v7x) adj quantization are not implemented (dense bf16 adj).
    out_p = pl.pallas_call(
        _make_agg_kernel(c_in, c_out),
        out_shape=jax.ShapeDtypeStruct((n_p, dout_p), jnp.float32),
        grid=(n_p // tm_eff, n_p // tk_eff),
        in_specs=[
            pl.BlockSpec((tm_eff, tk_eff), lambda i, k: (i, k)),
            pl.BlockSpec((tk_eff, dout_p), lambda i, k: (k, 0)),
        ],
        out_specs=pl.BlockSpec((tm_eff, dout_p), lambda i, k: (i, 0)),
        compiler_params=pltpu.CompilerParams(
            dimension_semantics=("parallel", "arbitrary"),
            vmem_limit_bytes=vmem_limit),
    )(adj_p, xt)

    return out_p[:N, :Dout]


# ======================================================================================
if __name__ == "__main__":
    # Small synthetic graph: 256 nodes, 32 -> 48 features, curvatures c_in=1.0, c_out=0.7.
    # Tiles tm=tk=128 so the demo exercises a 2x2 phase-2 grid (K accumulation + init/
    # finalize) and a 2-step phase-1 grid; features get lane-padded 32/48 -> 128.
    N, Din, Dout = 256, 32, 48
    c_in, c_out = 1.0, 0.7

    key = jax.random.PRNGKey(0)
    k_x, k_adj, k_w = jax.random.split(key, 3)

    # Node features: tangent vectors mapped onto the Poincare ball.
    x_tan = 0.1 * jax.random.normal(k_x, (N, Din), jnp.float32)
    x = _ref_proj(_ref_expmap0(x_tan, c_in), c_in)

    # Row-normalized symmetric adjacency with self-loops.
    a = (jax.random.uniform(k_adj, (N, N)) < 0.2).astype(jnp.float32)
    a = jnp.minimum(a + a.T + jnp.eye(N, dtype=jnp.float32), 1.0)
    adj = a / jnp.sum(a, axis=1, keepdims=True)

    # HypLinear parameters: xavier_uniform_(gain=sqrt(2)), bias = 1e-4 (deterministic).
    gain = math.sqrt(2.0)
    bound = gain * math.sqrt(6.0 / (Din + Dout))
    w = jax.random.uniform(k_w, (Dout, Din), jnp.float32, -bound, bound)
    b = jnp.full((1, Dout), 1e-4, dtype=jnp.float32)

    out = hyperbolic_graph_conv(x, adj, w, b, c_in, c_out, tm=128, tk=128)
    out = jax.block_until_ready(out)

    # Pure f32 JAX reference. Tolerance is loosened because the kernel uses bf16 MXU
    # operands for both matmuls (weight + adjacency), bf16 tangent storage, and EUP
    # approx reciprocals (per perf review).
    ref = _ref_forward(x.astype(jnp.float32), w, b, adj, c_in, c_out)
    assert out.shape == (N, Dout)
    assert bool(jnp.all(jnp.isfinite(out)))
    assert bool(jnp.allclose(out, ref, atol=1e-2, rtol=3e-2)), (
        float(jnp.max(jnp.abs(out - ref))))

    # TODO(synk): dropout (training mode), use_att/local_agg attention branches, the
    # manifold-specific `time_dim` handling, and a sparse (CSR/scalar-prefetch) adjacency
    # path are not implemented (eval mode, dense adj, Poincare ball).
    print("KERNEL_OK")
</pallas_src>

<mosaic_0001>
module attributes {stable_mosaic.version = 11 : i64} {
  func.func @kernel(%arg0: i32, %arg1: memref<128x128xf32, #tpu.memory_space<vmem>>, %arg2: memref<128x128xbf16, #tpu.memory_space<vmem>>, %arg3: memref<1x128xf32, #tpu.memory_space<vmem>>, %arg4: memref<1xf32, #tpu.memory_space<smem>>, %arg5: memref<128x128xbf16, #tpu.memory_space<vmem>>) attributes {dimension_semantics = [#tpu.dimension_semantics<parallel>], iteration_bounds = array<i64: 2>, scalar_prefetch = 0 : i64, scratch_operands = 0 : i64, tpu.core_type = #tpu.core_type<tc>, window_params = [{transform_indices = @transform_0, window_bounds = array<i64: 128, 128>}, {pipeline_mode = #tpu.pipeline_mode<synchronous>, transform_indices = @transform_1, window_bounds = array<i64: 128, 128>}, {pipeline_mode = #tpu.pipeline_mode<synchronous>, transform_indices = @transform_2, window_bounds = array<i64: 1, 128>}, {transform_indices = @transform_3, window_bounds = array<i64: 1>}, {transform_indices = @transform_4, window_bounds = array<i64: 128, 128>}]} {
    %c0 = arith.constant 0 : index
    %c0_0 = arith.constant 0 : index
    %0 = vector.load %arg1[%c0, %c0_0] : memref<128x128xf32, #tpu.memory_space<vmem>>, vector<128x128xf32>
    %c0_1 = arith.constant 0 : index
    %c0_2 = arith.constant 0 : index
    %1 = vector.load %arg2[%c0_1, %c0_2] : memref<128x128xbf16, #tpu.memory_space<vmem>>, vector<128x128xbf16>
    %c0_3 = arith.constant 0 : index
    %c0_4 = arith.constant 0 : index
    %2 = vector.load %arg3[%c0_3, %c0_4] : memref<1x128xf32, #tpu.memory_space<vmem>>, vector<1x128xf32>
    %c0_5 = arith.constant 0 : index
    %3 = memref.load %arg4[%c0_5] : memref<1xf32, #tpu.memory_space<smem>>
    %4 = arith.mulf %0, %0 : vector<128x128xf32>
    %cst = arith.constant dense<0.000000e+00> : vector<128xf32>
    %5 = vector.multi_reduction <add>, %4, %cst [1] : vector<128x128xf32> to vector<128xf32>
    %6 = vector.shape_cast %5 : vector<128xf32> to vector<128x1xf32>
    %7 = math.sqrt %6 : vector<128x1xf32>
    %cst_6 = arith.constant 1.000000e-15 : f32
    %8 = vector.broadcast %cst_6 : f32 to vector<128x1xf32>
    %9 = arith.maximumf %7, %8 : vector<128x1xf32>
    %10 = arith.truncf %0 : vector<128x128xf32> to vector<128x128xbf16>
    %cst_7 = arith.constant dense<0.000000e+00> : vector<128x128xf32>
    %11 = tpu.matmul %10, %1, %cst_7 {dimension_numbers = #tpu.dot_dimension_numbers<[1], [0], [0], [1], [0, 0, 1, 1], [], []>} : vector<128x128xbf16>, vector<128x128xbf16>, vector<128x128xf32> -> vector<128x128xf32>
    %12 = arith.mulf %11, %11 : vector<128x128xf32>
    %cst_8 = arith.constant dense<0.000000e+00> : vector<128xf32>
    %13 = vector.multi_reduction <add>, %12, %cst_8 [1] : vector<128x128xf32> to vector<128xf32>
    %14 = vector.shape_cast %13 : vector<128xf32> to vector<128x1xf32>
    %15 = math.sqrt %14 : vector<128x1xf32>
    %cst_9 = arith.constant 1.000000e-15 : f32
    %16 = vector.broadcast %cst_9 : f32 to vector<128x1xf32>
    %17 = arith.maximumf %15, %16 : vector<128x1xf32>
    %18 = tpu.reciprocal %9 {approx = true} : vector<128x1xf32> -> vector<128x1xf32>
    %19 = arith.mulf %17, %18 : vector<128x1xf32>
    %cst_10 = arith.constant 1.000000e+00 : f32
    %20 = vector.broadcast %cst_10 : f32 to vector<128x1xf32>
    %21 = arith.mulf %20, %9 : vector<128x1xf32>
    %cst_11 = arith.constant -0.999998986 : f32
    %cst_12 = arith.constant 0.999998986 : f32
    %22 = vector.broadcast %cst_11 : f32 to vector<128x1xf32>
    %23 = arith.maximumf %22, %21 : vector<128x1xf32>
    %24 = vector.broadcast %cst_12 : f32 to vector<128x1xf32>
    %25 = arith.minimumf %24, %23 : vector<128x1xf32>
    %cst_13 = arith.constant 1.000000e+00 : f32
    %26 = vector.broadcast %cst_13 : f32 to vector<128x1xf32>
    %27 = arith.addf %26, %25 : vector<128x1xf32>
    %cst_14 = arith.constant 1.000000e+00 : f32
    %28 = vector.broadcast %cst_14 : f32 to vector<128x1xf32>
    %29 = arith.subf %28, %25 : vector<128x1xf32>
    %30 = tpu.reciprocal %29 {approx = true} : vector<128x1xf32> -> vector<128x1xf32>
    %31 = arith.mulf %27, %30 : vector<128x1xf32>
    %32 = math.log %31 : vector<128x1xf32>
    %cst_15 = arith.constant 5.000000e-01 : f32
    %33 = vector.broadcast %cst_15 : f32 to vector<128x1xf32>
    %34 = arith.mulf %33, %32 : vector<128x1xf32>
    %35 = arith.mulf %19, %34 : vector<128x1xf32>
    %36 = math.tanh %35 : vector<128x1xf32>
    %cst_16 = arith.constant 1.000000e+00 : f32
    %37 = vector.broadcast %cst_16 : f32 to vector<128x1xf32>
    %38 = arith.divf %36, %37 : vector<128x1xf32>
    %cst_17 = arith.constant 1.000000e-15 : f32
    %39 = vector.broadcast %cst_17 : f32 to vector<128x1xf32>
    %40 = arith.maximumf %38, %39 : vector<128x1xf32>
    %cst_18 = arith.constant 1.000000e+00 : f32
    %41 = vector.broadcast %cst_18 : f32 to vector<128x1xf32>
    %42 = arith.mulf %17, %41 : vector<128x1xf32>
    %43 = tpu.reciprocal %42 {approx = true} : vector<128x1xf32> -> vector<128x1xf32>
    %44 = arith.mulf %36, %43 : vector<128x1xf32>
    %cst_19 = arith.constant 0.995999991 : f32
    %45 = vector.broadcast %cst_19 : f32 to vector<128x1xf32>
    %46 = arith.cmpf ogt, %40, %45 : vector<128x1xf32>
    %47 = tpu.reciprocal %40 {approx = true} : vector<128x1xf32> -> vector<128x1xf32>
    %cst_20 = arith.constant 0.995999991 : f32
    %48 = vector.broadcast %cst_20 : f32 to vector<128x1xf32>
    %49 = arith.mulf %48, %47 : vector<128x1xf32>
    %50 = arith.mulf %44, %49 : vector<128x1xf32>
    %51 = arith.select %46, %50, %44 : vector<128x1xi1>, vector<128x1xf32>
    %cst_21 = arith.constant 1.000000e-15 : f32
    %52 = vector.broadcast %cst_21 : f32 to vector<128x1xf32>
    %53 = arith.cmpf ole, %17, %52 : vector<128x1xf32>
    %cst_22 = arith.constant 0.000000e+00 : f32
    %54 = vector.broadcast %cst_22 : f32 to vector<128x1xf32>
    %55 = arith.select %53, %54, %51 : vector<128x1xi1>, vector<128x1xf32>
    %cst_23 = arith.constant 0.995999991 : f32
    %56 = vector.broadcast %cst_23 : f32 to vector<128x1xf32>
    %57 = arith.minimumf %40, %56 : vector<128x1xf32>
    %58 = arith.mulf %57, %57 : vector<128x1xf32>
    %59 = vector.broadcast %2 : vector<1x128xf32> to vector<128x128xf32>
    %60 = arith.mulf %11, %59 : vector<128x128xf32>
    %cst_24 = arith.constant dense<0.000000e+00> : vector<128xf32>
    %61 = vector.multi_reduction <add>, %60, %cst_24 [1] : vector<128x128xf32> to vector<128xf32>
    %62 = vector.shape_cast %61 : vector<128xf32> to vector<128x1xf32>
    %63 = arith.mulf %55, %62 : vector<128x1xf32>
    %cst_25 = arith.constant 2.000000e+00 : f32
    %64 = vector.broadcast %cst_25 : f32 to vector<128x1xf32>
    %65 = arith.mulf %64, %63 : vector<128x1xf32>
    %cst_26 = arith.constant 1.000000e+00 : f32
    %66 = vector.broadcast %cst_26 : f32 to vector<128x1xf32>
    %67 = arith.addf %66, %65 : vector<128x1xf32>
    %cst_27 = arith.constant 1.000000e+00 : f32
    %68 = arith.mulf %cst_27, %3 : f32
    %69 = vector.broadcast %68 : f32 to vector<128x1xf32>
    %70 = arith.addf %67, %69 : vector<128x1xf32>
    %cst_28 = arith.constant 1.000000e+00 : f32
    %71 = vector.broadcast %cst_28 : f32 to vector<128x1xf32>
    %72 = arith.mulf %71, %58 : vector<128x1xf32>
    %cst_29 = arith.constant 1.000000e+00 : f32
    %73 = vector.broadcast %cst_29 : f32 to vector<128x1xf32>
    %74 = arith.subf %73, %72 : vector<128x1xf32>
    %cst_30 = arith.constant 2.000000e+00 : f32
    %75 = vector.broadcast %cst_30 : f32 to vector<128x1xf32>
    %76 = arith.mulf %75, %63 : vector<128x1xf32>
    %cst_31 = arith.constant 1.000000e+00 : f32
    %77 = vector.broadcast %cst_31 : f32 to vector<128x1xf32>
    %78 = arith.addf %77, %76 : vector<128x1xf32>
    %cst_32 = arith.constant 1.000000e+00 : f32
    %79 = vector.broadcast %cst_32 : f32 to vector<128x1xf32>
    %80 = arith.mulf %79, %58 : vector<128x1xf32>
    %81 = vector.broadcast %3 : f32 to vector<128x1xf32>
    %82 = arith.mulf %80, %81 : vector<128x1xf32>
    %83 = arith.addf %78, %82 : vector<128x1xf32>
    %cst_33 = arith.constant 1.000000e-15 : f32
    %84 = vector.broadcast %cst_33 : f32 to vector<128x1xf32>
    %85 = arith.maximumf %83, %84 : vector<128x1xf32>
    %86 = tpu.reciprocal %85 {approx = true} : vector<128x1xf32> -> vector<128x1xf32>
    %87 = arith.mulf %70, %86 : vector<128x1xf32>
    %88 = arith.mulf %87, %55 : vector<128x1xf32>
    %89 = vector.broadcast %88 : vector<128x1xf32> to vector<128x128xf32>
    %90 = arith.mulf %89, %11 : vector<128x128xf32>
    %91 = arith.mulf %74, %86 : vector<128x1xf32>
    %92 = vector.broadcast %91 : vector<128x1xf32> to vector<128x128xf32>
    %93 = vector.broadcast %2 : vector<1x128xf32> to vector<128x128xf32>
    %94 = arith.mulf %92, %93 : vector<128x128xf32>
    %95 = arith.addf %90, %94 : vector<128x128xf32>
    %96 = arith.mulf %95, %95 : vector<128x128xf32>
    %cst_34 = arith.constant dense<0.000000e+00> : vector<128xf32>
    %97 = vector.multi_reduction <add>, %96, %cst_34 [1] : vector<128x128xf32> to vector<128xf32>
    %98 = vector.shape_cast %97 : vector<128xf32> to vector<128x1xf32>
    %99 = math.sqrt %98 : vector<128x1xf32>
    %cst_35 = arith.constant 1.000000e-15 : f32
    %100 = vector.broadcast %cst_35 : f32 to vector<128x1xf32>
    %101 = arith.maximumf %99, %100 : vector<128x1xf32>
    %cst_36 = arith.constant 0.995999991 : f32
    %102 = vector.broadcast %cst_36 : f32 to vector<128x1xf32>
    %103 = arith.minimumf %101, %102 : vector<128x1xf32>
    %cst_37 = arith.constant 0.995999991 : f32
    %104 = vector.broadcast %cst_37 : f32 to vector<128x1xf32>
    %105 = arith.cmpf ogt, %101, %104 : vector<128x1xf32>
    %106 = tpu.reciprocal %101 {approx = true} : vector<128x1xf32> -> vector<128x1xf32>
    %cst_38 = arith.constant 0.995999991 : f32
    %107 = vector.broadcast %cst_38 : f32 to vector<128x1xf32>
    %108 = arith.mulf %107, %106 : vector<128x1xf32>
    %cst_39 = arith.constant 1.000000e+00 : f32
    %109 = vector.broadcast %cst_39 : f32 to vector<128x1xf32>
    %110 = arith.select %105, %108, %109 : vector<128x1xi1>, vector<128x1xf32>
    %cst_40 = arith.constant 1.000000e+00 : f32
    %111 = vector.broadcast %cst_40 : f32 to vector<128x1xf32>
    %112 = arith.mulf %111, %103 : vector<128x1xf32>
    %cst_41 = arith.constant -0.999998986 : f32
    %cst_42 = arith.constant 0.999998986 : f32
    %113 = vector.broadcast %cst_41 : f32 to vector<128x1xf32>
    %114 = arith.maximumf %113, %112 : vector<128x1xf32>
    %115 = vector.broadcast %cst_42 : f32 to vector<128x1xf32>
    %116 = arith.minimumf %115, %114 : vector<128x1xf32>
    %cst_43 = arith.constant 1.000000e+00 : f32
    %117 = vector.broadcast %cst_43 : f32 to vector<128x1xf32>
    %118 = arith.addf %117, %116 : vector<128x1xf32>
    %cst_44 = arith.constant 1.000000e+00 : f32
    %119 = vector.broadcast %cst_44 : f32 to vector<128x1xf32>
    %120 = arith.subf %119, %116 : vector<128x1xf32>
    %121 = tpu.reciprocal %120 {approx = true} : vector<128x1xf32> -> vector<128x1xf32>
    %122 = arith.mulf %118, %121 : vector<128x1xf32>
    %123 = math.log %122 : vector<128x1xf32>
    %cst_45 = arith.constant 5.000000e-01 : f32
    %124 = vector.broadcast %cst_45 : f32 to vector<128x1xf32>
    %125 = arith.mulf %124, %123 : vector<128x1xf32>
    %126 = arith.mulf %110, %125 : vector<128x1xf32>
    %cst_46 = arith.constant 1.000000e+00 : f32
    %127 = vector.broadcast %cst_46 : f32 to vector<128x1xf32>
    %128 = arith.mulf %127, %103 : vector<128x1xf32>
    %129 = tpu.reciprocal %128 {approx = true} : vector<128x1xf32> -> vector<128x1xf32>
    %130 = arith.mulf %126, %129 : vector<128x1xf32>
    %131 = vector.broadcast %130 : vector<128x1xf32> to vector<128x128xf32>
    %132 = arith.mulf %131, %95 : vector<128x128xf32>
    %133 = arith.truncf %132 : vector<128x128xf32> to vector<128x128xbf16>
    %c0_47 = arith.constant 0 : index
    %c0_48 = arith.constant 0 : index
    %134 = vector.load %arg5[%c0_47, %c0_48] : memref<128x128xbf16, #tpu.memory_space<vmem>>, vector<128x128xbf16>
    tpu.vector_store %arg5[%c0_47, %c0_48], %133 {strides = array<i32>} : memref<128x128xbf16, #tpu.memory_space<vmem>>, vector<128x128xbf16>,
    return
  }
  func.func @transform_0(%arg0: i32) -> (i32, i32) {
    %c0_i32 = arith.constant 0 : i32
    %c0_i32_0 = arith.constant 0 : i32
    return %arg0, %c0_i32 : i32, i32
  }
  func.func @transform_1(%arg0: i32) -> (i32, i32) {
    %c0_i32 = arith.constant 0 : i32
    %c0_i32_0 = arith.constant 0 : i32
    %c0_i32_1 = arith.constant 0 : i32
    return %c0_i32, %c0_i32_0 : i32, i32
  }
  func.func @transform_2(%arg0: i32) -> (i32, i32) {
    %c0_i32 = arith.constant 0 : i32
    %c0_i32_0 = arith.constant 0 : i32
    %c0_i32_1 = arith.constant 0 : i32
    return %c0_i32, %c0_i32_0 : i32, i32
  }
  func.func @transform_3(%arg0: i32) -> i32 {
    %c0_i32 = arith.constant 0 : i32
    %c0_i32_0 = arith.constant 0 : i32
    return %c0_i32 : i32
  }
  func.func @transform_4(%arg0: i32) -> (i32, i32) {
    %c0_i32 = arith.constant 0 : i32
    %c0_i32_0 = arith.constant 0 : i32
    return %arg0, %c0_i32 : i32, i32
  }
}

</mosaic_0001>

<bundles_post_ra>
// kernel: tpu_custom_call.1
= control target key start
LH: loop header
LB: loop body
LE: loop exit
PB: predicated region body
PF: predicated region fallthrough
CT: control target
= control target key end

     0   :  { %s5101_s0 = inlined_call_operand.hbm [shape: f32[256,128], index: 0, kind: input, shape index: {}]   ;;  %s5102_s1 = inlined_call_operand.hbm [shape: bf16[128,128], index: 1, kind: input, shape index: {}]   ;;  %s5103_s2 = inlined_call_operand.vmem [shape: f32[1,128], index: 2, kind: input, shape index: {}]   ;;  %s5104_s3 = inlined_call_operand.<no memory space> [shape: f32[1], index: 3, kind: input, shape index: {}]   ;;  %s5105_s4 = inlined_call_operand.hbm [shape: bf16[256,128], index: 4, kind: output, shape index: {}]  }
   0x1   :  { %9 = sst [smem:[#allocation2]] %s5104_s3 }
   0x2   :  { %10 = vsyncpa [#allocation4], 0 }
   0x3   :  { %12 = vsyncpa [#allocation4 + $0x1], 0 }
   0x4   :  { %13 = vsyncpa [#allocation7], 0 }
   0x5   :  { %14 = vsyncpa [#allocation5], 0 }
   0x6   :  { %16 = vsyncpa [#allocation5 + $0x1], 0  ;;  %s3097_s17 = smov 0   ;;  %s3099_s18 = smov 0  }
   0x7   :  { %s3101_s19 = smov 0   ;;  %s3103_s20 = smov 0  }
   0x8 LB: > { %s3118_s3 = sadd.s32 4294967295, %s3060_s20   ;;  %s2256_s21 = sadd.s32 4294967294, %s3060_s20   ;;  %s3060_s20 = sphi %s3103_s20, %s5267_s20   ;;  %s3056_s19 = sphi %s3101_s19, %s5266_s19   ;;  %s3052_s18 = sphi %s3099_s18, %s5265_s18   ;;  %s3048_s17 = sphi %s3097_s17, %s5264_s17  }
   0x9   : > { %p42_p0 = scmp.ne.s32.totalorder %s3052_s18, %s3048_s17  ;;  %p43_p1 = scmp.eq.s32.totalorder %s3118_s3, 0 }
   0xa   : > { %p129_p2 = scmp.eq.s32.totalorder %s3118_s3, 1  ;;  %p135_p3 = scmp.eq.s32.totalorder %s2256_s21, 1 }
   0xb   : > { %p3127_p4 = por %p43_p1, %p42_p0  ;;  %p2257_p5 = scmp.ge.s32.totalorder %s3060_s20, 1 }
   0xc   : > { %p3132_p6 = por %p135_p3, %p42_p0  ;;  %p142_p7 = scmp.lt.s32.totalorder %s3060_s20, 3 }
   0xd   : > { %s153_s26 = sshll.u32 %s5102_s1, 4  ;;  %s3062_s28 = smov [#allocation6]   ;;  %s154_s26 = int_to_ptr.hbm [resolvable:$true] %s153_s26 }
   0xe   : > { %p3140_p8 = pnand %p2257_p5, %p142_p7  ;;  %s155_s29 = sshll.u32 %s3062_s28, 4  ;;  %s156_s29 = int_to_ptr.vmem [resolvable:$true] %s155_s29 }
   0xf   : > { %s3150_s30 = sadd.s32 1, %s3060_s20   ;;  %s3063_s5 = smov 64  }
  0x10   : > { %p2425_p9 = pneg %p3140_p8  ;;  %s3064_s6 = smov 4  }
  0x11   : > { %s26_s7 = ssub.s32 %s3060_s20, %s3150_s30  ;;  %s29_s8 = sadd.s32 1, %s3056_s19 }
  0x12   : > { %p2426_p10 = pnand %p2425_p9, %p43_p1  ;;  %p27_p12 = scmp.eq.s32.totalorder %s26_s7, 0 }
  0x13   : > { %p36_p13 = scmp.ne.s32.totalorder %s3056_s19, %s3052_s18  ;;  %p37_p0 = scmp.eq.s32.totalorder %s3060_s20, 0 }
  0x14   : > { %2428 = dma.hbm_to_vmem [thread:$0]  (!%p2426_p10), %s154_s26, 1024, %s156_s29, [#allocation7], %s3063_s5, %s3063_s5, %s3064_s6  }
  0x15   : > { %p2438_p3 = scmp.lt.s32.totalorder %s3060_s20, 2  ;;  %p38_p5 = por %p37_p0, %p36_p13 }
  0x16   : > { %s3160_s9 = scalar_select %p27_p12, %s3056_s19, %s29_s8  }
  0x17   : > { %p3164_p7 = por %p129_p2, %p36_p13  ;;  %s175_s11 = sand.u32 1, %s3056_s19  }
  0x18   : > { %s2336_s12 = sshll.u32 %s3060_s20, 7  ;;  %s2260_s13 = sshll.u32 %s175_s11, 7 }
  0x19   : > { %s184_s16 = scalar_lea.hbm %s5101_s0, %s2336_s12  ;;  %s179_s24 = scalar_lea.vmem [#allocation3], %s2260_s13 }
  0x1a   : > { %s185_s21 = sshll.u32 %s184_s16, 4  ;;  %s187_s25 = sshll.u32 %s179_s24, 4  ;;  %s186_s21 = int_to_ptr.hbm [resolvable:$true] %s185_s21  ;;  %s188_s25 = int_to_ptr.vmem [resolvable:$true] %s187_s25 }
  0x1b   : > { %p3175_p9 = pnand %p2438_p3, %p38_p5  ;;  %s176_s28 = scalar_lea.sflag [#allocation4], %s175_s11 }
  0x1c   : > { %s2960_s29 = sshra.s32 %s186_s21, 4  ;;  %s2967_s8 = scalar_lea.hbm %s5101_s0, 256  ;;  %s2961_s29 = int_to_ptr.hbm [resolvable:$true] %s2960_s29 }
  0x1d   : > { %s2962_s5 = scalar_lea.hbm %s2961_s29, 128  ;;  %p2964_p10 = pneg %p3175_p9 }
  0x1e   : > { %p2963_p2 = scmp.ne.s32.totalorder %s2961_s29, %s2962_s5  ;;  %p2968_p0 = scmp.lt.s32.totalorder %s2961_s29, %s5101_s0 }
  0x1f   : > { %p2969_p3 = scmp.lt.s32.totalorder %s2967_s8, %s2962_s5 }
  0x20   : > { %p2965_p12 = pnand %p2964_p10, %p2963_p2 }
  0x21   : > { %p2970_p5 = por %p2969_p3, %p2968_p0 }
  0x22   : > { %p2966_p13 = pneg %p2965_p12 }
  0x24   : > { %p2971_p11 = pnand %p2970_p5, %p2966_p13 }
  0x26   : > { %2974 = shalt.err (!%p2971_p11)
}
  0x27   : > { %s3065_s11 = smov 128   ;;  %s3066_s14 = smov 8  }
  0x28   : > { %2432 = dma.hbm_to_vmem [thread:$0]  (!%p3175_p9), %s186_s21, 2048, %s188_s25, %s176_s28, %s3065_s11, %s3065_s11, %s3066_s14  }
  0x29   : > { %199 = sbr.rel (%p3140_p8) target bundleno = 777 (0x309), region = 36 }
  0x2e   : > { %s3192_s15 = sand.u32 1, %s3052_s18  }
  0x2f   : > { %s2264_s16 = sshll.u32 %s3192_s15, 7  ;;  %s202_s24 = scalar_lea.sflag [#allocation4], %s3192_s15 }
  0x30   : > { %s3196_s29 = scalar_lea.vmem [#allocation3], %s2264_s16 }
  0x31   : > { %3035 = dma.done.wait (%p3127_p4), %s202_s24, 2048  }
  0x32   : > { %3037 = vsyncadd (%p3127_p4), %s202_s24, 4294965248 }
  0x33   : > { %3039 = dma.done.wait (%p43_p1), [#allocation7], 1024  }
  0x34   : > { %3041 = vsyncadd (%p43_p1), [#allocation7], 4294966272  ;;  %v2344_v0 = vld [vmem:[#allocation6 + $0x38] sm:$0xff]  ;;  %v2343_v1 = vld [vmem:[#allocation6 + $0x30] sm:$0xff]  ;;  %s3859_s21 = sld [smem:[#allocation2]]  ;;  %s2266_s28 = sshll.u32 %s3192_s15, 6 }
  0x35   : > { %584 = vmatpush.bf16.msra.mxu0 %v2344_v0  ;;  %2393 = vmatpush.bf16.msra.mxu1 %v2344_v0  ;;  %v2342_v2 = vld [vmem:[#allocation6 + $0x28] sm:$0xff]  ;;  %v2341_v3 = vld [vmem:[#allocation6 + $0x20] sm:$0xff]  ;;  %v2340_v4 = vld [vmem:[#allocation6 + $0x18] sm:$0xff]  ;;  %s4844_s5 = scalar_lea.vmem [#allocation8], %s2266_s28  ;;  %s2345_s6 = sshll.u32 %s3118_s3, 6 }
  0x36   : > { %2394 = vmatpush.bf16.msra.mxu2 %v2344_v0  ;;  %2395 = vmatpush.bf16.msra.mxu3 %v2344_v0  ;;  %v238_v5 = vld [vmem:[%s3196_s29] sm:$0xff]  ;;  %v2339_v7 = vld [vmem:[#allocation6 + $0x10] sm:$0xff]  ;;  %v2338_v12 = vld [vmem:[#allocation6 + $0x8] sm:$0xff]  ;;  %s2169_s12 = scalar_lea.hbm %s5105_s4, %s2345_s6  ;;  %s2170_s13 = sshll.u32 %s4844_s5, 4  ;;  %s2171_s13 = int_to_ptr.vmem [resolvable:$true] %s2170_s13 }
  0x37   : > { %v242_v6 = vld [vmem:[%s3196_s29 + $0x20] sm:$0xff]  ;;  %v3209_v8 = vld [vmem:[%s3196_s29 + $0x10] sm:$0xff]  ;;  %v272_v10 = vmul.f32 %v238_v5, %v238_v5  ;;  %v239_v13 = vld [vmem:[%s3196_s29 + $0x8] sm:$0xff]  ;;  %s2172_s11 = sshll.u32 %s2169_s12, 4  ;;  %s2158_s3 = scalar_lea.sflag [#allocation5], %s3192_s15  ;;  %s2173_s11 = int_to_ptr.hbm [resolvable:$true] %s2172_s11 }
  0x38   : > { %v276_v9 = vmul.f32 %v242_v6, %v242_v6  ;;  %v274_v11 = vmul.f32 %v3209_v8, %v3209_v8  ;;  %v243_v14 = vld [vmem:[%s3196_s29 + $0x28] sm:$0xff]  ;;  %v241_v15 = vld [vmem:[%s3196_s29 + $0x18] sm:$0xff]  ;;  %v273_v17 = vmul.f32 %v239_v13, %v239_v13  ;;  %v2337_v19 = vld [vmem:[#allocation6] sm:$0xff]  ;;  %v528_v24 = vpack.c.bf16 %v239_v13, %v238_v5  ;;  %s3004_s14 = sshra.s32 %s2173_s11, 4  ;;  %s3010_s22 = scalar_lea.hbm %s5105_s4, 128  ;;  %s3005_s14 = int_to_ptr.hbm [resolvable:$true] %s3004_s14 }
  0x39   : > { %585 = vmatpush.bf16.msra.mxu0 %v2343_v1  ;;  %2396 = vmatpush.bf16.msra.mxu1 %v2343_v1  ;;  %v277_v16 = vmul.f32 %v243_v14, %v243_v14  ;;  %v275_v18 = vmul.f32 %v241_v15, %v241_v15  ;;  %v246_v20 = vld [vmem:[%s3196_s29 + $0x40] sm:$0xff]  ;;  %v247_v21 = vld [vmem:[%s3196_s29 + $0x48] sm:$0xff]  ;;  %v530_v25 = vpack.c.bf16 %v243_v14, %v242_v6  ;;  %v244_v28 = vld [vmem:[%s3196_s29 + $0x30] sm:$0xff]  ;;  %s3006_s16 = scalar_lea.hbm %s3005_s14, 64  ;;  %p3011_p11 = scmp.lt.s32.totalorder %s3005_s14, %s5105_s4 }
  0x3a   : > { %2397 = vmatpush.bf16.msra.mxu2 %v2343_v1  ;;  %2398 = vmatpush.bf16.msra.mxu3 %v2343_v1  ;;  %v250_v22 = vld [vmem:[%s3196_s29 + $0x60] sm:$0xff]  ;;  %v251_v23 = vld [vmem:[%s3196_s29 + $0x68] sm:$0xff]  ;;  %v532_v26 = vpack.c.bf16 %v247_v21, %v246_v20  ;;  %v245_v29 = vld [vmem:[%s3196_s29 + $0x38] sm:$0xff]  ;;  %v280_v30 = vmul.f32 %v246_v20, %v246_v20  ;;  %v278_v31 = vmul.f32 %v244_v28, %v244_v28  ;;  %p3007_p1 = scmp.ne.s32.totalorder %s3005_s14, %s3006_s16  ;;  %p3012_p9 = scmp.lt.s32.totalorder %s3010_s22, %s3006_s16 }
  0x3b   : > { %296 = vadd.xlane.f32.xlu2 %v276_v9  ;;  %288 = vadd.xlane.f32.xlu0 %v272_v10  ;;  %v534_v27 = vpack.c.bf16 %v251_v23, %v250_v22  ;;  %v279_v32 = vmul.f32 %v245_v29, %v245_v29  ;;  %v249_v33 = vld [vmem:[%s3196_s29 + $0x58] sm:$0xff]  ;;  %v248_v34 = vld [vmem:[%s3196_s29 + $0x50] sm:$0xff]  ;;  %v281_v36 = vmul.f32 %v247_v21, %v247_v21 }
  0x3c   : > { %292 = vadd.xlane.f32.xlu1 %v274_v11  ;;  %v283_v35 = vmul.f32 %v249_v33, %v249_v33  ;;  %v282_v37 = vmul.f32 %v248_v34, %v248_v34  ;;  %v252_v38 = vld [vmem:[%s3196_s29 + $0x70] sm:$0xff]  ;;  %v253_v39 = vld [vmem:[%s3196_s29 + $0x78] sm:$0xff]  ;;  %v531_v40 = vpack.c.bf16 %v245_v29, %v244_v28  ;;  %v529_v41 = vpack.c.bf16 %v241_v15, %v3209_v8  ;;  %p3008_p4 = pnand %p3007_p1, %p3164_p7  ;;  %p3013_p2 = por %p3012_p9, %p3011_p11 }
  0x3d   : > { %586 = vmatpush.bf16.msra.mxu0 %v2342_v2  ;;  %2399 = vmatpush.bf16.msra.mxu1 %v2342_v2  ;;  %v533_v42 = vpack.c.bf16 %v249_v33, %v248_v34  ;;  %v535_v43 = vpack.c.bf16 %v253_v39, %v252_v38  ;;  %v286_v44 = vmul.f32 %v252_v38, %v252_v38 }
  0x3e   : > { %2400 = vmatpush.bf16.msra.mxu2 %v2342_v2  ;;  %2401 = vmatpush.bf16.msra.mxu3 %v2342_v2  ;;  %v284_v45 = vmul.f32 %v250_v22, %v250_v22  ;;  %v285_v46 = vmul.f32 %v251_v23, %v251_v23  ;;  %v287_v47 = vmul.f32 %v253_v39, %v253_v39  ;;  %v3305_v22 = vld [vmem:[%s5103_s2] ss:$0 sm:$0xff]  ;;  %p3009_p8 = pneg %p3008_p4 }
  0x40   : > { %p3014_p10 = pnand %p3013_p2, %p3009_p8 }
  0x41   : > { %587 = vmatpush.bf16.msra.mxu0 %v2341_v3  ;;  %2402 = vmatpush.bf16.msra.mxu1 %v2341_v3 }
  0x42   : > { %2403 = vmatpush.bf16.msra.mxu2 %v2341_v3  ;;  %2404 = vmatpush.bf16.msra.mxu3 %v2341_v3 }
  0x43   : > { %298 = vadd.xlane.f32.xlu2 %v277_v16  ;;  %290 = vadd.xlane.f32.xlu0 %v273_v17 }
  0x44   : > { %294 = vadd.xlane.f32.xlu1 %v275_v18 }
  0x45   : > { %588 = vmatpush.bf16.msra.mxu0 %v2340_v4  ;;  %2405 = vmatpush.bf16.msra.mxu1 %v2340_v4 }
  0x46   : > { %2406 = vmatpush.bf16.msra.mxu2 %v2340_v4  ;;  %2407 = vmatpush.bf16.msra.mxu3 %v2340_v4 }
  0x49   : > { %589 = vmatpush.bf16.msra.mxu0 %v2339_v7  ;;  %2408 = vmatpush.bf16.msra.mxu1 %v2339_v7 }
  0x4a   : > { %2409 = vmatpush.bf16.msra.mxu2 %v2339_v7  ;;  %2410 = vmatpush.bf16.msra.mxu3 %v2339_v7 }
  0x4b   : > { %304 = vadd.xlane.f32.xlu2 %v280_v30  ;;  %300 = vadd.xlane.f32.xlu0 %v278_v31 }
  0x4c   : > { %302 = vadd.xlane.f32.xlu1 %v279_v32 }
  0x4d   : > { %590 = vmatpush.bf16.msra.mxu0 %v2338_v12  ;;  %2411 = vmatpush.bf16.msra.mxu1 %v2338_v12 }
  0x4e   : > { %2412 = vmatpush.bf16.msra.mxu2 %v2338_v12  ;;  %2413 = vmatpush.bf16.msra.mxu3 %v2338_v12 }
  0x51   : > { %591 = vmatpush.bf16.msra.mxu0 %v2337_v19  ;;  %2414 = vmatpush.bf16.msra.mxu1 %v2337_v19 }
  0x52   : > { %2415 = vmatpush.bf16.msra.mxu2 %v2337_v19  ;;  %2416 = vmatpush.bf16.msra.mxu3 %v2337_v19 }
  0x53   : > { %310 = vadd.xlane.f32.xlu2 %v283_v35  ;;  %306 = vadd.xlane.f32.xlu0 %v281_v36 }
  0x54   : > { %592 = vmatmul.bf16.vlgmr.msra.gmra.mxu0 %v528_v24  ;;  %602 = vmatmul.bf16.vlgmr.msra.gmra.mxu1 %v530_v25 }
  0x55   : > { %612 = vmatmul.bf16.vlgmr.msra.gmra.mxu2 %v532_v26  ;;  %622 = vmatmul.bf16.vlgmr.msra.gmra.mxu3 %v534_v27 }
  0x56   : > { %308 = vadd.xlane.f32.xlu1 %v282_v37 }
  0x5b   : > { %316 = vadd.xlane.f32.xlu2 %v286_v44  ;;  %312 = vadd.xlane.f32.xlu0 %v284_v45 }
  0x5e   : > { %314 = vadd.xlane.f32.xlu1 %v285_v46 }
  0x63   : > { %318 = vadd.xlane.f32.xlu0 %v287_v47 }
  0x64   : > { %607 = vmatmul.bf16.gmra.mxu1 %v531_v40  ;;  %597 = vmatmul.bf16.gmra.mxu0 %v529_v41 }
  0x65   : > { %617 = vmatmul.bf16.gmra.mxu2 %v533_v42  ;;  %627 = vmatmul.bf16.gmra.mxu3 %v535_v43 }
  0xae   : > { %v3271_v6 = vpop.xlane.xlu2 %296  ;;  %v3290_v15 = vpop.xlane.xlu0 %288 }
  0xaf   : > { %2481 = vrsqrt.f32 %v3271_v6  ;;  %v3288_v14 = vpop.xlane.xlu1 %292  ;;  %vm375_vm0 = vcmp.eq.f32.partialorder %v3271_v6, inf  ;;  %vm377_vm1 = vcmp.eq.f32.partialorder %v3271_v6, 0.0  ;;  %vm327_vm6 = vcmp.eq.f32.partialorder %v3290_v15, inf }
  0xb0   : > { %vm351_vm4 = vcmp.eq.f32.partialorder %v3288_v14, inf  ;;  %vm353_vm5 = vcmp.eq.f32.partialorder %v3288_v14, 0.0  ;;  %vm329_vm7 = vcmp.eq.f32.partialorder %v3290_v15, 0.0 }
  0xb5   : > { %v2482_v20 = vpop.eup %2481 }
  0xb6   : > { %v3285_v13 = vpop.xlane.xlu2 %298  ;;  %v369_v23 = vmul.f32 %v2482_v20, %v3271_v6  ;;  %v3311_v25 = vpop.xlane.xlu0 %290 }
  0xb7   : > { %2483 = vrsqrt.f32 %v3285_v13  ;;  %v3314_v27 = vpop.xlane.xlu1 %294  ;;  %vm387_vm2 = vcmp.eq.f32.partialorder %v3285_v13, inf  ;;  %vm389_vm3 = vcmp.eq.f32.partialorder %v3285_v13, 0.0  ;;  %vm339_vm12 = vcmp.eq.f32.partialorder %v3311_v25, inf }
  0xb8   : > { %2485 = vrsqrt.f32 %v3288_v14  ;;  %v370_v31 = vmul.f32 %v2482_v20, %v369_v23  ;;  %vm363_vm10 = vcmp.eq.f32.partialorder %v3314_v27, inf  ;;  %vm365_vm11 = vcmp.eq.f32.partialorder %v3314_v27, 0.0 }
  0xb9   : > { %2487 = vrsqrt.f32 %v3290_v15  ;;  %vm341_vm14 = vcmp.eq.f32.partialorder %v3311_v25, 0.0 }
  0xba   : > { %v371_v36 = vmul.f32 0.5, %v370_v31 }
  0xbc   : > { %v372_v46 = vsub.f32 1.5, %v371_v36 }
  0xbd   : > { %v2484_v21 = vpop.eup %2483 }
  0xbe   : > { %v3309_v24 = vpop.xlane.xlu2 %304  ;;  %v381_v26 = vmul.f32 %v2484_v21, %v3285_v13  ;;  %v2486_v28 = vpop.eup %2485 }
  0xbf   : > { %v345_v34 = vmul.f32 %v2486_v28, %v3288_v14  ;;  %v3323_v35 = vpop.eup %2487  ;;  %2489 = vrsqrt.f32 %v3309_v24  ;;  %v3331_v41 = vpop.xlane.xlu0 %300  ;;  %vm423_vm8 = vcmp.eq.f32.partialorder %v3309_v24, inf  ;;  %vm425_vm9 = vcmp.eq.f32.partialorder %v3309_v24, 0.0 }
  0xc0   : > { %v382_v33 = vmul.f32 %v2484_v21, %v381_v26  ;;  %v321_v39 = vmul.f32 %v3323_v35, %v3290_v15  ;;  %2491 = vrsqrt.f32 %v3314_v27  ;;  %v3335_v43 = vpop.xlane.xlu1 %302 }
  0xc1   : > { %v346_v38 = vmul.f32 %v2486_v28, %v345_v34  ;;  %2493 = vrsqrt.f32 %v3311_v25 }
  0xc2   : > { %v383_v37 = vmul.f32 0.5, %v382_v33 }
  0xc5   : > { %v3337_v44 = vpop.eup %2489 }
  0xc6   : > { %v3329_v40 = vpop.xlane.xlu2 %310 }
  0xc7   : > { %2495 = vrsqrt.f32 %v3329_v40  ;;  %vm459_vm13 = vcmp.eq.f32.partialorder %v3329_v40, inf  ;;  %vm461_vm15 = vcmp.eq.f32.partialorder %v3329_v40, 0.0 }
  0xc8   : > { %2497 = vrsqrt.f32 %v3335_v43 }
  0xc9   : > { %v3385_v36 = vpop.xlane.xlu1 %308  ;;  %2499 = vrsqrt.f32 %v3331_v41 }
  0xd1   : > { %v3227_v48 = vpop.f32.mrf.mxu0  ;;  %v3229_v49 = vpop.f32.mrf.mxu1 }
  0xd2   : > { %5157 = vst [vmem:[#allocation12_spill] sm:$0xff] %v3227_v48  ;;  %v637_v50 = vmul.f32 %v3229_v49, %v3229_v49  ;;  %v633_v51 = vmul.f32 %v3227_v48, %v3227_v48  ;;  %v1292_v29 = vmul.f32 %v3305_v22, %v3227_v48  ;;  %v1296_v42 = vmul.f32 %v3305_v22, %v3229_v49 }
  0xd3   : > { %5158 = vst [vmem:[#allocation13_spill] sm:$0xff] %v3229_v49 }
  0xd4   : > { %657 = vadd.xlane.f32.xlu2 %v637_v50  ;;  %649 = vadd.xlane.f32.xlu1 %v633_v51  ;;  %v384_v50 = vsub.f32 1.5, %v383_v37  ;;  %v347_v51 = vmul.f32 0.5, %v346_v38 }
  0xd8   : > { %v3235_v52 = vpop.f32.mrf.mxu2  ;;  %v3237_v53 = vpop.f32.mrf.mxu3 }
  0xd9   : > { %5159 = vst [vmem:[#allocation14_spill] sm:$0xff] %v3235_v52  ;;  %v3239_v54 = vpop.f32.mrf.mxu0  ;;  %v641_v55 = vmul.f32 %v3235_v52, %v3235_v52  ;;  %v645_v56 = vmul.f32 %v3237_v53, %v3237_v53  ;;  %v3245_v57 = vpop.f32.mrf.mxu1 }
  0xda   : > { %5160 = vst [vmem:[#allocation15_spill] sm:$0xff] %v3237_v53  ;;  %v634_v58 = vmul.f32 %v3239_v54, %v3239_v54  ;;  %v638_v60 = vmul.f32 %v3245_v57, %v3245_v57  ;;  %v1293_v30 = vmul.f32 %v3305_v22, %v3239_v54  ;;  %v1297_v47 = vmul.f32 %v3305_v22, %v3245_v57 }
  0xdb   : > { %5161 = vst [vmem:[#allocation16_spill] sm:$0xff] %v3239_v54  ;;  %665 = vadd.xlane.f32.xlu0 %v641_v55  ;;  %v322_v55 = vmul.f32 %v3323_v35, %v321_v39 }
  0xdc   : > { %5162 = vst [vmem:[#allocation17_spill] sm:$0xff] %v3245_v57  ;;  %673 = vadd.xlane.f32.xlu1 %v645_v56  ;;  %651 = vadd.xlane.f32.xlu2 %v634_v58  ;;  %v3346_v56 = vpop.eup %2491  ;;  %v417_v58 = vmul.f32 %v3337_v44, %v3309_v24 }
  0xe0   : > { %v3249_v59 = vpop.f32.mrf.mxu2  ;;  %v3255_v62 = vpop.f32.mrf.mxu3 }
  0xe1   : > { %5163 = vst [vmem:[#allocation18_spill] sm:$0xff] %v3249_v59  ;;  %v642_v61 = vmul.f32 %v3249_v59, %v3249_v59  ;;  %v3257_v63 = vpop.f32.mrf.mxu1  ;;  %v3259_v0 = vpop.f32.mrf.mxu0  ;;  %v646_v19 = vmul.f32 %v3255_v62, %v3255_v62 }
  0xe2   : > { %5164 = vst [vmem:[#allocation19_spill] sm:$0xff] %v3255_v62  ;;  %v635_v1 = vmul.f32 %v3259_v0, %v3259_v0  ;;  %v639_v4 = vmul.f32 %v3257_v63, %v3257_v63  ;;  %v1294_v32 = vmul.f32 %v3305_v22, %v3259_v0 }
  0xe3   : > { %659 = vadd.xlane.f32.xlu0 %v638_v60  ;;  %5165 = vst [vmem:[#allocation20_spill] sm:$0xff] %v3257_v63  ;;  %v373_v60 = vmul.f32 %v2482_v20, %v372_v46  ;;  %v418_v20 = vmul.f32 %v3337_v44, %v417_v58  ;;  %v390_v46 = vand.u32 2147483648, %v3285_v13 }
  0xe4   : > { %667 = vadd.xlane.f32.xlu1 %v642_v61  ;;  %5166 = vst [vmem:[#allocation21_spill] sm:$0xff] %v3259_v0  ;;  %v385_v61 = vmul.f32 %v2484_v21, %v384_v50  ;;  %v3370_v21 = vmul.f32 %v3305_v22, %v3255_v62 }
  0xe5   : > { %v374_v31 = vmul.f32 %v373_v60, %v3271_v6 }
  0xe8   : > { %v3263_v2 = vpop.f32.mrf.mxu2  ;;  %v3269_v5 = vpop.f32.mrf.mxu3 }
  0xe9   : > { %5167 = vst [vmem:[#allocation22_spill] sm:$0xff] %v3263_v2  ;;  %v643_v3 = vmul.f32 %v3263_v2, %v3263_v2  ;;  %v3273_v7 = vpop.f32.mrf.mxu0  ;;  %v3275_v8 = vpop.f32.mrf.mxu1  ;;  %v647_v17 = vmul.f32 %v3269_v5, %v3269_v5  ;;  %v1302_v26 = vmul.f32 %v3305_v22, %v3263_v2 }
  0xea   : > { %5168 = vst [vmem:[#allocation23_spill] sm:$0xff] %v3269_v5  ;;  %v636_v10 = vmul.f32 %v3273_v7, %v3273_v7  ;;  %v640_v11 = vmul.f32 %v3275_v8, %v3275_v8  ;;  %v1295_v45 = vmul.f32 %v3305_v22, %v3273_v7  ;;  %v1299_v23 = vmul.f32 %v3305_v22, %v3275_v8 }
  0xeb   : > { %669 = vadd.xlane.f32.xlu2 %v643_v3  ;;  %653 = vadd.xlane.f32.xlu0 %v635_v1  ;;  %5169 = vst [vmem:[#allocation24_spill] sm:$0xff] %v3273_v7  ;;  %v348_v1 = vsub.f32 1.5, %v347_v51  ;;  %v323_v3 = vmul.f32 0.5, %v322_v55  ;;  %v3406_v51 = vpop.xlane.xlu2 %316  ;;  %v376_v55 = vsel %vm375_vm0, %v3271_v6, %v374_v31  ;;  %vm411_vm0 = vcmp.eq.f32.partialorder %v3335_v43, inf }
  0xec   : > { %661 = vadd.xlane.f32.xlu1 %v639_v4  ;;  %5170 = vst [vmem:[#allocation25_spill] sm:$0xff] %v3275_v8  ;;  %v3350_v4 = vpop.eup %2493  ;;  %2501 = vrsqrt.f32 %v3406_v51 }
  0xed   : > { %v349_v33 = vmul.f32 %v2486_v28, %v348_v1  ;;  %v324_v34 = vsub.f32 1.5, %v323_v3  ;;  %v333_v38 = vmul.f32 %v3350_v4, %v3311_v25  ;;  %v419_v28 = vmul.f32 0.5, %v418_v20 }
  0xee   : > { %2503 = vrsqrt.f32 %v3385_v36 }
  0xef   : > { %v350_v58 = vmul.f32 %v349_v33, %v3288_v14  ;;  %v325_v60 = vmul.f32 %v3323_v35, %v324_v34  ;;  %v334_v3 = vmul.f32 %v3350_v4, %v333_v38  ;;  %v330_v35 = vand.u32 2147483648, %v3290_v15 }
  0xf0   : > { %v3277_v9 = vpop.f32.mrf.mxu2  ;;  %v3292_v16 = vpop.f32.mrf.mxu3 }
  0xf1   : > { %5171 = vst [vmem:[#allocation26_spill] sm:$0xff] %v3277_v9  ;;  %v644_v12 = vmul.f32 %v3277_v9, %v3277_v9  ;;  %v648_v18 = vmul.f32 %v3292_v16, %v3292_v16  ;;  %v3404_v50 = vmul.f32 %v3305_v22, %v3292_v16  ;;  %v326_v33 = vmul.f32 %v325_v60, %v3290_v15 }
  0xf2   : > { %5172 = vst [vmem:[#allocation27_spill] sm:$0xff] %v3292_v16 }
  0xf3   : > { %663 = vadd.xlane.f32.xlu2 %v640_v11  ;;  %671 = vadd.xlane.f32.xlu0 %v644_v12  ;;  %v357_v11 = vmul.f32 %v3346_v56, %v3314_v27  ;;  %v3358_v12 = vmul.f32 %v3305_v22, %v3237_v53 }
  0xf4   : > { %655 = vadd.xlane.f32.xlu1 %v636_v10  ;;  %v1300_v10 = vmul.f32 %v3305_v22, %v3235_v52 }
  0xf5   : > { %v358_v37 = vmul.f32 %v3346_v56, %v357_v11 }
  0xf7   : > { %v359_v1 = vmul.f32 0.5, %v358_v37  ;;  %v335_v37 = vmul.f32 0.5, %v334_v3 }
  0xf9   : > { %v360_v34 = vsub.f32 1.5, %v359_v1  ;;  %v336_v60 = vsub.f32 1.5, %v335_v37 }
  0xfb   : > { %675 = vadd.xlane.f32.xlu2 %v646_v19  ;;  %677 = vadd.xlane.f32.xlu0 %v647_v17  ;;  %v3361_v17 = vpop.eup %2495  ;;  %v1301_v19 = vmul.f32 %v3305_v22, %v3249_v59 }
  0xfc   : > { %679 = vadd.xlane.f32.xlu1 %v648_v18  ;;  %v1298_v18 = vmul.f32 %v3305_v22, %v3257_v63  ;;  %v453_v39 = vmul.f32 %v3361_v17, %v3329_v40 }
 0x103   : > { %1308 = vadd.xlane.f32.xlu2 %v1292_v29  ;;  %1310 = vadd.xlane.f32.xlu0 %v1293_v30  ;;  %v3379_v29 = vmul.f32 %v3305_v22, %v3269_v5  ;;  %v3381_v30 = vpop.xlane.xlu0 %306 }
 0x104   : > { %1312 = vadd.xlane.f32.xlu1 %v1294_v32  ;;  %v386_v32 = vmul.f32 %v385_v61, %v3285_v13  ;;  %2505 = vrsqrt.f32 %v3381_v30 }
 0x106   : > { %v388_v61 = vsel %vm387_vm2, %v3285_v13, %v386_v32  ;;  %v352_v32 = vsel %vm351_vm4, %v3288_v14, %v350_v58  ;;  %v361_v58 = vmul.f32 %v3346_v56, %v360_v34  ;;  %vm399_vm2 = vcmp.eq.f32.partialorder %v3331_v41, inf }
 0x107   : > { %v3433_v31 = vsel %vm389_vm3, %v390_v46, %v388_v61  ;;  %vm401_vm3 = vcmp.eq.f32.partialorder %v3331_v41, 0.0  ;;  %vm495_vm4 = vcmp.eq.f32.partialorder %v3406_v51, inf }
 0x10b   : > { %1314 = vadd.xlane.f32.xlu2 %v1295_v45  ;;  %1316 = vadd.xlane.f32.xlu0 %v1296_v42  ;;  %v378_v42 = vand.u32 2147483648, %v3271_v6  ;;  %v3396_v45 = vpop.eup %2497  ;;  %v3440_v6 = vpop.xlane.xlu0 %312 }
 0x10c   : > { %1318 = vadd.xlane.f32.xlu1 %v1297_v47  ;;  %v1303_v47 = vmul.f32 %v3305_v22, %v3277_v9  ;;  %v454_v22 = vmul.f32 %v3361_v17, %v453_v39  ;;  %v405_v11 = vmul.f32 %v3396_v45, %v3335_v43  ;;  %v3425_v20 = vpop.eup %2499 }
 0x10d   : > { %v3453_v46 = vpop.eup %2501 }
 0x10e   : > { %v455_v38 = vmul.f32 0.5, %v454_v22  ;;  %v406_v13 = vmul.f32 %v3396_v45, %v405_v11  ;;  %v3470_v22 = vpop.eup %2503 }
 0x10f   : > { %v3490_v37 = vpop.eup %2505 }
 0x110   : > { %v456_v61 = vsub.f32 1.5, %v455_v38  ;;  %v407_v3 = vmul.f32 0.5, %v406_v13  ;;  %v362_v38 = vmul.f32 %v361_v58, %v3314_v27 }
 0x112   : > { %v457_v13 = vmul.f32 %v3361_v17, %v456_v61 }
 0x113   : > { %1320 = vadd.xlane.f32.xlu2 %v1298_v18  ;;  %1322 = vadd.xlane.f32.xlu0 %v1299_v23  ;;  %v354_v18 = vand.u32 2147483648, %v3288_v14  ;;  %v3429_v23 = vsel %vm377_vm1, %v378_v42, %v376_v55  ;;  %v3446_v42 = vpop.xlane.xlu1 %314  ;;  %v328_v55 = vsel %vm327_vm6, %v3290_v15, %v326_v33  ;;  %v366_v14 = vand.u32 2147483648, %v3314_v27  ;;  %v3499_v15 = vpop.xlane.xlu0 %318 }
 0x114   : > { %1324 = vadd.xlane.f32.xlu1 %v1300_v10  ;;  %v420_v10 = vsub.f32 1.5, %v419_v28  ;;  %v393_v28 = vmul.f32 %v3425_v20, %v3331_v41  ;;  %2507 = vrsqrt.f32 %v3446_v42  ;;  %v3487_v34 = vsel %vm329_vm7, %v330_v35, %v328_v55 }
 0x115   : > { %2509 = vrsqrt.f32 %v3440_v6  ;;  %vm413_vm1 = vcmp.eq.f32.partialorder %v3335_v43, 0.0  ;;  %vm447_vm6 = vcmp.eq.f32.partialorder %v3385_v36, inf  ;;  %vm449_vm7 = vcmp.eq.f32.partialorder %v3385_v36, 0.0 }
 0x116   : > { %v421_v39 = vmul.f32 %v3337_v44, %v420_v10  ;;  %v5106_v44 = vmax.f32 %v3433_v31, 1e-15  ;;  %v394_v11 = vmul.f32 %v3425_v20, %v393_v28  ;;  %v408_v28 = vsub.f32 1.5, %v407_v3 }
 0x117   : > { %2511 = vrsqrt.f32 %v3499_v15  ;;  %v364_v3 = vsel %vm363_vm10, %v3314_v27, %v362_v38  ;;  %vm483_vm10 = vcmp.eq.f32.partialorder %v3446_v42, inf }
 0x118   : > { %v422_v1 = vmul.f32 %v421_v39, %v3309_v24  ;;  %v337_v39 = vmul.f32 %v3350_v4, %v336_v60  ;;  %v441_v4 = vmul.f32 %v3470_v22, %v3385_v36  ;;  %v395_v55 = vmul.f32 0.5, %v394_v11 }
 0x11a   : > { %v424_v35 = vsel %vm423_vm8, %v3309_v24, %v422_v1  ;;  %v338_v11 = vmul.f32 %v337_v39, %v3311_v25  ;;  %v396_v38 = vsub.f32 1.5, %v395_v55  ;;  %vm435_vm8 = vcmp.eq.f32.partialorder %v3381_v30, inf }
 0x11b   : > { %1326 = vadd.xlane.f32.xlu2 %v1301_v19  ;;  %1328 = vadd.xlane.f32.xlu0 %v1302_v26  ;;  %v5107_v19 = vmax.f32 %v3429_v23, 1e-15  ;;  %v426_v26 = vand.u32 2147483648, %v3309_v24 }
 0x11c   : > { %1330 = vadd.xlane.f32.xlu1 %v1303_v47  ;;  %v3458_v47 = vsel %vm353_vm5, %v354_v18, %v352_v32  ;;  %v489_v18 = vmul.f32 %v3453_v46, %v3406_v51  ;;  %v3482_v32 = vclamps-f32 %v5106_v44, 0.999999  ;;  %v462_v44 = vand.u32 2147483648, %v3329_v40 }
 0x11d   : > { %v3474_v10 = vclamps-f32 %v5107_v19, 0.999999  ;;  %v5108_v33 = vmax.f32 %v3458_v47, 1e-15  ;;  %v3523_v1 = vsel %vm425_vm9, %v426_v26, %v424_v35  ;;  %v409_v19 = vmul.f32 %v3396_v45, %v408_v28 }
 0x11e   : > { %v490_v58 = vmul.f32 %v3453_v46, %v489_v18  ;;  %v974_v60 = vsub.f32 1.0, %v3482_v32  ;;  %v458_v18 = vmul.f32 %v457_v13, %v3329_v40  ;;  %v5110_v35 = vmax.f32 %v3523_v1, 1e-15 }
 0x11f   : > { %v973_v17 = vsub.f32 1.0, %v3474_v10  ;;  %v3516_v61 = vclamps-f32 %v5108_v33, 0.999999  ;;  %v442_v33 = vmul.f32 %v3470_v22, %v441_v4  ;;  %v3545_v45 = vsel %vm365_vm11, %v366_v14, %v364_v3 }
 0x120   : > { %v491_v39 = vmul.f32 0.5, %v490_v58  ;;  %v340_v4 = vsel %vm339_vm12, %v3311_v25, %v338_v11  ;;  %v410_v27 = vmul.f32 %v409_v19, %v3335_v43  ;;  %v397_v11 = vmul.f32 %v3425_v20, %v396_v38 }
 0x121   : > { %2513 = vrcp.f32 %v973_v17  ;;  %v971_v13 = vsub.f32 1.0, %v3516_v61  ;;  %v460_v17 = vsel %vm459_vm13, %v3329_v40, %v458_v18  ;;  %v443_v14 = vmul.f32 0.5, %v442_v33 }
 0x122   : > { %2515 = vrcp.f32 %v974_v60  ;;  %v492_v18 = vsub.f32 1.5, %v491_v39  ;;  %v5173_v19 = vand.u32 2147483648, %v3311_v25  ;;  %v3579_v3 = vsel %vm461_vm15, %v462_v44, %v460_v17 }
 0x123   : > { %1332 = vadd.xlane.f32.xlu2 %v3358_v12  ;;  %1334 = vadd.xlane.f32.xlu0 %v3370_v21  ;;  %v3508_v12 = vpop.eup %2507  ;;  %v5109_v21 = vmax.f32 %v3487_v34, 1e-15  ;;  %2517 = vrcp.f32 %v971_v13  ;;  %5174 = vst [vmem:[#allocation28_spill] sm:$0xff] %v3579_v3  ;;  %v414_v20 = vand.u32 2147483648, %v3335_v43  ;;  %v412_v25 = vsel %vm411_vm0, %v3335_v43, %v410_v27 }
 0x124   : > { %1336 = vadd.xlane.f32.xlu1 %v3379_v29  ;;  %v429_v29 = vmul.f32 %v3490_v37, %v3381_v30  ;;  %v477_v56 = vmul.f32 %v3508_v12, %v3446_v42  ;;  %v3535_v24 = vpop.eup %2509  ;;  %v444_v39 = vsub.f32 1.5, %v443_v14  ;;  %v5175_v40 = vmax.f32 %v3545_v45, 1e-15 }
 0x125   : > { %v3539_v26 = vclamps-f32 %v5109_v21, 0.999999  ;;  %v3556_v55 = vpop.eup %2511  ;;  %v465_v60 = vmul.f32 %v3535_v24, %v3440_v6  ;;  %vm497_vm5 = vcmp.eq.f32.partialorder %v3406_v51, 0.0  ;;  %vm437_vm9 = vcmp.eq.f32.partialorder %v3381_v30, 0.0 }
 0x126   : > { %v430_v28 = vmul.f32 %v3490_v37, %v429_v29  ;;  %v478_v58 = vmul.f32 %v3508_v12, %v477_v56  ;;  %v3573_v56 = vsel %vm341_vm14, %v5173_v19, %v340_v4  ;;  %v501_v38 = vmul.f32 %v3556_v55, %v3499_v15 }
 0x127   : > { %v969_v29 = vsub.f32 1.0, %v3539_v26  ;;  %v3575_v21 = vpop.eup %2513  ;;  %v3593_v44 = vclamps-f32 %v5175_v40, 0.999999  ;;  %v5112_v17 = vmax.f32 %v3573_v56, 1e-15  ;;  %v398_v19 = vmul.f32 %v397_v11, %v3331_v41 }
 0x128   : > { %v431_v33 = vmul.f32 0.5, %v430_v28  ;;  %v479_v13 = vmul.f32 0.5, %v478_v58  ;;  %v466_v28 = vmul.f32 %v3535_v24, %v465_v60  ;;  %v3589_v4 = vpop.eup %2515  ;;  %v3603_v58 = vsel %vm413_vm1, %v414_v20, %v412_v25 }
 0x129   : > { %2519 = vrcp.f32 %v969_v29  ;;  %v502_v60 = vmul.f32 %v3556_v55, %v501_v38  ;;  %v3607_v40 = vpop.eup %2517  ;;  %v445_v29 = vmul.f32 %v3470_v22, %v444_v39  ;;  %v3614_v14 = vclamps-f32 %v5112_v17, 0.999999 }
 0x12a   : > { %v432_v27 = vsub.f32 1.5, %v431_v33  ;;  %v480_v11 = vsub.f32 1.5, %v479_v13  ;;  %v972_v33 = vsub.f32 1.0, %v3593_v44  ;;  %v400_v43 = vsel %vm399_vm2, %v3331_v41, %v398_v19 }
 0x12b   : > { %1338 = vadd.xlane.f32.xlu2 %v3404_v50  ;;  %v3567_v50 = vclamps-f32 %v5110_v35, 0.999999  ;;  %v493_v35 = vmul.f32 %v3453_v46, %v492_v18  ;;  %v402_v46 = vand.u32 2147483648, %v3331_v41  ;;  %v467_v18 = vmul.f32 0.5, %v466_v28 }
 0x12c   : > { %v433_v25 = vmul.f32 %v3490_v37, %v432_v27  ;;  %v5176_v22 = vmax.f32 %v3579_v3, 1e-15  ;;  %v498_v13 = vand.u32 2147483648, %v3406_v51  ;;  %v503_v28 = vmul.f32 0.5, %v502_v60 }
 0x12d   : > { %v977_v16 = vsub.f32 1.0, %v3567_v50  ;;  %v494_v20 = vmul.f32 %v493_v35, %v3406_v51  ;;  %v3629_v35 = vsel %vm401_vm3, %v402_v46, %v400_v43  ;;  %v481_v19 = vmul.f32 %v3508_v12, %v480_v11 }
 0x12e   : > { %v3623_v39 = vclamps-f32 %v5176_v22, 0.999999  ;;  %v468_v38 = vsub.f32 1.5, %v467_v18  ;;  %v970_v37 = vsub.f32 1.0, %v3614_v14  ;;  %v5178_v22 = vmax.f32 %v3603_v58, 1e-15 }
 0x12f   : > { %2521 = vrcp.f32 %v977_v16  ;;  %v2520_v17 = vpop.eup %2519  ;;  %v446_v16 = vmul.f32 %v445_v29, %v3385_v36  ;;  %v496_v27 = vsel %vm495_vm4, %v3406_v51, %v494_v20  ;;  %v450_v41 = vand.u32 2147483648, %v3385_v36 }
 0x130   : > { %5177 = vst [vmem:[#allocation29_spill] sm:$0xff] %v3623_v39  ;;  %2523 = vrcp.f32 %v972_v33  ;;  %v3638_v60 = vclamps-f32 %v5178_v22, 0.999999  ;;  %v434_v46 = vmul.f32 %v433_v25, %v3381_v30  ;;  %v980_v12 = vsub.f32 1.0, %v3623_v39 }
 0x131   : > { %v504_v11 = vsub.f32 1.5, %v503_v28  ;;  %v3650_v33 = vsel %vm497_vm5, %v498_v13, %v496_v27  ;;  %v448_v43 = vsel %vm447_vm6, %v3385_v36, %v446_v16  ;;  %v482_v20 = vmul.f32 %v481_v19, %v3446_v42 }
 0x132   : > { %5179 = vst [vmem:[#allocation30_spill] sm:$0xff] %v3650_v33  ;;  %v469_v22 = vmul.f32 %v3535_v24, %v468_v38  ;;  %2525 = vrcp.f32 %v970_v37  ;;  %v438_v25 = vand.u32 2147483648, %v3381_v30  ;;  %v976_v28 = vsub.f32 1.0, %v3638_v60 }
 0x133   : > { %v436_v29 = vsel %vm435_vm8, %v3381_v30, %v434_v46  ;;  %v486_v51 = vand.u32 2147483648, %v3446_v42  ;;  %v953_v13 = vadd.f32 1.0, %v3539_v26  ;;  %v5180_v19 = vmax.f32 %v3629_v35, 1e-15 }
 0x134   : > { %v5114_v38 = vmax.f32 %v3650_v33, 1e-15  ;;  %v3671_v37 = vsel %vm449_vm7, %v450_v41, %v448_v43  ;;  %v505_v27 = vmul.f32 %v3556_v55, %v504_v11  ;;  %2527 = vrcp.f32 %v980_v12 }
 0x135   : > { %v3646_v18 = vpop.eup %2521  ;;  %v3666_v24 = vclamps-f32 %v5180_v19, 0.999999  ;;  %5181 = vst [vmem:[#allocation31_spill] sm:$0xff] %v3671_v37  ;;  %v484_v46 = vsel %vm483_vm10, %v3446_v42, %v482_v20  ;;  %vm485_vm11 = vcmp.eq.f32.partialorder %v3446_v42, 0.0  ;;  %v470_v26 = vmul.f32 %v469_v22, %v3440_v6 }
 0x136   : > { %v3662_v16 = vpop.eup %2523  ;;  %v3679_v7 = vsel %vm437_vm9, %v438_v25, %v436_v29  ;;  %vm471_vm12 = vcmp.eq.f32.partialorder %v3440_v6, inf  ;;  %vm473_vm13 = vcmp.eq.f32.partialorder %v3440_v6, 0.0  ;;  %v474_v36 = vand.u32 2147483648, %v3440_v6 }
 0x137   : > { %2529 = vrcp.f32 %v976_v28  ;;  %v5115_v55 = vmax.f32 %v3671_v37, 1e-15  ;;  %vm507_vm14 = vcmp.eq.f32.partialorder %v3499_v15, inf  ;;  %v1001_v41 = vmul.f32 %v2520_v17, %v953_v13 }
 0x138   : > { %v2526_v12 = vpop.eup %2525  ;;  %v975_v42 = vsub.f32 1.0, %v3666_v24  ;;  %v3689_v30 = vclamps-f32 %v5114_v38, 0.999999  ;;  %v3691_v29 = vsel %vm485_vm11, %v486_v51, %v484_v46  ;;  %v506_v11 = vmul.f32 %v505_v27, %v3499_v15 }
 0x139   : > { %5183 = vst [vmem:[#allocation33_spill] sm:$0xff] %v3691_v29  ;;  %v5116_v43 = vmax.f32 %v3679_v7, 1e-15  ;;  %v472_v20 = vsel %vm471_vm12, %v3440_v6, %v470_v26  ;;  %v5184_v22 = vmax.f32 %v3487_v34, 1e-15  ;;  %v954_v17 = vadd.f32 1.0, %v3614_v14 }
 0x13a   : > { %5182 = vst [vmem:[#allocation32_spill] sm:$0xff] %v3689_v30  ;;  %vm509_vm15 = vcmp.eq.f32.partialorder %v3499_v15, 0.0  ;;  %v5185_v25 = vmax.f32 %v3573_v56, 1e-15  ;;  %v3702_v28 = vpop.eup %2527  ;;  %v3706_v51 = vclamps-f32 %v5115_v55, 0.999999  ;;  %v3713_v14 = vsel %vm473_vm13, %v474_v36, %v472_v20 }
 0x13b   : > { %2531 = vrcp.f32 %v5184_v22  ;;  %5186 = vst [vmem:[#allocation34_spill] sm:$0xff] %v3702_v28  ;;  %v5117_v13 = vmax.f32 %v3691_v29, 1e-15  ;;  %v510_v19 = vand.u32 2147483648, %v3499_v15  ;;  %v983_v34 = vsub.f32 1.0, %v3689_v30 }
 0x13c   : > { %2533 = vrcp.f32 %v5185_v25  ;;  %5187 = vst [vmem:[#allocation35_spill] sm:$0xff] %v3713_v14  ;;  %v508_v56 = vsel %vm507_vm14, %v3499_v15, %v506_v11  ;;  %v979_v36 = vsub.f32 1.0, %v3706_v51  ;;  %v957_v55 = vadd.f32 1.0, %v3474_v10 }
 0x13d   : > { %2535 = vlog2.f32 %v1001_v41  ;;  %v3722_v26 = vpop.eup %2529  ;;  %v3726_v41 = vclamps-f32 %v5116_v43, 0.999999  ;;  %v3735_v11 = vclamps-f32 %v5117_v13, 0.999999  ;;  %v3740_v22 = vsel %vm509_vm15, %v510_v19, %v508_v56 }
 0x13e   : > { %2537 = vrcp.f32 %v975_v42  ;;  %v1002_v42 = vmul.f32 %v2526_v12, %v954_v17  ;;  %5189 = vst [vmem:[#allocation37_spill] sm:$0xff] %v3740_v22  ;;  %v955_v12 = vadd.f32 1.0, %v3516_v61  ;;  %v5190_v20 = vmax.f32 %v3458_v47, 1e-15 }
 0x13f   : > { %5188 = vst [vmem:[#allocation36_spill] sm:$0xff] %v3735_v11  ;;  %v978_v38 = vsub.f32 1.0, %v3726_v41  ;;  %v956_v15 = vadd.f32 1.0, %v3593_v44  ;;  %v5191_v61 = vmax.f32 %v3713_v14, 1e-15 }
 0x140   : > { %v1003_v47 = vmul.f32 %v3607_v40, %v955_v12  ;;  %v5194_v44 = vmax.f32 %v3545_v45, 1e-15  ;;  %v5196_v9 = vmax.f32 %v3740_v22, 1e-15 }
 0x141   : > { %v3730_v6 = vpop.eup %2531  ;;  %v3754_v56 = vclamps-f32 %v5191_v61, 0.999999  ;;  %v1004_v59 = vmul.f32 %v3662_v16, %v956_v15 }
 0x142   : > { %v3742_v25 = vpop.eup %2533  ;;  %v3772_v62 = vclamps-f32 %v5196_v9, 0.999999 }
 0x143   : > { %v2536_v17 = vpop.eup %2535  ;;  %5192 = vst [vmem:[#allocation38_spill] sm:$0xff] %v3754_v56  ;;  %v981_v45 = vsub.f32 1.0, %v3754_v56 }
 0x144   : > { %v2538_v43 = vpop.eup %2537  ;;  %5197 = vst [vmem:[#allocation41_spill] sm:$0xff] %v3772_v62  ;;  %v984_v16 = vsub.f32 1.0, %v3772_v62 }
 0x147   : > { %v3718_v27 = vpop.xlane.xlu2 %657  ;;  %v3720_v46 = vpop.xlane.xlu1 %649 }
 0x148   : > { %2539 = vrsqrt.f32 %v3718_v27  ;;  %vm688_vm0 = vcmp.eq.f32.partialorder %v3720_v46, inf  ;;  %vm736_vm1 = vcmp.eq.f32.partialorder %v3718_v27, inf  ;;  %vm690_vm2 = vcmp.eq.f32.partialorder %v3720_v46, 0.0 }
 0x149   : > { %2541 = vrsqrt.f32 %v3720_v46  ;;  %vm738_vm3 = vcmp.eq.f32.partialorder %v3718_v27, 0.0 }
 0x14a   : > { %2543 = vrcp.f32 %v983_v34  ;;  %v982_v34 = vsub.f32 1.0, %v3735_v11 }
 0x14b   : > { %2545 = vlog2.f32 %v1002_v42 }
 0x14c   : > { %2547 = vrcp.f32 %v5190_v20  ;;  %v1005_v20 = vmul.f32 %v3575_v21, %v957_v55  ;;  %v958_v55 = vadd.f32 1.0, %v3482_v32 }
 0x14d   : > { %2549 = vrcp.f32 %v979_v36 }
 0x14e   : > { %v2540_v19 = vpop.eup %2539  ;;  %v3756_v5 = vpop.xlane.xlu0 %665  ;;  %2551 = vrcp.f32 %v5194_v44 }
 0x14f   : > { %v2542_v42 = vpop.eup %2541  ;;  %v730_v10 = vmul.f32 %v2540_v19, %v3718_v27  ;;  %v3759_v63 = vpop.xlane.xlu1 %673  ;;  %2553 = vrcp.f32 %v978_v38 }
 0x150   : > { %5193 = vst [vmem:[#allocation39_spill] sm:$0xff] %v3759_v63  ;;  %v3761_v13 = vpop.xlane.xlu2 %651  ;;  %v682_v36 = vmul.f32 %v2542_v42, %v3720_v46  ;;  %v3768_v61 = vpop.eup %2543 }
 0x151   : > { %5195 = vst [vmem:[#allocation40_spill] sm:$0xff] %v3768_v61  ;;  %v731_v53 = vmul.f32 %v2540_v19, %v730_v10  ;;  %2555 = vrsqrt.f32 %v3761_v13  ;;  %v3776_v40 = vpop.eup %2545  ;;  %v959_v10 = vadd.f32 1.0, %v3666_v24  ;;  %vm700_vm4 = vcmp.eq.f32.partialorder %v3761_v13, inf }
 0x152   : > { %2557 = vrcp.f32 %v982_v34  ;;  %v683_v38 = vmul.f32 %v2542_v42, %v682_v36  ;;  %v3779_v12 = vpop.eup %2547  ;;  %v960_v34 = vadd.f32 1.0, %v3638_v60  ;;  %vm702_vm5 = vcmp.eq.f32.partialorder %v3761_v13, 0.0 }
 0x153   : > { %v732_v21 = vmul.f32 0.5, %v731_v53  ;;  %2559 = vlog2.f32 %v1003_v47  ;;  %v3782_v44 = vpop.eup %2549  ;;  %v1018_v47 = vmul.f32 0.6931472, %v2536_v17 }
 0x154   : > { %v684_v9 = vmul.f32 0.5, %v683_v38  ;;  %2561 = vlog2.f32 %v1005_v20  ;;  %v3785_v2 = vpop.eup %2551  ;;  %v1006_v38 = vmul.f32 %v3589_v4, %v958_v55  ;;  %v1008_v4 = vmul.f32 %v3722_v26, %v960_v34 }
 0x155   : > { %2563 = vlog2.f32 %v1004_v59  ;;  %v733_v15 = vsub.f32 1.5, %v732_v21  ;;  %v3789_v36 = vpop.eup %2553  ;;  %v961_v59 = vadd.f32 1.0, %v3567_v50 }
 0x156   : > { %2565 = vrcp.f32 %v981_v45  ;;  %v3791_v53 = vpop.xlane.xlu0 %659  ;;  %v685_v32 = vsub.f32 1.5, %v684_v9  ;;  %v5199_v45 = vmax.f32 %v3429_v23, 1e-15  ;;  %v1007_v9 = vmul.f32 %v2538_v43, %v959_v10 }
 0x157   : > { %v2556_v52 = vpop.eup %2555  ;;  %2567 = vrsqrt.f32 %v3791_v53  ;;  %v3794_v20 = vpop.xlane.xlu1 %667  ;;  %v734_v24 = vmul.f32 %v2540_v19, %v733_v15  ;;  %v691_v43 = vand.u32 2147483648, %v3720_v46  ;;  %vm748_vm6 = vcmp.eq.f32.partialorder %v3791_v53, inf }
 0x158   : > { %v3798_v21 = vpop.eup %2557  ;;  %v694_v60 = vmul.f32 %v2556_v52, %v3761_v13  ;;  %v686_v8 = vmul.f32 %v2542_v42, %v685_v32  ;;  %2569 = vrcp.f32 %v5199_v45  ;;  %v739_v42 = vand.u32 2147483648, %v3718_v27 }
 0x159   : > { %5198 = vst [vmem:[#allocation42_spill] sm:$0xff] %v3798_v21  ;;  %v3803_v17 = vpop.eup %2559  ;;  %2571 = vrcp.f32 %v984_v16  ;;  %v735_v19 = vmul.f32 %v734_v24, %v3718_v27  ;;  %v1009_v45 = vmul.f32 %v3646_v18, %v961_v59  ;;  %v1020_v18 = vmul.f32 0.6931472, %v3776_v40 }
 0x15a   : > { %v2562_v55 = vpop.eup %2561  ;;  %v695_v50 = vmul.f32 %v2556_v52, %v694_v60  ;;  %v687_v15 = vmul.f32 %v686_v8, %v3720_v46  ;;  %2573 = vrsqrt.f32 %v3756_v5  ;;  %v1049_v59 = vmul.f32 0.5, %v1018_v47 }
 0x15b   : > { %v2564_v23 = vpop.eup %2563  ;;  %v737_v10 = vsel %vm736_vm1, %v3718_v27, %v735_v19  ;;  %v1026_v60 = vmul.f32 0.6931472, %v2562_v55  ;;  %2575 = vlog2.f32 %v1006_v38  ;;  %v703_v47 = vand.u32 2147483648, %v3761_v13 }
 0x15c   : > { %v3815_v16 = vpop.eup %2565  ;;  %v696_v26 = vmul.f32 0.5, %v695_v50  ;;  %v689_v8 = vsel %vm688_vm0, %v3720_v46, %v687_v15  ;;  %v740_v34 = vsel %vm738_vm3, %v739_v42, %v737_v10  ;;  %2577 = vlog2.f32 %v1007_v9 }
 0x15d   : > { %5200 = vst [vmem:[#allocation43_spill] sm:$0xff] %v3815_v16  ;;  %v3821_v32 = vpop.eup %2567  ;;  %v692_v24 = vsel %vm690_vm2, %v691_v43, %v689_v8  ;;  %v3830_v62 = vmax.f32 %v740_v34, 1e-15  ;;  %2579 = vlog2.f32 %v1008_v4  ;;  %v5202_v8 = vmax.f32 %v3433_v31, 1e-15 }
 0x15e   : > { %v2570_v19 = vpop.eup %2569  ;;  %v3824_v22 = vpop.xlane.xlu2 %669  ;;  %v3828_v33 = vmax.f32 %v692_v24, 1e-15  ;;  %v697_v50 = vsub.f32 1.5, %v696_v26  ;;  %v742_v15 = vmul.f32 %v3821_v32, %v3791_v53  ;;  %v1053_v26 = vmul.f32 0.5, %v1026_v60 }
 0x15f   : > { %v3826_v27 = vpop.xlane.xlu0 %653  ;;  %v3832_v46 = vpop.eup %2571  ;;  %v909_v10 = vmul.f32 %v2570_v19, %v3830_v62  ;;  %v1050_v24 = vmul.f32 0.5, %v1020_v18  ;;  %v1024_v18 = vmul.f32 0.6931472, %v2564_v23  ;;  %vm750_vm9 = vcmp.eq.f32.partialorder %v3791_v53, 0.0 }
 0x160   : > { %5201 = vst [vmem:[#allocation44_spill] sm:$0xff] %v3832_v46  ;;  %v3836_v55 = vpop.xlane.xlu1 %661  ;;  %2581 = vrsqrt.f32 %v3826_v27  ;;  %v905_v38 = vmul.f32 %v3730_v6, %v3828_v33  ;;  %v698_v42 = vmul.f32 %v2556_v52, %v697_v50  ;;  %v3842_v43 = vpop.eup %2573  ;;  %v743_v40 = vmul.f32 %v3821_v32, %v742_v15 }
 0x161   : > { %2583 = vlog2.f32 %v1009_v45  ;;  %v2576_v34 = vpop.eup %2575  ;;  %v5203_v6 = vmax.f32 %v3629_v35, 1e-15  ;;  %v1069_v45 = vmul.f32 %v1053_v26, %v909_v10  ;;  %v778_v31 = vmul.f32 %v3842_v43, %v3756_v5 }
 0x162   : > { %v1065_v9 = vmul.f32 %v1049_v59, %v905_v38  ;;  %2585 = vrcp.f32 %v5202_v8  ;;  %v699_v4 = vmul.f32 %v698_v42, %v3761_v13  ;;  %v2578_v52 = vpop.eup %2577  ;;  %v1022_v15 = vmul.f32 0.6931472, %v3803_v17 }
 0x163   : > { %2587 = vrcp.f32 %v5203_v6  ;;  %v2580_v60 = vpop.eup %2579  ;;  %v744_v59 = vmul.f32 0.5, %v743_v40  ;;  %v1028_v8 = vmul.f32 0.6931472, %v2576_v34  ;;  %v779_v23 = vmul.f32 %v3842_v43, %v778_v31 }
 0x164   : > { %2589 = vtanh.f32 %v1065_v9  ;;  %v701_v19 = vsel %vm700_vm4, %v3761_v13, %v699_v4  ;;  %v1030_v4 = vmul.f32 0.6931472, %v2578_v52  ;;  %v1032_v6 = vmul.f32 0.6931472, %v2580_v60 }
 0x165   : > { %2591 = vrsqrt.f32 %v3836_v55  ;;  %v704_v35 = vsel %vm702_vm5, %v703_v47, %v701_v19  ;;  %v745_v46 = vsub.f32 1.5, %v744_v59  ;;  %v5204_v31 = vmax.f32 %v3603_v58, 1e-15 }
 0x166   : > { %v2582_v50 = vpop.eup %2581  ;;  %2593 = vrsqrt.f32 %v3759_v63  ;;  %v3864_v9 = vpop.xlane.xlu2 %663  ;;  %v3868_v13 = vmax.f32 %v704_v35, 1e-15  ;;  %v3881_v35 = vmul.f32 0.5, %v1022_v15  ;;  %v3894_v61 = vmul.f32 0.5, %v1024_v18 }
 0x167   : > { %v2584_v38 = vpop.eup %2583  ;;  %2595 = vrsqrt.f32 %v3794_v20  ;;  %v706_v42 = vmul.f32 %v2582_v50, %v3826_v27  ;;  %v3889_v29 = vpop.xlane.xlu0 %671  ;;  %v3896_v15 = vmul.f32 0.5, %v1028_v8  ;;  %v780_v59 = vmul.f32 0.5, %v779_v23 }
 0x168   : > { %v3866_v10 = vpop.xlane.xlu1 %655  ;;  %v3870_v26 = vpop.eup %2585  ;;  %2597 = vtanh.f32 %v1069_v45  ;;  %v906_v47 = vmul.f32 %v3742_v25, %v3868_v13  ;;  %v1034_v45 = vmul.f32 0.6931472, %v2584_v38  ;;  %v5206_v38 = vmax.f32 %v3523_v1, 1e-15 }
 0x169   : > { %v3872_v17 = vpop.eup %2587  ;;  %v707_v40 = vmul.f32 %v2582_v50, %v706_v42  ;;  %2599 = vrsqrt.f32 %v3866_v10  ;;  %v3902_v58 = vmul.f32 0.5, %v1030_v4  ;;  %v3911_v18 = vstv %s3859_s21 }
 0x16a   : > { %v3878_v19 = vpop.eup %2589  ;;  %2601 = vrsqrt.f32 %v3864_v9  ;;  %v1066_v60 = vmul.f32 %v1050_v24, %v906_v47  ;;  %v3904_v47 = vmul.f32 0.5, %v1032_v6  ;;  %v3913_v8 = vmul.f32 0.5, %v1034_v45 }
 0x16b   : > { %v3883_v34 = vpop.eup %2591  ;;  %v708_v52 = vmul.f32 0.5, %v707_v40  ;;  %2603 = vrcp.f32 %v5204_v31  ;;  %v3892_v25 = vmax.f32 %v3878_v19, 1e-15  ;;  %v746_v23 = vmul.f32 %v3821_v32, %v745_v46 }
 0x16c   : > { %v3887_v42 = vpop.eup %2593  ;;  %2605 = vrcp.f32 %v5206_v38  ;;  %v754_v30 = vmul.f32 %v3883_v34, %v3836_v55  ;;  %vm712_vm7 = vcmp.eq.f32.partialorder %v3826_v27, inf  ;;  %v781_v46 = vsub.f32 1.5, %v780_v59 }
 0x16d   : > { %5205 = vst [vmem:[#allocation45_spill] sm:$0xff] %v3887_v42  ;;  %v3900_v24 = vpop.eup %2595  ;;  %v709_v40 = vsub.f32 1.5, %v708_v52  ;;  %2607 = vtanh.f32 %v1066_v60  ;;  %v826_v52 = vmul.f32 %v3887_v42, %v3759_v63  ;;  %v715_v57 = vand.u32 2147483648, %v3826_v27 }
 0x16e   : > { %v3906_v31 = vpop.eup %2597  ;;  %2609 = vrsqrt.f32 %v3824_v22  ;;  %vm714_vm8 = vcmp.eq.f32.partialorder %v3826_v27, 0.0  ;;  %v3977_v56 = vpop.xlane.xlu2 %675  ;;  %vm1225_vm10 = vcmp.le.f32.partialorder %v3828_v33, 1e-15  ;;  %vm724_vm11 = vcmp.eq.f32.partialorder %v3866_v10, inf }
 0x16f   : > { %v2600_v1 = vpop.eup %2599  ;;  %v710_v38 = vmul.f32 %v2582_v50, %v709_v40  ;;  %2611 = vrcp.f32 %v3892_v25  ;;  %v790_v50 = vmul.f32 %v3900_v24, %v3794_v20  ;;  %v755_v40 = vmul.f32 %v3883_v34, %v754_v30  ;;  %v3956_v48 = vpop.xlane.xlu0 %677 }
 0x170   : > { %v3918_v6 = vpop.eup %2601  ;;  %v718_v21 = vmul.f32 %v2600_v1, %v3866_v10  ;;  %v3936_v3 = vmax.f32 %v3906_v31, 1e-15  ;;  %v827_v54 = vmul.f32 %v3887_v42, %v826_v52  ;;  %2613 = vrcp.f32 %v3828_v33 }
 0x171   : > { %v3925_v45 = vpop.eup %2603  ;;  %v711_v32 = vmul.f32 %v710_v38, %v3826_v27  ;;  %v766_v0 = vmul.f32 %v3918_v6, %v3864_v9  ;;  %v747_v38 = vmul.f32 %v746_v23, %v3791_v53  ;;  %v791_v14 = vmul.f32 %v3900_v24, %v790_v50 }
 0x172   : > { %v3931_v60 = vpop.eup %2605  ;;  %v719_v4 = vmul.f32 %v2600_v1, %v718_v21  ;;  %2615 = vrcp.f32 %v3830_v62  ;;  %v756_v23 = vmul.f32 0.5, %v755_v40  ;;  %vm726_vm12 = vcmp.eq.f32.partialorder %v3866_v10, 0.0 }
 0x173   : > { %v713_v49 = vsel %vm712_vm7, %v3826_v27, %v711_v32  ;;  %v3943_v59 = vpop.eup %2607  ;;  %2617 = vrcp.f32 %v3936_v3  ;;  %v749_v52 = vsel %vm748_vm6, %v3791_v53, %v747_v38  ;;  %vm760_vm13 = vcmp.eq.f32.partialorder %v3836_v55, inf }
 0x174   : > { %v720_v30 = vmul.f32 0.5, %v719_v4  ;;  %v716_v21 = vsel %vm714_vm8, %v715_v57, %v713_v49  ;;  %v3947_v11 = vpop.eup %2609  ;;  %v3951_v16 = vmax.f32 %v3943_v59, 1e-15  ;;  %v782_v49 = vmul.f32 %v3842_v43, %v781_v46 }
 0x175   : > { %v3953_v32 = vmax.f32 %v716_v21, 1e-15  ;;  %v2612_v27 = vpop.eup %2611  ;;  %v767_v57 = vmul.f32 %v3918_v6, %v766_v0  ;;  %v802_v50 = vmul.f32 %v3947_v11, %v3824_v22  ;;  %v751_v21 = vand.u32 2147483648, %v3791_v53 }
 0x176   : > { %2619 = vrcp.f32 %v3951_v16  ;;  %v721_v4 = vsub.f32 1.5, %v720_v30  ;;  %v3972_v43 = vmul.f32 0.5, %v827_v54  ;;  %v3974_v0 = vmul.f32 0.5, %v791_v14  ;;  %v2614_v30 = vpop.eup %2613 }
 0x177   : > { %2621 = vrsqrt.f32 %v3889_v29  ;;  %v907_v40 = vmul.f32 %v3779_v12, %v3953_v32  ;;  %v1177_v46 = vmul.f32 0.996, %v2612_v27  ;;  %v752_v63 = vsel %vm750_vm9, %v751_v21, %v749_v52 }
 0x178   : > { %5207 = vst [vmem:[#allocation46_spill] sm:$0xff] %v3972_v43  ;;  %2623 = vrcp.f32 %v3868_v13  ;;  %v757_v28 = vsub.f32 1.5, %v756_v23  ;;  %v763_v12 = vand.u32 2147483648, %v3836_v55  ;;  %v2616_v42 = vpop.eup %2615  ;;  %v768_v39 = vmul.f32 0.5, %v767_v57 }
 0x179   : > { %v1067_v38 = vmul.f32 %v3881_v35, %v907_v40  ;;  %v1129_v54 = vmul.f32 %v2614_v30, %v3878_v19  ;;  %v722_v14 = vmul.f32 %v2600_v1, %v721_v4  ;;  %v3986_v27 = vmul.f32 %v782_v49, %v3756_v5  ;;  %v2618_v43 = vpop.eup %2617  ;;  %v1311_v30 = vpop.xlane.xlu0 %1310 }
 0x17a   : > { %v3989_v37 = vmul.f32 %v3947_v11, %v802_v50  ;;  %v3995_v19 = vmax.f32 %v752_v63, 1e-15  ;;  %vm1145_vm14 = vcmp.gt.f32.partialorder %v3892_v25, 0.996  ;;  %v727_v57 = vand.u32 2147483648, %v3866_v10  ;;  %v4005_v50 = vpop.xlane.xlu1 %679 }
 0x17b   : > { %2625 = vtanh.f32 %v1067_v38  ;;  %v1193_v35 = vmul.f32 %v1177_v46, %v1129_v54  ;;  %v723_v23 = vmul.f32 %v722_v14, %v3866_v10  ;;  %v758_v4 = vmul.f32 %v3883_v34, %v757_v28  ;;  %5208 = vst [vmem:[#allocation47_spill] sm:$0xff] %v4005_v50 }
 0x17c   : > { %v2620_v53 = vpop.eup %2619  ;;  %2627 = vrsqrt.f32 %v3977_v56  ;;  %vm762_vm15 = vcmp.eq.f32.partialorder %v3836_v55, 0.0  ;;  %v1257_v63 = vmin.f32 %v3892_v25, 0.996  ;;  %v769_v21 = vsub.f32 1.5, %v768_v39 }
 0x17d   : > { %v3998_v1 = vpop.eup %2621  ;;  %v1178_v49 = vmul.f32 0.996, %v2620_v53  ;;  %2629 = vrsqrt.f32 %v3956_v48  ;;  %v725_v40 = vsel %vm724_vm11, %v3866_v10, %v723_v23  ;;  %v1181_v34 = vmul.f32 0.996, %v2618_v43 }
 0x17e   : > { %v2624_v52 = vpop.eup %2623  ;;  %v728_v28 = vsel %vm726_vm12, %v727_v57, %v725_v40  ;;  %v910_v38 = vmul.f32 %v3870_v26, %v3995_v19  ;;  %vm772_vm0 = vcmp.eq.f32.partialorder %v3864_v9, inf  ;;  %v1209_v14 = vsel %vm1145_vm14, %v1193_v35, %v1129_v54 }
 0x17f   : > { %v1130_v46 = vmul.f32 %v2624_v52, %v3943_v59  ;;  %vm1226_vm1 = vcmp.le.f32.partialorder %v3868_v13, 1e-15  ;;  %v4020_v53 = vmax.f32 %v728_v28, 1e-15  ;;  %v1133_v39 = vmul.f32 %v2616_v42, %v3906_v31 }
 0x180   : > { %v814_v10 = vmul.f32 %v3998_v1, %v3889_v29  ;;  %2631 = vrsqrt.f32 %v4005_v50  ;;  %vm1229_vm2 = vcmp.le.f32.partialorder %v3830_v62, 1e-15  ;;  %v759_v26 = vmul.f32 %v758_v4, %v3836_v55 }
 0x181   : > { %v2626_v59 = vpop.eup %2625  ;;  %v1194_v43 = vmul.f32 %v1178_v49, %v1130_v46  ;;  %v4030_v25 = vmul.f32 %v1257_v63, %v1257_v63  ;;  %v908_v42 = vmul.f32 %v3785_v2, %v4020_v53  ;;  %v770_v31 = vmul.f32 %v3918_v6, %v769_v21  ;;  %v1309_v6 = vpop.xlane.xlu2 %1308 }
 0x182   : > { %v4028_v23 = vpop.eup %2627  ;;  %v4032_v54 = vmax.f32 %v2626_v59, 1e-15  ;;  %vm774_vm3 = vcmp.eq.f32.partialorder %v3864_v9, 0.0  ;;  %v4040_v35 = vsel %vm1225_vm10, 0.0, %v1209_v14  ;;  %2633 = vrcp.f32 %v3953_v32 }
 0x183   : > { %v1197_v49 = vmul.f32 %v1181_v34, %v1133_v39  ;;  %v1070_v57 = vmul.f32 %v3896_v15, %v910_v38  ;;  %vm784_vm4 = vcmp.eq.f32.partialorder %v3756_v5, inf  ;;  %v4045_v4 = vpop.eup %2629  ;;  %vm1146_vm5 = vcmp.gt.f32.partialorder %v3951_v16, 0.996 }
 0x184   : > { %2635 = vrcp.f32 %v4032_v54  ;;  %v1068_v2 = vmul.f32 %v3894_v61, %v908_v42  ;;  %vm1149_vm6 = vcmp.gt.f32.partialorder %v3936_v3, 0.996  ;;  %v838_v33 = vmul.f32 %v4028_v23, %v3977_v56  ;;  %v1317_v42 = vpop.xlane.xlu0 %1316 }
 0x185   : > { %v1210_v52 = vsel %vm1146_vm5, %v1194_v43, %v1130_v46  ;;  %v1261_v63 = vmin.f32 %v3936_v3, 0.996  ;;  %v761_v15 = vsel %vm760_vm13, %v3836_v55, %v759_v26  ;;  %v1340_v40 = vmul.f32 %v1309_v6, %v4040_v35 }
 0x186   : > { %2637 = vtanh.f32 %v1068_v2  ;;  %v764_v61 = vsel %vm762_vm15, %v763_v12, %v761_v15  ;;  %v771_v21 = vmul.f32 %v770_v31, %v3864_v9  ;;  %vm786_vm7 = vcmp.eq.f32.partialorder %v3756_v5, 0.0  ;;  %v4064_v28 = vpop.eup %2631 }
 0x187   : > { %5209 = vst [vmem:[#allocation48_spill] sm:$0xff] %v4064_v28  ;;  %v815_v3 = vmul.f32 %v3998_v1, %v814_v10  ;;  %v1213_v46 = vsel %vm1149_vm6, %v1197_v49, %v1133_v39  ;;  %2639 = vtanh.f32 %v1070_v57  ;;  %v4067_v34 = vmax.f32 %v764_v61, 1e-15 }
 0x188   : > { %v850_v38 = vmul.f32 %v4045_v4, %v3956_v48  ;;  %v1421_v14 = vmul.f32 %v3911_v18, %v4030_v25  ;;  %v4075_v55 = vsel %vm1226_vm1, 0.0, %v1210_v52  ;;  %v773_v12 = vsel %vm772_vm0, %v3864_v9, %v771_v21  ;;  %v2634_v43 = vpop.eup %2633 }
 0x189   : > { %v839_v39 = vmul.f32 %v4028_v23, %v838_v33  ;;  %v1258_v10 = vmin.f32 %v3951_v16, 0.996  ;;  %v4082_v26 = vmul.f32 %v1261_v63, %v1261_v63  ;;  %v775_v31 = vand.u32 2147483648, %v3864_v9 }
 0x18a   : > { %v2636_v49 = vpop.eup %2635  ;;  %v862_v13 = vmul.f32 %v4064_v28, %v4005_v50  ;;  %v1356_v57 = vmul.f32 2.0, %v1340_v40  ;;  %v4089_v2 = vsel %vm1229_vm2, 0.0, %v1213_v46  ;;  %v911_v6 = vmul.f32 %v3872_v17, %v4067_v34 }
 0x18b   : > { %v1341_v33 = vmul.f32 %v1311_v30, %v4075_v55  ;;  %v1131_v16 = vmul.f32 %v2634_v43, %v2626_v59  ;;  %v1179_v52 = vmul.f32 0.996, %v2636_v49  ;;  %v776_v63 = vsel %vm774_vm3, %v775_v31, %v773_v12 }
 0x18c   : > { %v2638_v15 = vpop.eup %2637  ;;  %v851_v61 = vmul.f32 %v4045_v4, %v850_v38  ;;  %v1344_v21 = vmul.f32 %v1317_v42, %v4089_v2  ;;  %2641 = vrcp.f32 %v3995_v19  ;;  %v785_v62 = vsel %vm784_vm4, %v3756_v5, %v3986_v27 }
 0x18d   : > { %v2640_v17 = vpop.eup %2639  ;;  %v1195_v40 = vmul.f32 %v1179_v52, %v1131_v16  ;;  %v4103_v30 = vmax.f32 %v2638_v15, 1e-15  ;;  %v1071_v59 = vmul.f32 %v3902_v58, %v911_v6  ;;  %v4106_v9 = vmax.f32 %v776_v63, 1e-15 }
 0x18e   : > { %v4108_v46 = vadd.f32 1.0, %v1356_v57  ;;  %vm1147_vm8 = vcmp.gt.f32.partialorder %v4032_v54, 0.996  ;;  %2643 = vrcp.f32 %v4020_v53  ;;  %v4112_v38 = vmax.f32 %v2640_v17, 1e-15 }
 0x18f   : > { %v1357_v12 = vmul.f32 2.0, %v1341_v33  ;;  %v1211_v43 = vsel %vm1147_vm8, %v1195_v40, %v1131_v16  ;;  %2645 = vrcp.f32 %v4103_v30  ;;  %v5210_v27 = vand.u32 2147483648, %v3756_v5 }
 0x190   : > { %v863_v58 = vmul.f32 %v4064_v28, %v862_v13  ;;  %v4120_v31 = vmul.f32 %v1258_v10, %v1258_v10  ;;  %vm1227_vm9 = vcmp.le.f32.partialorder %v3953_v32, 1e-15  ;;  %2647 = vrcp.f32 %v4112_v38 }
 0x191   : > { %v788_v42 = vsel %vm786_vm7, %v5210_v27, %v785_v62  ;;  %v4124_v49 = vsel %vm1227_vm9, 0.0, %v1211_v43  ;;  %v1360_v57 = vmul.f32 2.0, %v1344_v21  ;;  %2649 = vtanh.f32 %v1071_v59  ;;  %v1313_v21 = vpop.xlane.xlu1 %1312 }
 0x192   : > { %5211 = vst [vmem:[#allocation49_spill] sm:$0xff] %v4120_v31  ;;  %v912_v6 = vmul.f32 %v3925_v45, %v4106_v9  ;;  %v2642_v33 = vpop.eup %2641  ;;  %v4129_v16 = vmul.f32 0.5, %v3989_v37  ;;  %v4131_v5 = vmul.f32 0.5, %v815_v3  ;;  %v1425_v10 = vmul.f32 %v3911_v18, %v4082_v26 }
 0x193   : > { %v4135_v13 = vmax.f32 %v788_v42, 1e-15  ;;  %v4137_v32 = vmul.f32 0.5, %v839_v39  ;;  %v1437_v52 = vadd.f32 %v1421_v14, %v4108_v46  ;;  %v4140_v63 = vadd.f32 1.0, %v1357_v12 }
 0x194   : > { %v1072_v45 = vmul.f32 %v3904_v47, %v912_v6  ;;  %v2644_v62 = vpop.eup %2643  ;;  %v4143_v40 = vmul.f32 0.5, %v851_v61  ;;  %v1422_v37 = vmul.f32 %v3911_v18, %v4120_v31  ;;  %v1342_v3 = vmul.f32 %v1313_v21, %v4124_v49 }
 0x195   : > { %v913_v59 = vmul.f32 %v3931_v60, %v4135_v13  ;;  %v2646_v39 = vpop.eup %2645  ;;  %v4150_v43 = vmul.f32 0.5, %v863_v58  ;;  %v1259_v14 = vmin.f32 %v4032_v54, 0.996  ;;  %v4153_v12 = vadd.f32 1.0, %v1360_v57 }
 0x196   : > { %2651 = vtanh.f32 %v1072_v45  ;;  %v2648_v47 = vpop.eup %2647  ;;  %v1132_v27 = vmul.f32 %v2644_v62, %v2638_v15  ;;  %v1180_v61 = vmul.f32 0.996, %v2646_v39  ;;  %vm1230_vm10 = vcmp.le.f32.partialorder %v3995_v19, 1e-15 }
 0x197   : > { %v1073_v42 = vmul.f32 %v3913_v8, %v913_v59  ;;  %v2650_v6 = vpop.eup %2649  ;;  %v1453_v21 = vmax.f32 %v1437_v52, 1e-15  ;;  %v1438_v31 = vadd.f32 %v1422_v37, %v4140_v63  ;;  %v1134_v60 = vmul.f32 %v2642_v33, %v2640_v17 }
 0x198   : > { %v1182_v28 = vmul.f32 0.996, %v2648_v47  ;;  %v1358_v58 = vmul.f32 2.0, %v1342_v3  ;;  %v1196_v50 = vmul.f32 %v1180_v61, %v1132_v27  ;;  %2653 = vrcp.f32 %v4067_v34 }
 0x199   : > { %v4159_v54 = vmax.f32 %v2650_v6, 1e-15  ;;  %v4161_v57 = vmul.f32 %v1259_v14, %v1259_v14  ;;  %v1441_v15 = vadd.f32 %v1425_v10, %v4153_v12  ;;  %2655 = vtanh.f32 %v1073_v42  ;;  %v1319_v14 = vpop.xlane.xlu1 %1318 }
 0x19a   : > { %v1198_v45 = vmul.f32 %v1182_v28, %v1134_v60  ;;  %vm1148_vm11 = vcmp.gt.f32.partialorder %v4103_v30, 0.996  ;;  %v1260_v8 = vmin.f32 %v4103_v30, 0.996  ;;  %vm1150_vm12 = vcmp.gt.f32.partialorder %v4112_v38, 0.996  ;;  %v1315_v28 = vpop.xlane.xlu2 %1314 }
 0x19b   : > { %2657 = vrcp.f32 %v4159_v54  ;;  %v1212_v33 = vsel %vm1148_vm11, %v1196_v50, %v1132_v27  ;;  %v1262_v62 = vmin.f32 %v4112_v38, 0.996  ;;  %v793_v37 = vsub.f32 1.5, %v3974_v0 }
 0x19c   : > { %v2652_v17 = vpop.eup %2651  ;;  %v1214_v52 = vsel %vm1150_vm12, %v1198_v45, %v1134_v60  ;;  %v1454_v3 = vmax.f32 %v1438_v31, 1e-15  ;;  %v4170_v59 = vadd.f32 1.0, %v1358_v58  ;;  %v1423_v39 = vmul.f32 %v3911_v18, %v4161_v57 }
 0x19d   : > { %v4174_v10 = vsel %vm1230_vm10, 0.0, %v1214_v52  ;;  %v4176_v30 = vmax.f32 %v2652_v17, 1e-15  ;;  %vm1228_vm13 = vcmp.le.f32.partialorder %v4020_v53, 1e-15  ;;  %2659 = vrcp.f32 %v4106_v9 }
 0x19e   : > { %v1457_v50 = vmax.f32 %v1441_v15, 1e-15  ;;  %v2654_v0 = vpop.eup %2653  ;;  %v4182_v38 = vsel %vm1228_vm13, 0.0, %v1212_v33  ;;  %v4184_v31 = vmul.f32 %v1260_v8, %v1260_v8  ;;  %v1345_v19 = vmul.f32 %v1319_v14, %v4174_v10 }
 0x19f   : > { %5212 = vst [vmem:[#allocation50_spill] sm:$0xff] %v4182_v38  ;;  %2661 = vrcp.f32 %v4176_v30  ;;  %v4188_v47 = vpop.eup %2655  ;;  %v1389_v27 = vadd.f32 %v3911_v18, %v4108_v46  ;;  %v4192_v53 = vmul.f32 %v1262_v62, %v1262_v62  ;;  %v794_v61 = vmul.f32 %v3900_v24, %v793_v37 }
 0x1a0   : > { %5213 = vst [vmem:[#allocation51_spill] sm:$0xff] %v4184_v31  ;;  %2663 = vrcp.f32 %v1453_v21  ;;  %v1439_v60 = vadd.f32 %v1423_v39, %v4170_v59  ;;  %vm1231_vm14 = vcmp.le.f32.partialorder %v4067_v34, 1e-15  ;;  %v4198_v58 = vmax.f32 %v4188_v47, 1e-15 }
 0x1a1   : > { %v2658_v42 = vpop.eup %2657  ;;  %2665 = vrcp.f32 %v1454_v3  ;;  %v1343_v15 = vmul.f32 %v1315_v28, %v4182_v38  ;;  %v1135_v45 = vmul.f32 %v2654_v0, %v2650_v6  ;;  %v1424_v46 = vmul.f32 %v3911_v18, %v4184_v31 }
 0x1a2   : > { %2667 = vrcp.f32 %v1457_v50  ;;  %v1183_v8 = vmul.f32 0.996, %v2658_v42  ;;  %v1361_v21 = vmul.f32 2.0, %v1345_v19  ;;  %v1263_v24 = vmin.f32 %v4159_v54, 0.996  ;;  %v1321_v31 = vpop.xlane.xlu2 %1320 }
 0x1a3   : > { %vm1232_vm15 = vcmp.le.f32.partialorder %v4106_v9, 1e-15  ;;  %v2660_v33 = vpop.eup %2659  ;;  %v1426_v52 = vmul.f32 %v3911_v18, %v4192_v53  ;;  %2669 = vrcp.f32 %v4135_v13  ;;  %v795_v37 = vmul.f32 %v794_v61, %v3794_v20 }
 0x1a4   : > { %v1199_v62 = vmul.f32 %v1183_v8, %v1135_v45  ;;  %v1455_v6 = vmax.f32 %v1439_v60, 1e-15  ;;  %vm1151_vm0 = vcmp.gt.f32.partialorder %v4159_v54, 0.996  ;;  %2671 = vrcp.f32 %v4198_v58 }
 0x1a5   : > { %v2662_v3 = vpop.eup %2661  ;;  %v962_v28 = vadd.f32 1.0, %v3726_v41  ;;  %v1359_v50 = vmul.f32 2.0, %v1343_v15  ;;  %v1136_v0 = vmul.f32 %v2660_v33, %v2652_v17  ;;  %v4216_v8 = vadd.f32 1.0, %v1361_v21 }
 0x1a6   : > { %v4212_v39 = vpop.eup %2663  ;;  %v1215_v14 = vsel %vm1151_vm0, %v1199_v62, %v1135_v45  ;;  %v1184_v19 = vmul.f32 0.996, %v2662_v3  ;;  %v4222_v54 = vmul.f32 %v1263_v24, %v1263_v24  ;;  %vm796_vm1 = vcmp.eq.f32.partialorder %v3794_v20, inf }
 0x1a7   : > { %v4214_v42 = vpop.eup %2665  ;;  %v4220_v61 = vsel %vm1231_vm14, 0.0, %v1215_v14  ;;  %v797_v17 = vsel %vm796_vm1, %v3794_v20, %v795_v37  ;;  %vm798_vm2 = vcmp.eq.f32.partialorder %v3794_v20, 0.0  ;;  %vm1152_vm3 = vcmp.gt.f32.partialorder %v4176_v30, 0.996 }
 0x1a8   : > { %v4225_v41 = vpop.eup %2667  ;;  %v1346_v60 = vmul.f32 %v1321_v31, %v4220_v61  ;;  %v1200_v15 = vmul.f32 %v1184_v19, %v1136_v0  ;;  %v1264_v45 = vmin.f32 %v4176_v30, 0.996  ;;  %v799_v34 = vand.u32 2147483648, %v3794_v20  ;;  %v1323_v30 = vpop.xlane.xlu0 %1322 }
 0x1a9   : > { %v1010_v21 = vmul.f32 %v3789_v36, %v962_v28  ;;  %v2670_v24 = vpop.eup %2669  ;;  %v4234_v33 = vadd.f32 1.0, %v1359_v50  ;;  %v5214_v3 = vmax.f32 %v3679_v7, 1e-15  ;;  %v805_v31 = vsub.f32 1.5, %v4129_v16 }
 0x1aa   : > { %v1216_v62 = vsel %vm1152_vm3, %v1200_v15, %v1136_v0  ;;  %v2672_v37 = vpop.eup %2671  ;;  %v1442_v14 = vadd.f32 %v1426_v52, %v4216_v8  ;;  %v800_v20 = vsel %vm798_vm2, %v799_v34, %v797_v17  ;;  %v1362_v36 = vmul.f32 2.0, %v1346_v60 }
 0x1ab   : > { %2673 = vrcp.f32 %v5214_v3  ;;  %v4242_v19 = vsel %vm1232_vm15, 0.0, %v1216_v62  ;;  %v1185_v50 = vmul.f32 0.996, %v2672_v37  ;;  %v806_v0 = vmul.f32 %v3947_v11, %v805_v31  ;;  %v5217_v37 = vld [vmem:[#allocation46_spill] sm:$0xff] }
 0x1ac   : > { %2675 = vlog2.f32 %v1010_v21  ;;  %v1347_v28 = vmul.f32 %v1323_v30, %v4242_v19  ;;  %v1485_v7 = vmul.f32 %v4212_v39, %v1389_v27  ;;  %v1137_v16 = vmul.f32 %v2670_v24, %v4188_v47 }
 0x1ad   : > { %2677 = vrcp.f32 %v1455_v6  ;;  %v963_v52 = vadd.f32 1.0, %v3706_v51  ;;  %v1440_v9 = vadd.f32 %v1424_v46, %v4234_v33  ;;  %v1427_v15 = vmul.f32 %v3911_v18, %v4222_v54  ;;  %v5215_v51 = vld [vmem:[#allocation31_spill] sm:$0xff] }
 0x1ae   : > { %v4252_v17 = vmul.f32 %v1264_v45, %v1264_v45  ;;  %v1363_v60 = vmul.f32 2.0, %v1347_v28  ;;  %v1201_v34 = vmul.f32 %v1185_v50, %v1137_v16  ;;  %v4254_v21 = vmax.f32 %v800_v20, 1e-15 }
 0x1af   : > { %v807_v11 = vmul.f32 %v806_v0, %v3824_v22  ;;  %v1011_v27 = vmul.f32 %v3782_v44, %v963_v52  ;;  %v1458_v62 = vmax.f32 %v1442_v14, 1e-15  ;;  %v4258_v47 = vadd.f32 1.0, %v1362_v36 }
 0x1b0   : > { %vm808_vm4 = vcmp.eq.f32.partialorder %v3824_v22, inf  ;;  %v5216_v46 = vmax.f32 %v5215_v51, 1e-15  ;;  %v4263_v45 = vadd.f32 1.0, %v1363_v60  ;;  %v811_v31 = vand.u32 2147483648, %v3824_v22  ;;  %v1325_v60 = vpop.xlane.xlu1 %1324 }
 0x1b1   : > { %v2674_v6 = vpop.eup %2673  ;;  %v809_v3 = vsel %vm808_vm4, %v3824_v22, %v807_v11  ;;  %v1428_v44 = vmul.f32 %v3911_v18, %v4252_v17  ;;  %vm1153_vm5 = vcmp.gt.f32.partialorder %v4198_v58, 0.996  ;;  %vm810_vm6 = vcmp.eq.f32.partialorder %v3824_v22, 0.0 }
 0x1b2   : > { %2679 = vrcp.f32 %v5216_v46  ;;  %v2676_v24 = vpop.eup %2675  ;;  %v829_v14 = vsub.f32 1.5, %v5217_v37  ;;  %v1217_v20 = vsel %vm1153_vm5, %v1201_v34, %v1137_v16  ;;  %v914_v36 = vmul.f32 %v2674_v6, %v4254_v21  ;;  %v5219_v46 = vld [vmem:[#allocation45_spill] sm:$0xff] }
 0x1b3   : > { %2681 = vlog2.f32 %v1011_v27  ;;  %v4272_v30 = vpop.eup %2677  ;;  %v1036_v28 = vmul.f32 0.6931472, %v2676_v24  ;;  %v812_v50 = vsel %vm810_vm6, %v811_v31, %v809_v3  ;;  %v1390_v0 = vadd.f32 %v3911_v18, %v4140_v63  ;;  %v5218_v63 = vld [vmem:[#allocation29_spill] sm:$0xff] }
 0x1b4   : > { %2683 = vrcp.f32 %v1458_v62  ;;  %v1443_v52 = vadd.f32 %v1427_v15, %v4258_v47  ;;  %v4278_v11 = vmax.f32 %v812_v50, 1e-15  ;;  %v1393_v22 = vadd.f32 %v3911_v18, %v4153_v12 }
 0x1b5   : > { %v1444_v27 = vadd.f32 %v1428_v44, %v4263_v45  ;;  %vm1233_vm7 = vcmp.le.f32.partialorder %v4135_v13, 1e-15  ;;  %v1058_v16 = vmul.f32 0.5, %v1036_v28  ;;  %v1501_v6 = vmul.f32 %v1485_v7, %v4040_v35 }
 0x1b6   : > { %v4285_v51 = vsel %vm1233_vm7, 0.0, %v1217_v20  ;;  %v964_v62 = vadd.f32 1.0, %v5218_v63  ;;  %v830_v15 = vmul.f32 %v5219_v46, %v829_v14  ;;  %v1391_v3 = vadd.f32 %v3911_v18, %v4170_v59  ;;  %v5220_v63 = vld [vmem:[#allocation34_spill] sm:$0xff]  ;;  %v5223_v46 = vld [vmem:[#allocation12_spill] sm:$0xff] }
 0x1b7   : > { %v1456_v31 = vmax.f32 %v1440_v9, 1e-15  ;;  %v1348_v12 = vmul.f32 %v1325_v60, %v4285_v51  ;;  %v1074_v44 = vmul.f32 %v1058_v16, %v914_v36  ;;  %v1459_v37 = vmax.f32 %v1443_v52, 1e-15  ;;  %v5221_v36 = vld [vmem:[#allocation39_spill] sm:$0xff] }
 0x1b8   : > { %v2680_v34 = vpop.eup %2679  ;;  %v1265_v13 = vmin.f32 %v4198_v58, 0.996  ;;  %v1486_v7 = vmul.f32 %v4214_v42, %v1390_v0  ;;  %v1489_v20 = vmul.f32 %v4225_v41, %v1393_v22  ;;  %v1460_v50 = vmax.f32 %v1444_v27, 1e-15 }
 0x1b9   : > { %v2682_v24 = vpop.eup %2681  ;;  %v915_v28 = vmul.f32 %v2680_v34, %v4278_v11  ;;  %2685 = vtanh.f32 %v1074_v44  ;;  %v1487_v59 = vmul.f32 %v4272_v30, %v1391_v3  ;;  %v1012_v60 = vmul.f32 %v5220_v63, %v964_v62  ;;  %v5222_v34 = vld [vmem:[#allocation38_spill] sm:$0xff]  ;;  %v5224_v62 = vld [vmem:[#allocation43_spill] sm:$0xff]  ;;  %v5228_v63 = vld [vmem:[#allocation16_spill] sm:$0xff] }
 0x1ba   : > { %v1038_v35 = vmul.f32 0.6931472, %v2682_v24  ;;  %v4296_v14 = vpop.eup %2683  ;;  %v831_v52 = vmul.f32 %v830_v15, %v5221_v36  ;;  %2687 = vrcp.f32 %v1456_v31  ;;  %v1394_v58 = vadd.f32 %v3911_v18, %v4216_v8 }
 0x1bb   : > { %v1364_v16 = vmul.f32 2.0, %v1348_v12  ;;  %v965_v0 = vadd.f32 1.0, %v5222_v34  ;;  %v4305_v22 = vmul.f32 %v1501_v6, %v5223_v46  ;;  %2689 = vrcp.f32 %v1459_v37  ;;  %v5230_v34 = vld [vmem:[#allocation21_spill] sm:$0xff] }
 0x1bc   : > { %v1059_v9 = vmul.f32 0.5, %v1038_v35  ;;  %v4307_v27 = vmul.f32 %v1265_v13, %v1265_v13  ;;  %v1490_v3 = vmul.f32 %v4296_v14, %v1394_v58  ;;  %2691 = vrcp.f32 %v1460_v50 }
 0x1bd   : > { %vm832_vm8 = vcmp.eq.f32.partialorder %v5221_v36, inf  ;;  %v1013_v15 = vmul.f32 %v5224_v62, %v965_v0  ;;  %v1502_v31 = vmul.f32 %v1486_v7, %v4075_v55  ;;  %v1505_v8 = vmul.f32 %v1489_v20, %v4089_v2  ;;  %v5225_v55 = vld [vmem:[#allocation35_spill] sm:$0xff]  ;;  %v5231_v62 = vld [vmem:[#allocation28_spill] sm:$0xff] }
 0x1be   : > { %v1075_v24 = vmul.f32 %v1059_v9, %v915_v28  ;;  %2693 = vlog2.f32 %v1012_v60  ;;  %v833_v12 = vsel %vm832_vm8, %v5221_v36, %v831_v52  ;;  %v1503_v44 = vmul.f32 %v1487_v59, %v4124_v49  ;;  %v5227_v49 = vld [vmem:[#allocation36_spill] sm:$0xff]  ;;  %v5229_v52 = vld [vmem:[#allocation13_spill] sm:$0xff] }
 0x1bf   : > { %v2686_v6 = vpop.eup %2685  ;;  %v1380_v37 = vadd.f32 1.0, %v1364_v16  ;;  %v835_v13 = vand.u32 2147483648, %v5221_v36  ;;  %v1429_v28 = vmul.f32 %v3911_v18, %v4307_v27  ;;  %vm834_vm9 = vcmp.eq.f32.partialorder %v5221_v36, 0.0 }
 0x1c0   : > { %2695 = vtanh.f32 %v1075_v24  ;;  %v4319_v35 = vmax.f32 %v2686_v6, 1e-15  ;;  %v5226_v7 = vmax.f32 %v5225_v55, 1e-15  ;;  %v4324_v2 = vpop.eup %2687  ;;  %v1506_v20 = vmul.f32 %v1490_v3, %v4174_v10 }
 0x1c1   : > { %v836_v50 = vsel %vm834_vm9, %v835_v13, %v833_v12  ;;  %v966_v59 = vadd.f32 1.0, %v5227_v49  ;;  %v4328_v9 = vpop.eup %2689  ;;  %v4331_v60 = vmul.f32 %v1502_v31, %v5228_v63  ;;  %v4334_v58 = vmul.f32 %v1505_v8, %v5229_v52  ;;  %v5233_v12 = vld [vmem:[#allocation17_spill] sm:$0xff] }
 0x1c2   : > { %2697 = vrcp.f32 %v5226_v7  ;;  %v817_v36 = vsub.f32 1.5, %v4131_v5  ;;  %v4338_v16 = vpop.eup %2691  ;;  %v4341_v10 = vmul.f32 %v1503_v44, %v5230_v34  ;;  %v1395_v0 = vadd.f32 %v3911_v18, %v4258_v47  ;;  %v5234_v47 = vld [vmem:[#allocation42_spill] sm:$0xff] }
 0x1c3   : > { %2699 = vlog2.f32 %v1013_v15  ;;  %v1445_v46 = vadd.f32 %v1429_v28, %v1380_v37  ;;  %v1396_v3 = vadd.f32 %v3911_v18, %v4263_v45  ;;  %v5232_v15 = vmax.f32 %v5231_v62, 1e-15 }
 0x1c4   : > { %2701 = vrcp.f32 %v4319_v35  ;;  %v2694_v24 = vpop.eup %2693  ;;  %v818_v5 = vmul.f32 %v3998_v1, %v817_v36  ;;  %v4351_v31 = vmax.f32 %v836_v50, 1e-15  ;;  %v4354_v44 = vmul.f32 %v1506_v20, %v5233_v12  ;;  %v5235_v1 = vld [vmem:[#allocation32_spill] sm:$0xff] }
 0x1c5   : > { %2703 = vrcp.f32 %v4254_v21  ;;  %vm820_vm10 = vcmp.eq.f32.partialorder %v3889_v29, inf  ;;  %vm822_vm11 = vcmp.eq.f32.partialorder %v3889_v29, 0.0  ;;  %v1014_v13 = vmul.f32 %v5234_v47, %v966_v59 }
 0x1c6   : > { %2705 = vrcp.f32 %v5232_v15  ;;  %v2696_v8 = vpop.eup %2695  ;;  %v819_v45 = vmul.f32 %v818_v5, %v3889_v29  ;;  %v823_v7 = vand.u32 2147483648, %v3889_v29  ;;  %v967_v50 = vadd.f32 1.0, %v5235_v1  ;;  %v5236_v1 = vld [vmem:[#allocation40_spill] sm:$0xff] }
 0x1c7   : > { %v4359_v55 = vmax.f32 %v2696_v8, 1e-15  ;;  %v1491_v63 = vmul.f32 %v4328_v9, %v1395_v0  ;;  %v4366_v20 = vadd.f32 %v3911_v18, %v1380_v37  ;;  %v1461_v52 = vmax.f32 %v1445_v46, 1e-15 }
 0x1c8   : > { %v2698_v28 = vpop.eup %2697  ;;  %2707 = vrcp.f32 %v4278_v11  ;;  %v1040_v59 = vmul.f32 0.6931472, %v2694_v24  ;;  %v821_v34 = vsel %vm820_vm10, %v3889_v29, %v819_v45  ;;  %vm1234_vm12 = vcmp.le.f32.partialorder %v4254_v21, 1e-15 }
 0x1c9   : > { %v2700_v49 = vpop.eup %2699  ;;  %2709 = vrcp.f32 %v4359_v55  ;;  %v917_v62 = vmul.f32 %v2698_v28, %v4351_v31  ;;  %v824_v0 = vsel %vm822_vm11, %v823_v7, %v821_v34  ;;  %v841_v24 = vsub.f32 1.5, %v4137_v32  ;;  %v5238_v7 = vld [vmem:[#allocation33_spill] sm:$0xff] }
 0x1ca   : > { %v2702_v36 = vpop.eup %2701  ;;  %v1042_v37 = vmul.f32 0.6931472, %v2700_v49  ;;  %2711 = vlog2.f32 %v1014_v13  ;;  %v4377_v47 = vmax.f32 %v824_v0, 1e-15  ;;  %v1015_v38 = vmul.f32 %v5236_v1, %v967_v50  ;;  %v1327_v1 = vpop.xlane.xlu2 %1326 }
 0x1cb   : > { %v2704_v15 = vpop.eup %2703  ;;  %v1186_v5 = vmul.f32 0.996, %v2702_v36  ;;  %v4382_v45 = vmul.f32 %v1491_v63, %v4220_v61  ;;  %v1492_v28 = vmul.f32 %v4338_v16, %v1396_v3  ;;  %vm1235_vm13 = vcmp.le.f32.partialorder %v4278_v11, 1e-15  ;;  %v5240_v63 = vld [vmem:[#allocation41_spill] sm:$0xff] }
 0x1cc   : > { %v2706_v46 = vpop.eup %2705  ;;  %v1138_v12 = vmul.f32 %v2704_v15, %v2686_v6  ;;  %v1061_v29 = vmul.f32 0.5, %v1042_v37  ;;  %v5239_v13 = vmax.f32 %v5238_v7, 1e-15  ;;  %v1060_v6 = vmul.f32 0.5, %v1040_v59 }
 0x1cd   : > { %5237 = vst [vmem:[#allocation31_spill] sm:$0xff] %v4382_v45  ;;  %v916_v36 = vmul.f32 %v2706_v46, %v4377_v47  ;;  %v842_v50 = vmul.f32 %v4028_v23, %v841_v24  ;;  %vm844_vm14 = vcmp.eq.f32.partialorder %v3977_v56, inf  ;;  %vm846_vm15 = vcmp.eq.f32.partialorder %v3977_v56, 0.0 }
 0x1ce   : > { %2713 = vrcp.f32 %v5239_v13  ;;  %v1202_v49 = vmul.f32 %v1186_v5, %v1138_v12  ;;  %v2708_v34 = vpop.eup %2707  ;;  %v1077_v32 = vmul.f32 %v1061_v29, %v917_v62  ;;  %vm1154_vm0 = vcmp.gt.f32.partialorder %v4319_v35, 0.996 }
 0x1cf   : > { %2715 = vrcp.f32 %v1461_v52  ;;  %v2710_v61 = vpop.eup %2709  ;;  %v1076_v3 = vmul.f32 %v1060_v6, %v916_v36  ;;  %v968_v15 = vadd.f32 1.0, %v5240_v63  ;;  %v1139_v5 = vmul.f32 %v2708_v34, %v2696_v8  ;;  %v5241_v6 = vld [vmem:[#allocation44_spill] sm:$0xff] }
 0x1d0   : > { %2717 = vlog2.f32 %v1015_v38  ;;  %v2712_v52 = vpop.eup %2711  ;;  %v1187_v59 = vmul.f32 0.996, %v2710_v61  ;;  %v843_v0 = vmul.f32 %v842_v50, %v3977_v56  ;;  %v1218_v62 = vsel %vm1154_vm0, %v1202_v49, %v1138_v12  ;;  %v1329_v12 = vpop.xlane.xlu0 %1328 }
 0x1d1   : > { %2719 = vtanh.f32 %v1077_v32  ;;  %v1266_v23 = vmin.f32 %v4319_v35, 0.996  ;;  %v847_v37 = vand.u32 2147483648, %v3977_v56  ;;  %v1508_v24 = vmul.f32 %v1492_v28, %v4242_v19 }
 0x1d2   : > { %2721 = vtanh.f32 %v1076_v3  ;;  %v1203_v29 = vmul.f32 %v1187_v59, %v1139_v5  ;;  %v845_v38 = vsel %vm844_vm14, %v3977_v56, %v843_v0  ;;  %vm1155_vm1 = vcmp.gt.f32.partialorder %v4359_v55, 0.996  ;;  %v5242_v56 = vld [vmem:[#allocation30_spill] sm:$0xff] }
 0x1d3   : > { %2723 = vrcp.f32 %v4351_v31  ;;  %v1267_v35 = vmin.f32 %v4359_v55, 0.996  ;;  %v848_v7 = vsel %vm846_vm15, %v847_v37, %v845_v38  ;;  %v1044_v13 = vmul.f32 0.6931472, %v2712_v52  ;;  %v5244_v52 = vld [vmem:[#allocation37_spill] sm:$0xff] }
 0x1d4   : > { %v2714_v46 = vpop.eup %2713  ;;  %v4410_v19 = vsel %vm1234_vm12, 0.0, %v1218_v62  ;;  %v1219_v28 = vsel %vm1155_vm1, %v1203_v29, %v1139_v5  ;;  %v4412_v49 = vmax.f32 %v848_v7, 1e-15  ;;  %v1016_v36 = vmul.f32 %v5241_v6, %v968_v15  ;;  %v5246_v7 = vld [vmem:[#allocation25_spill] sm:$0xff] }
 0x1d5   : > { %v4402_v8 = vpop.eup %2715  ;;  %v4415_v32 = vmul.f32 %v1266_v23, %v1266_v23  ;;  %v1349_v50 = vmul.f32 %v1327_v1, %v4410_v19  ;;  %v4420_v55 = vsel %vm1235_vm13, 0.0, %v1219_v28  ;;  %v5243_v61 = vmax.f32 %v5242_v56, 1e-15 }
 0x1d6   : > { %v2718_v34 = vpop.eup %2717  ;;  %v1493_v3 = vmul.f32 %v4402_v8, %v4366_v20  ;;  %v1350_v63 = vmul.f32 %v1329_v12, %v4420_v55  ;;  %v918_v15 = vmul.f32 %v2714_v46, %v4412_v49  ;;  %v5245_v5 = vmax.f32 %v5244_v52, 1e-15 }
 0x1d7   : > { %2725 = vrcp.f32 %v5243_v61  ;;  %v2720_v21 = vpop.eup %2719  ;;  %v4430_v0 = vmul.f32 %v1267_v35, %v1267_v35  ;;  %v1062_v62 = vmul.f32 0.5, %v1044_v13  ;;  %v853_v23 = vsub.f32 1.5, %v4143_v40  ;;  %v4464_v61 = vld [vmem:[%s5103_s2] ss:$0 sm:$0xff] }
 0x1d8   : > { %2727 = vrcp.f32 %v5245_v5  ;;  %v2722_v59 = vpop.eup %2721  ;;  %v4432_v11 = vmax.f32 %v2720_v21, 1e-15  ;;  %v1366_v1 = vmul.f32 2.0, %v1350_v63  ;;  %v1046_v20 = vmul.f32 0.6931472, %v2718_v34 }
 0x1d9   : > { %v2724_v37 = vpop.eup %2723  ;;  %v4435_v29 = vmax.f32 %v2722_v59, 1e-15  ;;  %2729 = vlog2.f32 %v1016_v36  ;;  %v1365_v38 = vmul.f32 2.0, %v1349_v50  ;;  %v1405_v46 = vsub.f32 1.0, %v4030_v25 }
 0x1da   : > { %2731 = vrcp.f32 %v4432_v11  ;;  %v1078_v12 = vmul.f32 %v1062_v62, %v918_v15  ;;  %v4440_v35 = vmul.f32 %v1508_v24, %v5246_v7  ;;  %v4443_v28 = vmul.f32 %v1493_v3, %v4285_v51  ;;  %v5247_v15 = vld [vmem:[#allocation47_spill] sm:$0xff] }
 0x1db   : > { %v1430_v40 = vmul.f32 %v3911_v18, %v4415_v32  ;;  %2733 = vrcp.f32 %v4377_v47  ;;  %v4448_v6 = vadd.f32 1.0, %v1366_v1  ;;  %v1533_v25 = vmul.f32 %v4212_v39, %v1405_v46 }
 0x1dc   : > { %2735 = vrcp.f32 %v4435_v29  ;;  %v854_v36 = vmul.f32 %v4045_v4, %v853_v23  ;;  %v1431_v51 = vmul.f32 %v3911_v18, %v4430_v0  ;;  %vm1237_vm2 = vcmp.le.f32.partialorder %v4351_v31, 1e-15 }
 0x1dd   : > { %v2726_v13 = vpop.eup %2725  ;;  %2737 = vtanh.f32 %v1078_v12  ;;  %v1063_v24 = vmul.f32 0.5, %v1046_v20  ;;  %v1409_v50 = vsub.f32 1.0, %v4082_v26  ;;  %v4459_v56 = vadd.f32 1.0, %v1365_v38 }
 0x1de   : > { %v4453_v34 = vpop.eup %2727  ;;  %v1549_v4 = vmul.f32 %v4464_v61, %v1533_v25  ;;  %v855_v39 = vmul.f32 %v854_v36, %v3956_v48  ;;  %v865_v3 = vsub.f32 1.5, %v4150_v43  ;;  %vm1236_vm3 = vcmp.le.f32.partialorder %v4377_v47, 1e-15  ;;  %v5248_v43 = vld [vmem:[#allocation48_spill] sm:$0xff] }
 0x1df   : > { %v2730_v63 = vpop.eup %2729  ;;  %vm856_vm4 = vcmp.eq.f32.partialorder %v3956_v48, inf  ;;  %vm858_vm5 = vcmp.eq.f32.partialorder %v3956_v48, 0.0  ;;  %v859_v26 = vand.u32 2147483648, %v3956_v48  ;;  %vm868_vm6 = vcmp.eq.f32.partialorder %v5247_v15, inf }
 0x1e0   : > { %v2732_v52 = vpop.eup %2731  ;;  %v1447_v5 = vadd.f32 %v1431_v51, %v4448_v6  ;;  %v4476_v62 = vadd.f32 %v1549_v4, %v4305_v22  ;;  %v857_v23 = vsel %vm856_vm4, %v3956_v48, %v855_v39  ;;  %v866_v1 = vmul.f32 %v5248_v43, %v865_v3  ;;  %v1333_v39 = vpop.xlane.xlu2 %1332 }
 0x1e1   : > { %v2734_v20 = vpop.eup %2733  ;;  %v1141_v38 = vmul.f32 %v2724_v37, %v2720_v21  ;;  %v1189_v46 = vmul.f32 0.996, %v2732_v52  ;;  %v860_v12 = vsel %vm858_vm5, %v859_v26, %v857_v23  ;;  %vm870_vm7 = vcmp.eq.f32.partialorder %v5247_v15, 0.0 }
 0x1e2   : > { %v2736_v7 = vpop.eup %2735  ;;  %v1446_v25 = vadd.f32 %v1430_v40, %v4459_v56  ;;  %v1140_v36 = vmul.f32 %v2734_v20, %v2722_v59  ;;  %v1581_v51 = vmul.f32 %v4476_v62, %v4476_v62  ;;  %v4484_v45 = vmax.f32 %v860_v12, 1e-15 }
 0x1e3   : > { %v2738_v22 = vpop.eup %2737  ;;  %v1188_v4 = vmul.f32 0.996, %v2736_v7  ;;  %vm1157_vm8 = vcmp.gt.f32.partialorder %v4432_v11, 0.996  ;;  %v1205_v48 = vmul.f32 %v1189_v46, %v1141_v38  ;;  %v1269_v21 = vmin.f32 %v4432_v11, 0.996  ;;  %v1331_v46 = vpop.xlane.xlu1 %1330 }
 0x1e4   : > { %v1463_v37 = vmax.f32 %v1447_v5, 1e-15  ;;  %1597 = vadd.xlane.f32.xlu0 %v1581_v51  ;;  %v4488_v3 = vmax.f32 %v2738_v22, 1e-15  ;;  %v919_v40 = vmul.f32 %v2726_v13, %v4484_v45  ;;  %v867_v59 = vmul.f32 %v866_v1, %v5247_v15 }
 0x1e5   : > { %v1204_v26 = vmul.f32 %v1188_v4, %v1140_v36  ;;  %v1268_v52 = vmin.f32 %v4435_v29, 0.996  ;;  %v1221_v23 = vsel %vm1157_vm8, %v1205_v48, %v1141_v38  ;;  %2739 = vrcp.f32 %v4412_v49 }
 0x1e6   : > { %v1462_v43 = vmax.f32 %v1446_v25, 1e-15  ;;  %vm1156_vm9 = vcmp.gt.f32.partialorder %v4435_v29, 0.996  ;;  %v4497_v11 = vsel %vm1237_vm2, 0.0, %v1221_v23  ;;  %2741 = vrcp.f32 %v4488_v3 }
 0x1e7   : > { %v1220_v5 = vsel %vm1156_vm9, %v1204_v26, %v1140_v36  ;;  %v4500_v20 = vmul.f32 %v1269_v21, %v1269_v21  ;;  %v1352_v13 = vmul.f32 %v1333_v39, %v4497_v11  ;;  %v1079_v1 = vmul.f32 %v1063_v24, %v919_v40 }
 0x1e8   : > { %2743 = vrcp.f32 %v1463_v37  ;;  %v4505_v38 = vsel %vm1236_vm3, 0.0, %v1220_v5  ;;  %v869_v31 = vsel %vm868_vm6, %v5247_v15, %v867_v59  ;;  %v871_v29 = vand.u32 2147483648, %v5247_v15 }
 0x1e9   : > { %v4511_v12 = vmul.f32 %v1268_v52, %v1268_v52  ;;  %v1351_v7 = vmul.f32 %v1331_v46, %v4505_v38  ;;  %v1368_v25 = vmul.f32 2.0, %v1352_v13  ;;  %2745 = vtanh.f32 %v1079_v1 }
 0x1ea   : > { %2747 = vrcp.f32 %v1462_v43  ;;  %v1537_v24 = vmul.f32 %v4225_v41, %v1409_v50  ;;  %v872_v47 = vsel %vm870_vm7, %v871_v29, %v869_v31  ;;  %v1048_v36 = vmul.f32 0.6931472, %v2730_v63  ;;  %v5249_v41 = vld [vmem:[#allocation49_spill] sm:$0xff] }
 0x1eb   : > { %v2740_v51 = vpop.eup %2739  ;;  %v1367_v4 = vmul.f32 2.0, %v1351_v7  ;;  %v1384_v48 = vadd.f32 1.0, %v1368_v25  ;;  %v1433_v21 = vmul.f32 %v3911_v18, %v4500_v20  ;;  %v4519_v37 = vmax.f32 %v872_v47, 1e-15 }
 0x1ec   : > { %v2742_v39 = vpop.eup %2741  ;;  %v1398_v40 = vadd.f32 %v3911_v18, %v4459_v56  ;;  %v1399_v59 = vadd.f32 %v3911_v18, %v4448_v6  ;;  %vm1238_vm10 = vcmp.le.f32.partialorder %v4412_v49, 1e-15  ;;  %v1406_v50 = vsub.f32 1.0, %v5249_v41 }
 0x1ed   : > { %v1432_v63 = vmul.f32 %v3911_v18, %v4511_v12  ;;  %v1449_v15 = vadd.f32 %v1433_v21, %v1384_v48  ;;  %v1142_v26 = vmul.f32 %v2740_v51, %v2738_v22  ;;  %v1190_v52 = vmul.f32 0.996, %v2742_v39 }
 0x1ee   : > { %v4529_v23 = vpop.eup %2743  ;;  %v4531_v43 = vadd.f32 1.0, %v1367_v4  ;;  %v1553_v5 = vmul.f32 %v4464_v61, %v1537_v24  ;;  %v920_v56 = vmul.f32 %v4453_v34, %v4519_v37  ;;  %v1064_v6 = vmul.f32 0.5, %v1048_v36 }
 0x1ef   : > { %v2746_v13 = vpop.eup %2745  ;;  %v1465_v1 = vmax.f32 %v1449_v15, 1e-15  ;;  %v1206_v46 = vmul.f32 %v1190_v52, %v1142_v26  ;;  %v1270_v31 = vmin.f32 %v4488_v3, 0.996  ;;  %2749 = vrcp.f32 %v4484_v45 }
 0x1f0   : > { %v4538_v29 = vpop.eup %2747  ;;  %vm1158_vm11 = vcmp.gt.f32.partialorder %v4488_v3, 0.996  ;;  %v4541_v22 = vmax.f32 %v2746_v13, 1e-15  ;;  %v4544_v7 = vadd.f32 %v1553_v5, %v4334_v58  ;;  %v1080_v25 = vmul.f32 %v1064_v6, %v920_v56  ;;  %v1335_v3 = vpop.xlane.xlu0 %1334 }
 0x1f1   : > { %2751 = vrcp.f32 %v1465_v1  ;;  %v1222_v34 = vsel %vm1158_vm11, %v1206_v46, %v1142_v26  ;;  %v1534_v24 = vmul.f32 %v4214_v42, %v1406_v50  ;;  %v1413_v47 = vsub.f32 1.0, %v4307_v27  ;;  %v5250_v27 = vld [vmem:[#allocation14_spill] sm:$0xff] }
 0x1f2   : > { %v1495_v36 = vmul.f32 %v4529_v23, %v1399_v59  ;;  %v1448_v51 = vadd.f32 %v1432_v63, %v4531_v43  ;;  %v4552_v4 = vsel %vm1238_vm10, 0.0, %v1222_v34  ;;  %2753 = vrcp.f32 %v4541_v22  ;;  %v5251_v34 = vld [vmem:[#allocation22_spill] sm:$0xff] }
 0x1f3   : > { %v1494_v58 = vmul.f32 %v4538_v29, %v1398_v40  ;;  %v4556_v21 = vmul.f32 %v1270_v31, %v1270_v31  ;;  %v1353_v39 = vmul.f32 %v1335_v3, %v4552_v4  ;;  %v1585_v42 = vmul.f32 %v4544_v7, %v4544_v7 }
 0x1f4   : > { %v1525_v59 = vmul.f32 %v4443_v28, %v5250_v27  ;;  %2755 = vtanh.f32 %v1080_v25  ;;  %v1541_v49 = vmul.f32 %v4402_v8, %v1413_v47  ;;  %v1410_v41 = vsub.f32 1.0, %v4192_v53 }
 0x1f5   : > { %v2750_v50 = vpop.eup %2749  ;;  %v1369_v63 = vmul.f32 2.0, %v1353_v39  ;;  %1605 = vadd.xlane.f32.xlu1 %v1585_v42  ;;  %v1550_v40 = vmul.f32 %v4464_v61, %v1534_v24  ;;  %v1415_v15 = vsub.f32 1.0, %v4430_v0  ;;  %v1417_v26 = vsub.f32 1.0, %v4500_v20  ;;  %v5252_v42 = vld [vmem:[#allocation18_spill] sm:$0xff] }
 0x1f6   : > { %v1511_v52 = vmul.f32 %v1495_v36, %v4420_v55  ;;  %v1464_v5 = vmax.f32 %v1448_v51, 1e-15  ;;  %v1401_v56 = vadd.f32 %v3911_v18, %v1384_v48  ;;  %v1407_v28 = vsub.f32 1.0, %v4161_v57 }
 0x1f7   : > { %v2752_v6 = vpop.eup %2751  ;;  %v1510_v8 = vmul.f32 %v1494_v58, %v4410_v19  ;;  %v1434_v53 = vmul.f32 %v3911_v18, %v4556_v21  ;;  %v1385_v1 = vadd.f32 1.0, %v1369_v63  ;;  %v4575_v46 = vadd.f32 %v1550_v40, %v4331_v60 }
 0x1f8   : > { %v2754_v0 = vpop.eup %2753  ;;  %v1497_v31 = vmul.f32 %v2752_v6, %v1401_v56  ;;  %vm1239_vm12 = vcmp.le.f32.partialorder %v4484_v45, 1e-15  ;;  %2757 = vrcp.f32 %v4519_v37  ;;  %v1557_v55 = vmul.f32 %v4464_v61, %v1541_v49  ;;  %v5253_v45 = vld [vmem:[#allocation15_spill] sm:$0xff] }
 0x1f9   : > { %v1450_v20 = vadd.f32 %v1434_v53, %v1385_v1  ;;  %v1143_v57 = vmul.f32 %v2750_v50, %v2746_v13  ;;  %v1191_v48 = vmul.f32 0.996, %v2754_v0  ;;  %v1538_v19 = vmul.f32 %v4296_v14, %v1410_v41  ;;  %v1337_v50 = vpop.xlane.xlu1 %1336 }
 0x1fa   : > { %v2756_v25 = vpop.eup %2755  ;;  %v1527_v24 = vmul.f32 %v1511_v52, %v5251_v34  ;;  %2759 = vrcp.f32 %v1464_v5  ;;  %v1271_v60 = vmin.f32 %v4541_v22, 0.996  ;;  %v4583_v47 = vadd.f32 %v1557_v55, %v1525_v59 }
 0x1fb   : > { %v1466_v36 = vmax.f32 %v1450_v20, 1e-15  ;;  %v1207_v51 = vmul.f32 %v1191_v48, %v1143_v57  ;;  %v4585_v3 = vmax.f32 %v2756_v25, 1e-15  ;;  %v1582_v58 = vmul.f32 %v4575_v46, %v4575_v46 }
 0x1fc   : > { %v1513_v13 = vmul.f32 %v1497_v31, %v4497_v11  ;;  %vm1159_vm13 = vcmp.gt.f32.partialorder %v4541_v22, 0.996  ;;  %v1589_v14 = vmul.f32 %v4583_v47, %v4583_v47  ;;  %v1543_v39 = vmul.f32 %v4529_v23, %v1415_v15 }
 0x1fd   : > { %v4595_v27 = vmul.f32 %v1510_v8, %v5252_v42  ;;  %2761 = vrcp.f32 %v1466_v36  ;;  %v1223_v59 = vsel %vm1159_vm13, %v1207_v51, %v1143_v57  ;;  %1599 = vadd.xlane.f32.xlu1 %v1582_v58  ;;  %v1554_v49 = vmul.f32 %v4464_v61, %v1538_v19 }
 0x1fe   : > { %v2758_v41 = vpop.eup %2757  ;;  %v4600_v11 = vsel %vm1239_vm12, 0.0, %v1223_v59  ;;  %2763 = vrcp.f32 %v4585_v3  ;;  %1613 = vadd.xlane.f32.xlu2 %v1589_v14  ;;  %v1559_v22 = vmul.f32 %v4464_v61, %v1543_v39  ;;  %v1412_v23 = vsub.f32 1.0, %v4252_v17  ;;  %v5254_v59 = vld [vmem:[#allocation19_spill] sm:$0xff] }
 0x1ff   : > { %v4605_v63 = vmul.f32 %v1271_v60, %v1271_v60  ;;  %v1354_v40 = vmul.f32 %v1337_v50, %v4600_v11  ;;  %v4609_v15 = vadd.f32 %v1554_v49, %v4354_v44  ;;  %v1414_v52 = vsub.f32 1.0, %v4415_v32 }
 0x200   : > { %v2760_v5 = vpop.eup %2759  ;;  %v1529_v56 = vmul.f32 %v1513_v13, %v5253_v45  ;;  %v4613_v8 = vadd.f32 %v1559_v22, %v1527_v24  ;;  %v1545_v53 = vmul.f32 %v2752_v6, %v1417_v26  ;;  %v1540_v0 = vmul.f32 %v4338_v16, %v1412_v23  ;;  %v1339_v22 = vpop.xlane.xlu2 %1338 }
 0x201   : > { %v1400_v17 = vadd.f32 %v3911_v18, %v4531_v43  ;;  %v1370_v31 = vmul.f32 2.0, %v1354_v40  ;;  %v1418_v55 = vsub.f32 1.0, %v4556_v21  ;;  %v1416_v20 = vsub.f32 1.0, %v4511_v12 }
 0x202   : > { %v1402_v44 = vadd.f32 %v3911_v18, %v1385_v1  ;;  %v1591_v32 = vmul.f32 %v4613_v8, %v4613_v8  ;;  %v1561_v57 = vmul.f32 %v4464_v61, %v1545_v53  ;;  %v1535_v48 = vmul.f32 %v4272_v30, %v1407_v28  ;;  %v5255_v53 = vld [vmem:[#allocation26_spill] sm:$0xff] }
 0x203   : > { %v2762_v26 = vpop.eup %2761  ;;  %v1496_v6 = vmul.f32 %v2760_v5, %v1400_v17  ;;  %v1386_v16 = vadd.f32 1.0, %v1370_v31  ;;  %v1435_v43 = vmul.f32 %v3911_v18, %v4605_v63  ;;  %v1556_v19 = vmul.f32 %v4464_v61, %v1540_v0 }
 0x204   : > { %v2764_v21 = vpop.eup %2763  ;;  %v1498_v34 = vmul.f32 %v2762_v26, %v1402_v44  ;;  %v1586_v12 = vmul.f32 %v4609_v15, %v4609_v15  ;;  %v4630_v1 = vadd.f32 %v1561_v57, %v1529_v56  ;;  %v1542_v24 = vmul.f32 %v4538_v29, %v1414_v52 }
 0x205   : > { %v1451_v60 = vadd.f32 %v1435_v43, %v1386_v16  ;;  %v1144_v36 = vmul.f32 %v2758_v41, %v2756_v25  ;;  %v1192_v30 = vmul.f32 0.996, %v2764_v21  ;;  %1617 = vadd.xlane.f32.xlu1 %v1591_v32  ;;  %v4634_v28 = vadd.f32 %v1556_v19, %v4440_v35  ;;  %v5258_v21 = vld [vmem:[#allocation50_spill] sm:$0xff] }
 0x206   : > { %v1514_v51 = vmul.f32 %v1498_v34, %v4552_v4  ;;  %vm1240_vm14 = vcmp.le.f32.partialorder %v4519_v37, 1e-15  ;;  %1607 = vadd.xlane.f32.xlu2 %v1586_v12  ;;  %v1593_v58 = vmul.f32 %v4630_v1, %v4630_v1  ;;  %v1551_v13 = vmul.f32 %v4464_v61, %v1535_v48 }
 0x207   : > { %v1467_v14 = vmax.f32 %v1451_v60, 1e-15  ;;  %v1208_v39 = vmul.f32 %v1192_v30, %v1144_v36  ;;  %v1272_v29 = vmin.f32 %v4585_v3, 0.996  ;;  %v1546_v25 = vmul.f32 %v2762_v26, %v1418_v55  ;;  %v5257_v55 = vld [vmem:[#allocation31_spill] sm:$0xff] }
 0x208   : > { %v1512_v42 = vmul.f32 %v1496_v6, %v4505_v38  ;;  %vm1160_vm15 = vcmp.gt.f32.partialorder %v4585_v3, 0.996  ;;  %1621 = vadd.xlane.f32.xlu0 %v1593_v58  ;;  %v4645_v35 = vadd.f32 %v1551_v13, %v4341_v10  ;;  %v1558_v4 = vmul.f32 %v4464_v61, %v1542_v24  ;;  %v5259_v30 = vld [vmem:[#allocation51_spill] sm:$0xff] }
 0x209   : > { %v1530_v49 = vmul.f32 %v1514_v51, %v5254_v59  ;;  %2765 = vrcp.f32 %v1467_v14  ;;  %v1224_v41 = vsel %vm1160_vm15, %v1208_v39, %v1144_v36  ;;  %v1588_v50 = vmul.f32 %v4634_v28, %v4634_v28  ;;  %v5260_v13 = vld [vmem:[#allocation23_spill] sm:$0xff] }
 0x20a   : > { %v1256_v23 = vsel %vm1240_vm14, 0.0, %v1224_v41  ;;  %v4654_v38 = vadd.f32 %v1558_v4, %v4595_v27  ;;  %v1544_v3 = vmul.f32 %v2760_v5, %v1416_v20  ;;  %v1411_v10 = vsub.f32 1.0, %v4222_v54  ;;  %v5256_v54 = vld [vmem:[#allocation20_spill] sm:$0xff] }
 0x20b   : > { %v1392_v40 = vadd.f32 %v3911_v18, %v4234_v33  ;;  %v1288_v52 = vmul.f32 %v1272_v29, %v1272_v29  ;;  %v1355_v45 = vmul.f32 %v1339_v22, %v1256_v23  ;;  %v1562_v56 = vmul.f32 %v4464_v61, %v1546_v25  ;;  %v5261_v29 = vld [vmem:[#allocation24_spill] sm:$0xff] }
 0x20c   : > { %v1528_v0 = vmul.f32 %v1512_v42, %v5255_v53  ;;  %v1583_v17 = vmul.f32 %v4645_v35, %v4645_v35  ;;  %v1539_v37 = vmul.f32 %v4328_v9, %v1411_v10  ;;  %v1523_v33 = vmul.f32 %v5257_v55, %v5256_v54 }
 0x20d   : > { %v1488_v27 = vmul.f32 %v4324_v2, %v1392_v40  ;;  %v1371_v31 = vmul.f32 2.0, %v1355_v45  ;;  %1611 = vadd.xlane.f32.xlu1 %v1588_v50  ;;  %v4665_v5 = vadd.f32 %v1562_v56, %v1530_v49  ;;  %v1403_v20 = vadd.f32 %v3911_v18, %v1386_v16  ;;  %v5262_v56 = vld [vmem:[#allocation27_spill] sm:$0xff] }
 0x20e   : > { %1601 = vadd.xlane.f32.xlu2 %v1583_v17  ;;  %v1590_v44 = vmul.f32 %v4654_v38, %v4654_v38  ;;  %v1560_v32 = vmul.f32 %v4464_v61, %v1544_v3  ;;  %v1436_v9 = vmul.f32 %v3911_v18, %v1288_v52  ;;  %v1555_v43 = vmul.f32 %v4464_v61, %v1539_v37 }
 0x20f   : > { %v2766_v57 = vpop.eup %2765  ;;  %v1387_v48 = vadd.f32 1.0, %v1371_v31  ;;  %v1419_v19 = vsub.f32 1.0, %v4605_v63  ;;  %v1504_v16 = vmul.f32 %v1488_v27, %v5258_v21  ;;  %v1594_v12 = vmul.f32 %v4665_v5, %v4665_v5 }
 0x210   : > { %v1499_v26 = vmul.f32 %v2766_v57, %v1403_v20  ;;  %1615 = vadd.xlane.f32.xlu0 %v1590_v44  ;;  %v4674_v6 = vadd.f32 %v1560_v32, %v1528_v0  ;;  %v4682_v60 = vadd.f32 %v1555_v43, %v1523_v33  ;;  %v1408_v51 = vsub.f32 1.0, %v5259_v30 }
 0x211   : > { %v1452_v34 = vadd.f32 %v1436_v9, %v1387_v48  ;;  %v1547_v36 = vmul.f32 %v2766_v57, %v1419_v19  ;;  %v1520_v25 = vmul.f32 %v1504_v16, %v5261_v29  ;;  %v1404_v49 = vadd.f32 %v3911_v18, %v1387_v48 }
 0x212   : > { %v1515_v24 = vmul.f32 %v1499_v26, %v4600_v11  ;;  %v1592_v39 = vmul.f32 %v4674_v6, %v4674_v6  ;;  %v1536_v63 = vmul.f32 %v4324_v2, %v1408_v51  ;;  %v1587_v11 = vmul.f32 %v4682_v60, %v4682_v60 }
 0x213   : > { %v1468_v58 = vmax.f32 %v1452_v34, 1e-15  ;;  %v1563_v42 = vmul.f32 %v4464_v61, %v1547_v36  ;;  %v1420_v2 = vsub.f32 1.0, %v1288_v52 }
 0x214   : > { %v1531_v14 = vmul.f32 %v1515_v24, %v5260_v13  ;;  %v1552_v59 = vmul.f32 %v4464_v61, %v1536_v63 }
 0x215   : > { %2767 = vrcp.f32 %v1468_v58  ;;  %1623 = vadd.xlane.f32.xlu1 %v1594_v12 }
 0x216   : > { %1619 = vadd.xlane.f32.xlu2 %v1592_v39  ;;  %v4693_v4 = vadd.f32 %v1563_v42, %v1531_v14  ;;  %v4697_v41 = vadd.f32 %v1552_v59, %v1520_v25 }
 0x218   : > { %1609 = vadd.xlane.f32.xlu0 %v1587_v11  ;;  %v1595_v3 = vmul.f32 %v4693_v4, %v4693_v4  ;;  %v1584_v45 = vmul.f32 %v4697_v41, %v4697_v41 }
 0x21b   : > { %v2768_v50 = vpop.eup %2767 }
 0x21c   : > { %v1500_v22 = vmul.f32 %v2768_v50, %v1404_v49  ;;  %v1548_v10 = vmul.f32 %v2768_v50, %v1420_v2 }
 0x21e   : > { %v1516_v40 = vmul.f32 %v1500_v22, %v1256_v23  ;;  %1625 = vadd.xlane.f32.xlu2 %v1595_v3  ;;  %v1564_v0 = vmul.f32 %v4464_v61, %v1548_v10 }
 0x220   : > { %v1532_v53 = vmul.f32 %v1516_v40, %v5262_v56  ;;  %1603 = vadd.xlane.f32.xlu0 %v1584_v45 }
 0x222   : > { %v4705_v18 = vadd.f32 %v1564_v0, %v1532_v53 }
 0x224   : > { %v1596_v52 = vmul.f32 %v4705_v18, %v4705_v18 }
 0x228   : > { %1627 = vadd.xlane.f32.xlu0 %v1596_v52 }
 0x257   : > { %v1598_v17 = vpop.xlane.xlu0 %1597 }
 0x258   : > { %2769 = vrsqrt.f32 %v1598_v17  ;;  %vm1636_vm0 = vcmp.eq.f32.partialorder %v1598_v17, inf  ;;  %v1639_v61 = vand.u32 2147483648, %v1598_v17  ;;  %vm1638_vm1 = vcmp.eq.f32.partialorder %v1598_v17, 0.0 }
 0x25e   : > { %v2770_v37 = vpop.eup %2769 }
 0x25f   : > { %v1630_v27 = vmul.f32 %v2770_v37, %v1598_v17 }
 0x261   : > { %v1631_v23 = vmul.f32 %v2770_v37, %v1630_v27 }
 0x263   : > { %v1632_v31 = vmul.f32 0.5, %v1631_v23 }
 0x265   : > { %v1633_v54 = vsub.f32 1.5, %v1632_v31 }
 0x267   : > { %v1634_v55 = vmul.f32 %v2770_v37, %v1633_v54 }
 0x268   : > { %v1606_v33 = vpop.xlane.xlu1 %1605 }
 0x269   : > { %v1635_v20 = vmul.f32 %v1634_v55, %v1598_v17  ;;  %2771 = vrsqrt.f32 %v1606_v33  ;;  %vm1684_vm2 = vcmp.eq.f32.partialorder %v1606_v33, inf  ;;  %v1687_v39 = vand.u32 2147483648, %v1606_v33 }
 0x26a   : > { %vm1686_vm3 = vcmp.eq.f32.partialorder %v1606_v33, 0.0 }
 0x26b   : > { %v1637_v44 = vsel %vm1636_vm0, %v1598_v17, %v1635_v20 }
 0x26c   : > { %v1640_v32 = vsel %vm1638_vm1, %v1639_v61, %v1637_v44 }
 0x26d   : > { %v4709_v26 = vmax.f32 %v1640_v32, 1e-15 }
 0x26f   : > { %v2772_v57 = vpop.eup %2771  ;;  %v4715_v16 = vmin.f32 %v4709_v26, 0.996  ;;  %vm1853_vm13 = vcmp.gt.f32.partialorder %v4709_v26, 0.996 }
 0x270   : > { %v1678_v48 = vmul.f32 %v2772_v57, %v1606_v33  ;;  %v1600_v9 = vpop.xlane.xlu1 %1599 }
 0x271   : > { %v4711_v43 = vpop.xlane.xlu2 %1613  ;;  %2773 = vrsqrt.f32 %v1600_v9  ;;  %v1965_v30 = vsub.f32 1.0, %v4715_v16  ;;  %v1949_v37 = vadd.f32 1.0, %v4715_v16  ;;  %vm1648_vm4 = vcmp.eq.f32.partialorder %v1600_v9, inf }
 0x272   : > { %v1679_v19 = vmul.f32 %v2772_v57, %v1678_v48  ;;  %2775 = vrsqrt.f32 %v4711_v43  ;;  %vm1650_vm5 = vcmp.eq.f32.partialorder %v1600_v9, 0.0  ;;  %v1651_v55 = vand.u32 2147483648, %v1600_v9 }
 0x273   : > { %vm1732_vm6 = vcmp.eq.f32.partialorder %v4711_v43, inf  ;;  %vm1734_vm7 = vcmp.eq.f32.partialorder %v4711_v43, 0.0 }
 0x274   : > { %v1680_v21 = vmul.f32 0.5, %v1679_v19 }
 0x276   : > { %v1681_v34 = vsub.f32 1.5, %v1680_v21 }
 0x277   : > { %v2774_v12 = vpop.eup %2773 }
 0x278   : > { %v1682_v24 = vmul.f32 %v2772_v57, %v1681_v34  ;;  %v4717_v36 = vpop.xlane.xlu1 %1617  ;;  %v1642_v51 = vmul.f32 %v2774_v12, %v1600_v9  ;;  %v2776_v13 = vpop.eup %2775 }
 0x279   : > { %2777 = vrsqrt.f32 %v4717_v36  ;;  %v4721_v58 = vpop.xlane.xlu2 %1607  ;;  %v1726_v29 = vmul.f32 %v2776_v13, %v4711_v43  ;;  %vm1756_vm8 = vcmp.eq.f32.partialorder %v4717_v36, inf  ;;  %vm1758_vm11 = vcmp.eq.f32.partialorder %v4717_v36, 0.0 }
 0x27a   : > { %v1683_v14 = vmul.f32 %v1682_v24, %v1606_v33  ;;  %2779 = vrsqrt.f32 %v4721_v58  ;;  %v1643_v63 = vmul.f32 %v2774_v12, %v1642_v51  ;;  %v1735_v51 = vand.u32 2147483648, %v4711_v43 }
 0x27b   : > { %2781 = vrcp.f32 %v1965_v30  ;;  %v1727_v59 = vmul.f32 %v2776_v13, %v1726_v29  ;;  %v4727_v3 = vpop.xlane.xlu0 %1621  ;;  %vm1696_vm9 = vcmp.eq.f32.partialorder %v4721_v58, inf  ;;  %vm1698_vm10 = vcmp.eq.f32.partialorder %v4721_v58, 0.0 }
 0x27c   : > { %v1685_v25 = vsel %vm1684_vm2, %v1606_v33, %v1683_v14  ;;  %v1644_v42 = vmul.f32 0.5, %v1643_v63  ;;  %2783 = vrsqrt.f32 %v4727_v3  ;;  %vm1780_vm12 = vcmp.eq.f32.partialorder %v4727_v3, inf }
 0x27d   : > { %v1688_v11 = vsel %vm1686_vm3, %v1687_v39, %v1685_v25  ;;  %v1728_v22 = vmul.f32 0.5, %v1727_v59  ;;  %vm1782_vm14 = vcmp.eq.f32.partialorder %v4727_v3, 0.0 }
 0x27e   : > { %v4725_v49 = vmax.f32 %v1688_v11, 1e-15  ;;  %v1645_v50 = vsub.f32 1.5, %v1644_v42  ;;  %v1759_v11 = vand.u32 2147483648, %v4717_v36 }
 0x27f   : > { %v2778_v2 = vpop.eup %2777  ;;  %v1729_v53 = vsub.f32 1.5, %v1728_v22 }
 0x280   : > { %v2780_v10 = vpop.eup %2779  ;;  %v4730_v40 = vmin.f32 %v4725_v49, 0.996  ;;  %v1750_v45 = vmul.f32 %v2778_v2, %v4717_v36  ;;  %v1646_v56 = vmul.f32 %v2774_v12, %v1645_v50  ;;  %v4736_v54 = vpop.xlane.xlu1 %1611  ;;  %v1699_v50 = vand.u32 2147483648, %v4721_v58 }
 0x281   : > { %v1690_v0 = vmul.f32 %v2780_v10, %v4721_v58  ;;  %v2782_v17 = vpop.eup %2781  ;;  %v1730_v23 = vmul.f32 %v2776_v13, %v1729_v53  ;;  %2785 = vrsqrt.f32 %v4736_v54  ;;  %vm1857_vm15 = vcmp.gt.f32.partialorder %v4725_v49, 0.996 }
 0x282   : > { %v1751_v52 = vmul.f32 %v2778_v2, %v1750_v45  ;;  %v1647_v27 = vmul.f32 %v1646_v56, %v1600_v9  ;;  %v1969_v20 = vsub.f32 1.0, %v4730_v40  ;;  %v1997_v57 = vmul.f32 %v2782_v17, %v1949_v37  ;;  %v2784_v21 = vpop.eup %2783 }
 0x283   : > { %v1691_v31 = vmul.f32 %v2780_v10, %v1690_v0  ;;  %v1731_v61 = vmul.f32 %v1730_v23, %v4711_v43  ;;  %v1774_v13 = vmul.f32 %v2784_v21, %v4727_v3  ;;  %v1953_v0 = vadd.f32 1.0, %v4730_v40 }
 0x284   : > { %v1752_v33 = vmul.f32 0.5, %v1751_v52  ;;  %v1649_v44 = vsel %vm1648_vm4, %v1600_v9, %v1647_v27  ;;  %2787 = vrcp.f32 %v1969_v20  ;;  %vm1720_vm1 = vcmp.eq.f32.partialorder %v4736_v54, inf }
 0x285   : > { %v1692_v32 = vmul.f32 0.5, %v1691_v31  ;;  %v1652_v48 = vsel %vm1650_vm5, %v1651_v55, %v1649_v44  ;;  %v1733_v12 = vsel %vm1732_vm6, %v4711_v43, %v1731_v61  ;;  %2789 = vlog2.f32 %v1997_v57 }
 0x286   : > { %v1753_v19 = vsub.f32 1.5, %v1752_v33  ;;  %v4741_v34 = vmax.f32 %v1652_v48, 1e-15  ;;  %v1736_v29 = vsel %vm1734_vm7, %v1735_v51, %v1733_v12  ;;  %2791 = vrcp.f32 %v4709_v26 }
 0x287   : > { %v1693_v30 = vsub.f32 1.5, %v1692_v32  ;;  %v2786_v25 = vpop.eup %2785  ;;  %v1775_v59 = vmul.f32 %v2784_v21, %v1774_v13  ;;  %v4758_v43 = vmax.f32 %v1736_v29, 1e-15  ;;  %vm1722_vm2 = vcmp.eq.f32.partialorder %v4736_v54, 0.0 }
 0x288   : > { %v1754_v24 = vmul.f32 %v2778_v2, %v1753_v19  ;;  %v4746_v9 = vmin.f32 %v4741_v34, 0.996  ;;  %v1714_v56 = vmul.f32 %v2786_v25, %v4736_v54  ;;  %vm1854_vm0 = vcmp.gt.f32.partialorder %v4741_v34, 0.996 }
 0x289   : > { %v1694_v39 = vmul.f32 %v2780_v10, %v1693_v30  ;;  %v1776_v45 = vmul.f32 0.5, %v1775_v59  ;;  %v4770_v55 = vmin.f32 %v4758_v43, 0.996  ;;  %vm1861_vm4 = vcmp.gt.f32.partialorder %v4758_v43, 0.996 }
 0x28a   : > { %v1755_v14 = vmul.f32 %v1754_v24, %v4717_v36  ;;  %v1966_v63 = vsub.f32 1.0, %v4746_v9  ;;  %v2788_v22 = vpop.eup %2787  ;;  %v1715_v33 = vmul.f32 %v2786_v25, %v1714_v56  ;;  %v1950_v20 = vadd.f32 1.0, %v4746_v9 }
 0x28b   : > { %v1695_v42 = vmul.f32 %v1694_v39, %v4721_v58  ;;  %v2790_v53 = vpop.eup %2789  ;;  %v1777_v27 = vsub.f32 1.5, %v1776_v45  ;;  %v2001_v31 = vmul.f32 %v2788_v22, %v1953_v0  ;;  %v1973_v12 = vsub.f32 1.0, %v4770_v55 }
 0x28c   : > { %2793 = vrcp.f32 %v1966_v63  ;;  %v1757_v2 = vsel %vm1756_vm8, %v4717_v36, %v1755_v14  ;;  %v2792_v23 = vpop.eup %2791  ;;  %v1716_v57 = vmul.f32 0.5, %v1715_v33 }
 0x28d   : > { %v1697_v10 = vsel %vm1696_vm9, %v4721_v58, %v1695_v42  ;;  %v1760_v17 = vsel %vm1758_vm11, %v1759_v11, %v1757_v2  ;;  %v2014_v58 = vmul.f32 0.6931472, %v2790_v53  ;;  %2795 = vrcp.f32 %v4741_v34 }
 0x28e   : > { %v1700_v52 = vsel %vm1698_vm10, %v1699_v50, %v1697_v10  ;;  %v4777_v36 = vmax.f32 %v1760_v17, 1e-15  ;;  %v1778_v32 = vmul.f32 %v2784_v21, %v1777_v27  ;;  %2797 = vrcp.f32 %v4725_v49  ;;  %v4786_v21 = vpop.xlane.xlu2 %1601 }
 0x28f   : > { %v4767_v37 = vmax.f32 %v1700_v52, 1e-15  ;;  %2799 = vlog2.f32 %v2001_v31  ;;  %v1885_v30 = vmul.f32 0.996, %v2792_v23  ;;  %v1717_v51 = vsub.f32 1.5, %v1716_v57  ;;  %v4806_v31 = vpop.xlane.xlu0 %1615 }
 0x290   : > { %v1779_v24 = vmul.f32 %v1778_v32, %v4727_v3  ;;  %v2045_v13 = vmul.f32 0.5, %v2014_v58  ;;  %v4784_v14 = vmin.f32 %v4777_v36, 0.996  ;;  %v1783_v42 = vand.u32 2147483648, %v4727_v3 }
 0x291   : > { %v4774_v44 = vmin.f32 %v4767_v37, 0.996  ;;  %v1901_v11 = vsel %vm1853_vm13, %v1885_v30, 1.0  ;;  %v1718_v59 = vmul.f32 %v2786_v25, %v1717_v51  ;;  %vm1858_vm3 = vcmp.gt.f32.partialorder %v4767_v37, 0.996 }
 0x292   : > { %v2794_v61 = vpop.eup %2793  ;;  %v1781_v63 = vsel %vm1780_vm12, %v4727_v3, %v1779_v24  ;;  %v2061_v50 = vmul.f32 %v2045_v13, %v1901_v11  ;;  %vm1863_vm5 = vcmp.gt.f32.partialorder %v4777_v36, 0.996  ;;  %vm1660_vm6 = vcmp.eq.f32.partialorder %v4786_v21, inf }
 0x293   : > { %v1998_v48 = vmul.f32 %v2794_v61, %v1950_v20  ;;  %v1970_v19 = vsub.f32 1.0, %v4774_v44  ;;  %v2796_v39 = vpop.eup %2795  ;;  %v1954_v10 = vadd.f32 1.0, %v4774_v44  ;;  %v1784_v45 = vsel %vm1782_vm14, %v1783_v42, %v1781_v63 }
 0x294   : > { %v2798_v29 = vpop.eup %2797  ;;  %v1886_v26 = vmul.f32 0.996, %v2796_v39  ;;  %v1719_v3 = vmul.f32 %v1718_v59, %v4736_v54  ;;  %v4804_v23 = vmax.f32 %v1784_v45, 1e-15  ;;  %v1957_v61 = vadd.f32 1.0, %v4770_v55 }
 0x295   : > { %2801 = vlog2.f32 %v1998_v48  ;;  %v2800_v2 = vpop.eup %2799  ;;  %v1889_v25 = vmul.f32 0.996, %v2798_v29  ;;  %vm1662_vm7 = vcmp.eq.f32.partialorder %v4786_v21, 0.0  ;;  %vm1744_vm8 = vcmp.eq.f32.partialorder %v4806_v31, inf }
 0x296   : > { %2803 = vrcp.f32 %v1970_v19  ;;  %v1902_v20 = vsel %vm1854_vm0, %v1886_v26, 1.0  ;;  %v4815_v48 = vpop.xlane.xlu2 %1619  ;;  %v1721_v30 = vsel %vm1720_vm1, %v4736_v54, %v1719_v3  ;;  %v4823_v49 = vmin.f32 %v4804_v23, 0.996 }
 0x297   : > { %2805 = vrcp.f32 %v4715_v16  ;;  %v1975_v16 = vsub.f32 1.0, %v4784_v14  ;;  %v1905_v57 = vsel %vm1857_vm15, %v1889_v25, 1.0  ;;  %v4848_v3 = vpop.xlane.xlu0 %1609  ;;  %vm1746_vm9 = vcmp.eq.f32.partialorder %v4806_v31, 0.0 }
 0x298   : > { %2807 = vrcp.f32 %v1973_v12  ;;  %vm1768_vm12 = vcmp.eq.f32.partialorder %v4815_v48, inf  ;;  %vm1770_vm13 = vcmp.eq.f32.partialorder %v4815_v48, 0.0  ;;  %vm1865_vm14 = vcmp.gt.f32.partialorder %v4804_v23, 0.996 }
 0x299   : > { %2809 = vrsqrt.f32 %v4786_v21  ;;  %vm1708_vm15 = vcmp.eq.f32.partialorder %v4848_v3, inf  ;;  %vm1710_vm0 = vcmp.eq.f32.partialorder %v4848_v3, 0.0 }
 0x29a   : > { %2811 = vrcp.f32 %v4746_v9  ;;  %v2022_v9 = vmul.f32 0.6931472, %v2800_v2  ;;  %v1959_v2 = vadd.f32 1.0, %v4784_v14 }
 0x29b   : > { %v2802_v22 = vpop.eup %2801  ;;  %2813 = vrcp.f32 %v4758_v43 }
 0x29c   : > { %v2804_v56 = vpop.eup %2803  ;;  %v2016_v53 = vmul.f32 0.6931472, %v2802_v22  ;;  %2815 = vrcp.f32 %v4767_v37  ;;  %v2049_v12 = vmul.f32 0.5, %v2022_v9 }
 0x29d   : > { %v2806_v0 = vpop.eup %2805  ;;  %2817 = vrcp.f32 %v4777_v36  ;;  %v2002_v52 = vmul.f32 %v2804_v56, %v1954_v10 }
 0x29e   : > { %v2808_v17 = vpop.eup %2807  ;;  %v2046_v27 = vmul.f32 0.5, %v2016_v53  ;;  %2819 = vrcp.f32 %v1975_v16  ;;  %v2093_v58 = vmul.f32 %v2806_v0, %v2061_v50  ;;  %v4833_v50 = vpop.xlane.xlu1 %1623  ;;  %v2065_v22 = vmul.f32 %v2049_v12, %v1905_v57 }
 0x29f   : > { %v4808_v33 = vpop.eup %2809  ;;  %2821 = vlog2.f32 %v2002_v52  ;;  %v2005_v24 = vmul.f32 %v2808_v17, %v1957_v61  ;;  %vm1792_vm10 = vcmp.eq.f32.partialorder %v4833_v50, inf  ;;  %vm1794_vm11 = vcmp.eq.f32.partialorder %v4833_v50, 0.0 }
 0x2a0   : > { %v2812_v32 = vpop.eup %2811  ;;  %2823 = vrcp.f32 %v4730_v40  ;;  %v2062_v34 = vmul.f32 %v2046_v27, %v1902_v20  ;;  %v1654_v51 = vmul.f32 %v4808_v33, %v4786_v21  ;;  %v1723_v40 = vand.u32 2147483648, %v4736_v54 }
 0x2a1   : > { %v2814_v19 = vpop.eup %2813  ;;  %2825 = vrcp.f32 %v4770_v55  ;;  %v2109_v29 = vmul.f32 %v2093_v58, %v4476_v62 }
 0x2a2   : > { %v2816_v13 = vpop.eup %2815  ;;  %v2094_v39 = vmul.f32 %v2812_v32, %v2062_v34  ;;  %2827 = vrcp.f32 %v4774_v44  ;;  %v1655_v11 = vmul.f32 %v4808_v33, %v1654_v51  ;;  %v1724_v55 = vsel %vm1722_vm2, %v1723_v40, %v1721_v30  ;;  %v4855_v32 = vpop.xlane.xlu2 %1625 }
 0x2a3   : > { %v2818_v63 = vpop.eup %2817  ;;  %2829 = vrsqrt.f32 %v4806_v31  ;;  %v1890_v62 = vmul.f32 0.996, %v2816_v13  ;;  %v1893_v45 = vmul.f32 0.996, %v2814_v19  ;;  %v4837_v25 = vmax.f32 %v1724_v55, 1e-15 }
 0x2a4   : > { %v2820_v42 = vpop.eup %2819  ;;  %v2110_v59 = vmul.f32 %v2094_v39, %v4575_v46  ;;  %2831 = vlog2.f32 %v2005_v24  ;;  %v1656_v44 = vmul.f32 0.5, %v1655_v11  ;;  %v1977_v46 = vsub.f32 1.0, %v4823_v49 }
 0x2a5   : > { %v2822_v16 = vpop.eup %2821  ;;  %v1895_v56 = vmul.f32 0.996, %v2818_v63  ;;  %2833 = vrsqrt.f32 %v4833_v50  ;;  %v2007_v0 = vmul.f32 %v2820_v42, %v1959_v2  ;;  %v1906_v58 = vsel %vm1858_vm3, %v1890_v62, 1.0 }
 0x2a6   : > { %v2824_v26 = vpop.eup %2823  ;;  %v2349_v54 = vpack.c.bf16 %v2110_v59, %v2109_v29  ;;  %v2024_v10 = vmul.f32 0.6931472, %v2822_v16  ;;  %v1657_v52 = vsub.f32 1.5, %v1656_v44  ;;  %2835 = vrsqrt.f32 %v4815_v48 }
 0x2a7   : > { %v4840_v53 = vpop.eup %2825  ;;  %v2097_v27 = vmul.f32 %v2824_v26, %v2065_v22  ;;  %2837 = vrcp.f32 %v4784_v14  ;;  %v1909_v34 = vsel %vm1861_vm4, %v1893_v45, 1.0  ;;  %v4858_v19 = vmin.f32 %v4837_v25, 0.996 }
 0x2a8   : > { %2350 = vst [vmem:[%s4844_s5] sm:$0xff] %v2349_v54   ;;  %v2050_v9 = vmul.f32 0.5, %v2024_v10  ;;  %v2828_v17 = vpop.eup %2827  ;;  %2839 = vrcp.f32 %v1977_v46  ;;  %v4862_v37 = vsel %vm1863_vm5, %v1895_v56, 1.0  ;;  %v1658_v43 = vmul.f32 %v4808_v33, %v1657_v52 }
 0x2a9   : > { %v2830_v20 = vpop.eup %2829  ;;  %2841 = vrsqrt.f32 %v4848_v3  ;;  %v2113_v24 = vmul.f32 %v2097_v27, %v4544_v7  ;;  %v1961_v33 = vadd.f32 1.0, %v4823_v49  ;;  %v1972_v7 = vsub.f32 1.0, %v4858_v19 }
 0x2aa   : > { %v2066_v61 = vmul.f32 %v2050_v9, %v1906_v58  ;;  %v2832_v57 = vpop.eup %2831  ;;  %v1738_v12 = vmul.f32 %v2830_v20, %v4806_v31  ;;  %2843 = vlog2.f32 %v2007_v0  ;;  %v1663_v16 = vand.u32 2147483648, %v4786_v21 }
 0x2ab   : > { %v2834_v36 = vpop.eup %2833  ;;  %2845 = vrsqrt.f32 %v4855_v32  ;;  %v2030_v13 = vmul.f32 0.6931472, %v2832_v57  ;;  %v1747_v56 = vand.u32 2147483648, %v4806_v31  ;;  %vm1860_vm1 = vcmp.gt.f32.partialorder %v4837_v25, 0.996 }
 0x2ac   : > { %v2098_v14 = vmul.f32 %v2828_v17, %v2066_v61  ;;  %v1739_v30 = vmul.f32 %v2830_v20, %v1738_v12  ;;  %v2836_v51 = vpop.eup %2835  ;;  %2847 = vrcp.f32 %v4804_v23  ;;  %v1786_v40 = vmul.f32 %v2834_v36, %v4833_v50 }
 0x2ad   : > { %v4872_v63 = vpop.eup %2837  ;;  %v1762_v11 = vmul.f32 %v2836_v51, %v4815_v48  ;;  %2849 = vrcp.f32 %v4823_v49  ;;  %v2053_v44 = vmul.f32 0.5, %v2030_v13  ;;  %vm1804_vm2 = vcmp.eq.f32.partialorder %v4855_v32, inf }
 0x2ae   : > { %v2114_v39 = vmul.f32 %v2098_v14, %v4609_v15  ;;  %v1740_v29 = vmul.f32 0.5, %v1739_v30  ;;  %v2840_v42 = vpop.eup %2839  ;;  %v1659_v15 = vmul.f32 %v1658_v43, %v4786_v21  ;;  %v1787_v2 = vmul.f32 %v2834_v36, %v1786_v40 }
 0x2af   : > { %v2842_v55 = vpop.eup %2841  ;;  %v1763_v54 = vmul.f32 %v2836_v51, %v1762_v11  ;;  %v2009_v49 = vmul.f32 %v2840_v42, %v1961_v33  ;;  %2851 = vrcp.f32 %v1972_v7  ;;  %v2069_v57 = vmul.f32 %v2053_v44, %v1909_v34 }
 0x2b0   : > { %v2359_v59 = vpack.c.bf16 %v2114_v39, %v2113_v24  ;;  %v1741_v22 = vsub.f32 1.5, %v1740_v29  ;;  %v2844_v62 = vpop.eup %2843  ;;  %v1788_v26 = vmul.f32 0.5, %v1787_v2  ;;  %v1702_v10 = vmul.f32 %v2842_v55, %v4848_v3  ;;  %v4897_v24 = vpop.xlane.xlu0 %1603 }
 0x2b1   : > { %v4884_v46 = vpop.eup %2845  ;;  %v1661_v9 = vsel %vm1660_vm6, %v4786_v21, %v1659_v15  ;;  %v1764_v17 = vmul.f32 0.5, %v1763_v54  ;;  %2853 = vrcp.f32 %v4837_v25  ;;  %v2034_v30 = vmul.f32 0.6931472, %v2844_v62 }
 0x2b2   : > { %2387 = vst [vmem:[%s4844_s5 + $0x10] sm:$0xff] %v2359_v59   ;;  %v1742_v45 = vmul.f32 %v2830_v20, %v1741_v22  ;;  %v2848_v0 = vpop.eup %2847  ;;  %v1789_v52 = vsub.f32 1.5, %v1788_v26  ;;  %v1703_v27 = vmul.f32 %v2842_v55, %v1702_v10  ;;  %v1798_v61 = vmul.f32 %v4884_v46, %v4855_v32 }
 0x2b3   : > { %v4895_v20 = vpop.eup %2849  ;;  %v1765_v14 = vsub.f32 1.5, %v1764_v17  ;;  %v1664_v13 = vsel %vm1662_vm7, %v1663_v16, %v1661_v9  ;;  %2855 = vlog2.f32 %v2009_v49  ;;  %v1956_v33 = vadd.f32 1.0, %v4858_v19 }
 0x2b4   : > { %v1743_v58 = vmul.f32 %v1742_v45, %v4806_v31  ;;  %v1790_v12 = vmul.f32 %v2834_v36, %v1789_v52  ;;  %v1704_v43 = vmul.f32 0.5, %v1703_v27  ;;  %v1799_v40 = vmul.f32 %v4884_v46, %v1798_v61 }
 0x2b5   : > { %v2852_v7 = vpop.eup %2851  ;;  %v1766_v11 = vmul.f32 %v2836_v51, %v1765_v14  ;;  %2857 = vrsqrt.f32 %v4897_v24  ;;  %v1897_v42 = vmul.f32 0.996, %v2848_v0  ;;  %v4912_v59 = vmax.f32 %v1664_v13, 1e-15 }
 0x2b6   : > { %v1745_v39 = vsel %vm1744_vm8, %v4806_v31, %v1743_v58  ;;  %v1791_v36 = vmul.f32 %v1790_v12, %v4833_v50  ;;  %v1705_v21 = vsub.f32 1.5, %v1704_v43  ;;  %v1795_v2 = vand.u32 2147483648, %v4833_v50 }
 0x2b7   : > { %v1748_v34 = vsel %vm1746_vm9, %v1747_v56, %v1745_v39  ;;  %v2854_v31 = vpop.eup %2853  ;;  %2859 = vrcp.f32 %v4858_v19  ;;  %v1800_v51 = vmul.f32 0.5, %v1799_v40  ;;  %v1767_v62 = vmul.f32 %v1766_v11, %v4815_v48 }
 0x2b8   : > { %v4909_v29 = vmax.f32 %v1748_v34, 1e-15  ;;  %v1793_v15 = vsel %vm1792_vm10, %v4833_v50, %v1791_v36  ;;  %v1706_v44 = vmul.f32 %v2842_v55, %v1705_v21  ;;  %v2004_v26 = vmul.f32 %v2852_v7, %v1956_v33 }
 0x2b9   : > { %v1796_v22 = vsel %vm1794_vm11, %v1795_v2, %v1793_v15  ;;  %v1771_v10 = vand.u32 2147483648, %v4815_v48  ;;  %v2856_v19 = vpop.eup %2855  ;;  %v4930_v49 = vmin.f32 %v4912_v59, 0.996  ;;  %v1769_v45 = vsel %vm1768_vm12, %v4815_v48, %v1767_v62 }
 0x2ba   : > { %v4920_v16 = vmin.f32 %v4909_v29, 0.996  ;;  %v4932_v50 = vmax.f32 %v1796_v22, 1e-15  ;;  %v1707_v56 = vmul.f32 %v1706_v44, %v4848_v3  ;;  %v2101_v0 = vmul.f32 %v4840_v53, %v2069_v57 }
 0x2bb   : > { %v4936_v55 = vpop.eup %2857  ;;  %v1772_v9 = vsel %vm1770_vm13, %v1771_v10, %v1769_v45  ;;  %v1801_v52 = vsub.f32 1.5, %v1800_v51  ;;  %v2055_v17 = vmul.f32 0.5, %v2034_v30  ;;  %v2038_v48 = vmul.f32 0.6931472, %v2856_v19 }
 0x2bc   : > { %v1974_v54 = vsub.f32 1.0, %v4920_v16  ;;  %v4940_v27 = vmin.f32 %v4932_v50, 0.996  ;;  %v4942_v58 = vmax.f32 %v1772_v9, 1e-15  ;;  %v1709_v12 = vsel %vm1708_vm15, %v4848_v3, %v1707_v56 }
 0x2bd   : > { %v4945_v61 = vpop.eup %2859  ;;  %v1711_v53 = vand.u32 2147483648, %v4848_v3  ;;  %v1967_v57 = vsub.f32 1.0, %v4930_v49  ;;  %v1666_v43 = vmul.f32 %v4936_v55, %v4897_v24  ;;  %v1802_v39 = vmul.f32 %v4884_v46, %v1801_v52  ;;  %v4991_v52 = vpop.xlane.xlu0 %1627 }
 0x2be   : > { %2861 = vrcp.f32 %v1974_v54  ;;  %v1978_v14 = vsub.f32 1.0, %v4940_v27  ;;  %v4956_v30 = vmin.f32 %v4942_v58, 0.996  ;;  %v2071_v40 = vmul.f32 %v2055_v17, %v4862_v37 }
 0x2bf   : > { %2863 = vlog2.f32 %v2004_v26  ;;  %v1712_v13 = vsel %vm1710_vm0, %v1711_v53, %v1709_v12  ;;  %v1958_v3 = vadd.f32 1.0, %v4920_v16  ;;  %v2057_v36 = vmul.f32 0.5, %v2038_v48 }
 0x2c0   : > { %2865 = vrcp.f32 %v4909_v29  ;;  %v4961_v33 = vmax.f32 %v1712_v13, 1e-15  ;;  %v1892_v7 = vmul.f32 0.996, %v2854_v31  ;;  %v1976_v11 = vsub.f32 1.0, %v4956_v30 }
 0x2c1   : > { %2867 = vrcp.f32 %v1978_v14  ;;  %v1667_v46 = vmul.f32 %v4936_v55, %v1666_v43  ;;  %v1913_v37 = vsel %vm1865_vm14, %v1897_v42, 1.0  ;;  %v1803_v2 = vmul.f32 %v1802_v39, %v4855_v32 }
 0x2c2   : > { %2869 = vrcp.f32 %v4912_v59  ;;  %v4966_v15 = vmin.f32 %v4961_v33, 0.996  ;;  %v4974_v51 = vmul.f32 %v2101_v0, %v4583_v47  ;;  %v4977_v22 = vmul.f32 %v4872_v63, %v2071_v40 }
 0x2c3   : > { %2871 = vrcp.f32 %v1967_v57  ;;  %v2073_v26 = vmul.f32 %v2057_v36, %v1913_v37  ;;  %v1908_v54 = vsel %vm1860_vm1, %v1892_v7, 1.0  ;;  %v1962_v23 = vadd.f32 1.0, %v4940_v27 }
 0x2c4   : > { %v2862_v34 = vpop.eup %2861  ;;  %2873 = vrcp.f32 %v1976_v11  ;;  %v1971_v62 = vsub.f32 1.0, %v4966_v15  ;;  %vm1806_vm3 = vcmp.eq.f32.partialorder %v4855_v32, 0.0  ;;  %v1668_v47 = vmul.f32 0.5, %v1667_v46 }
 0x2c5   : > { %v2006_v21 = vmul.f32 %v2862_v34, %v1958_v3  ;;  %v2864_v31 = vpop.eup %2863  ;;  %v1805_v19 = vsel %vm1804_vm2, %v4855_v32, %v1803_v2  ;;  %v1960_v56 = vadd.f32 1.0, %v4956_v30  ;;  %v1807_v0 = vand.u32 2147483648, %v4855_v32 }
 0x2c6   : > { %v2866_v44 = vpop.eup %2865  ;;  %v2028_v63 = vmul.f32 0.6931472, %v2864_v31  ;;  %v1669_v9 = vsub.f32 1.5, %v1668_v47  ;;  %v4994_v48 = vmul.f32 %v4895_v20, %v2073_v26  ;;  %v1951_v12 = vadd.f32 1.0, %v4930_v49 }
 0x2c7   : > { %2875 = vlog2.f32 %v2006_v21  ;;  %v2868_v25 = vpop.eup %2867  ;;  %v1808_v14 = vsel %vm1806_vm3, %v1807_v0, %v1805_v19  ;;  %v1955_v3 = vadd.f32 1.0, %v4966_v15  ;;  %vm1862_vm4 = vcmp.gt.f32.partialorder %v4909_v29, 0.996 }
 0x2c8   : > { %2877 = vrcp.f32 %v4932_v50  ;;  %v4984_v42 = vpop.eup %2869  ;;  %v2010_v10 = vmul.f32 %v2868_v25, %v1962_v23  ;;  %v1670_v43 = vmul.f32 %v4936_v55, %v1669_v9  ;;  %v2052_v39 = vmul.f32 0.5, %v2028_v63 }
 0x2c9   : > { %2879 = vrcp.f32 %v1971_v62  ;;  %v2872_v45 = vpop.eup %2871  ;;  %vm1672_vm5 = vcmp.eq.f32.partialorder %v4897_v24, inf  ;;  %v5006_v11 = vmax.f32 %v1808_v14, 1e-15  ;;  %v1675_v55 = vand.u32 2147483648, %v4897_v24 }
 0x2ca   : > { %2881 = vrcp.f32 %v4920_v16  ;;  %v2874_v17 = vpop.eup %2873  ;;  %v1894_v16 = vmul.f32 0.996, %v2866_v44  ;;  %v1671_v34 = vmul.f32 %v1670_v43, %v4897_v24  ;;  %vm1674_vm6 = vcmp.eq.f32.partialorder %v4897_v24, 0.0 }
 0x2cb   : > { %2883 = vrcp.f32 %v4942_v58  ;;  %v2008_v57 = vmul.f32 %v2874_v17, %v1960_v56  ;;  %v2068_v26 = vmul.f32 %v2052_v39, %v1908_v54  ;;  %v1999_v23 = vmul.f32 %v2872_v45, %v1951_v12 }
 0x2cc   : > { %2885 = vlog2.f32 %v2010_v10  ;;  %v1910_v46 = vsel %vm1862_vm4, %v1894_v16, 1.0  ;;  %v1673_v37 = vsel %vm1672_vm5, %v4897_v24, %v1671_v34  ;;  %vm1866_vm7 = vcmp.gt.f32.partialorder %v4932_v50, 0.996 }
 0x2cd   : > { %v2876_v53 = vpop.eup %2875  ;;  %2887 = vrcp.f32 %v4961_v33  ;;  %v1676_v62 = vsel %vm1674_vm6, %v1675_v55, %v1673_v37  ;;  %vm1864_vm8 = vcmp.gt.f32.partialorder %v4942_v58, 0.996  ;;  %vm1859_vm9 = vcmp.gt.f32.partialorder %v4961_v33, 0.996 }
 0x2ce   : > { %v2878_v13 = vpop.eup %2877  ;;  %v2032_v40 = vmul.f32 0.6931472, %v2876_v53  ;;  %2889 = vrsqrt.f32 %v4991_v52  ;;  %v5012_v47 = vmax.f32 %v1676_v62, 1e-15  ;;  %vm1816_vm10 = vcmp.eq.f32.partialorder %v4991_v52, inf }
 0x2cf   : > { %v2880_v20 = vpop.eup %2879  ;;  %2891 = vlog2.f32 %v2008_v57  ;;  %v1898_v31 = vmul.f32 0.996, %v2878_v13  ;;  %vm1818_vm11 = vcmp.eq.f32.partialorder %v4991_v52, 0.0  ;;  %vm1855_vm12 = vcmp.gt.f32.partialorder %v4912_v59, 0.996 }
 0x2d0   : > { %v2882_v36 = vpop.eup %2881  ;;  %v2054_v32 = vmul.f32 0.5, %v2032_v40  ;;  %v2003_v7 = vmul.f32 %v2880_v20, %v1955_v3  ;;  %2893 = vrcp.f32 %v4940_v27  ;;  %v5017_v27 = vmin.f32 %v5006_v11, 0.996 }
 0x2d1   : > { %v2884_v21 = vpop.eup %2883  ;;  %v5021_v54 = vmin.f32 %v5012_v47, 0.996  ;;  %v1914_v0 = vsel %vm1866_vm7, %v1898_v31, 1.0  ;;  %v2121_v3 = vmul.f32 %v4994_v48, %v4630_v1  ;;  %v2119_v48 = vmul.f32 %v4977_v22, %v4613_v8 }
 0x2d2   : > { %v2886_v29 = vpop.eup %2885  ;;  %v2070_v2 = vmul.f32 %v2054_v32, %v1910_v46  ;;  %2895 = vlog2.f32 %v2003_v7  ;;  %v1896_v56 = vmul.f32 0.996, %v2884_v21  ;;  %v1979_v43 = vsub.f32 1.0, %v5017_v27 }
 0x2d3   : > { %v2888_v44 = vpop.eup %2887  ;;  %v2040_v25 = vmul.f32 0.6931472, %v2886_v29  ;;  %2897 = vrcp.f32 %v4956_v30  ;;  %v1968_v53 = vsub.f32 1.0, %v5021_v54  ;;  %v1952_v33 = vadd.f32 1.0, %v5021_v54 }
 0x2d4   : > { %v2890_v63 = vpop.eup %2889  ;;  %v2102_v10 = vmul.f32 %v2882_v36, %v2070_v2  ;;  %v1891_v16 = vmul.f32 0.996, %v2888_v44  ;;  %2899 = vrcp.f32 %v4966_v15  ;;  %v1912_v39 = vsel %vm1864_vm8, %v1896_v56, 1.0 }
 0x2d5   : > { %v2892_v24 = vpop.eup %2891  ;;  %v2058_v19 = vmul.f32 0.5, %v2040_v25  ;;  %v1810_v17 = vmul.f32 %v2890_v63, %v4991_v52  ;;  %2901 = vlog2.f32 %v1999_v23  ;;  %vm1856_vm13 = vcmp.gt.f32.partialorder %v5012_v47, 0.996 }
 0x2d6   : > { %v2118_v45 = vmul.f32 %v2102_v10, %v4654_v38  ;;  %v2036_v9 = vmul.f32 0.6931472, %v2892_v24  ;;  %v2894_v50 = vpop.eup %2893  ;;  %2903 = vrcp.f32 %v1968_v53  ;;  %v1907_v58 = vsel %vm1859_vm9, %v1891_v16, 1.0 }
 0x2d7   : > { %v2074_v12 = vmul.f32 %v2058_v19, %v1914_v0  ;;  %v1811_v13 = vmul.f32 %v2890_v63, %v1810_v17  ;;  %2905 = vrcp.f32 %v1979_v43  ;;  %vm1867_vm14 = vcmp.gt.f32.partialorder %v5006_v11, 0.996 }
 0x2d8   : > { %v2896_v57 = vpop.eup %2895  ;;  %v2369_v30 = vpack.c.bf16 %v2118_v45, %v4974_v51  ;;  %v2056_v14 = vmul.f32 0.5, %v2036_v9  ;;  %v2100_v51 = vmul.f32 %v4945_v61, %v2068_v26  ;;  %2907 = vrcp.f32 %v5012_v47 }
 0x2d9   : > { %v2106_v38 = vmul.f32 %v2894_v50, %v2074_v12  ;;  %v2026_v40 = vmul.f32 0.6931472, %v2896_v57  ;;  %v1812_v20 = vmul.f32 0.5, %v1811_v13  ;;  %v2898_v34 = vpop.eup %2897 }
 0x2da   : > { %2389 = vst [vmem:[%s4844_s5 + $0x20] sm:$0xff] %v2369_v30   ;;  %v2072_v15 = vmul.f32 %v2056_v14, %v1912_v39  ;;  %v2900_v21 = vpop.eup %2899  ;;  %v2116_v31 = vmul.f32 %v2100_v51, %v4634_v28 }
 0x2db   : > { %v2122_v36 = vmul.f32 %v2106_v38, %v4665_v5  ;;  %v2051_v32 = vmul.f32 0.5, %v2026_v40  ;;  %v1813_v55 = vsub.f32 1.5, %v1812_v20  ;;  %v2902_v61 = vpop.eup %2901 }
 0x2dc   : > { %v2104_v7 = vmul.f32 %v2898_v34, %v2072_v15  ;;  %v2904_v2 = vpop.eup %2903  ;;  %v2018_v23 = vmul.f32 0.6931472, %v2902_v61 }
 0x2dd   : > { %v2379_v46 = vpack.c.bf16 %v2122_v36, %v2121_v3  ;;  %v2067_v1 = vmul.f32 %v2051_v32, %v1907_v58  ;;  %v1814_v29 = vmul.f32 %v2890_v63, %v1813_v55  ;;  %v2000_v22 = vmul.f32 %v2904_v2, %v1952_v33  ;;  %v2906_v26 = vpop.eup %2905 }
 0x2de   : > { %v2120_v37 = vmul.f32 %v2104_v7, %v4674_v6  ;;  %v1819_v6 = vand.u32 2147483648, %v4991_v52  ;;  %v1963_v63 = vadd.f32 1.0, %v5017_v27  ;;  %v2908_v56 = vpop.eup %2907  ;;  %v2047_v45 = vmul.f32 0.5, %v2018_v23 }
 0x2df   : > { %2391 = vst [vmem:[%s4844_s5 + $0x30] sm:$0xff] %v2379_v46   ;;  %v2099_v5 = vmul.f32 %v2900_v21, %v2067_v1  ;;  %v1815_v44 = vmul.f32 %v1814_v29, %v4991_v52  ;;  %2909 = vlog2.f32 %v2000_v22  ;;  %v1888_v50 = vmul.f32 0.996, %v2908_v56 }
 0x2e0   : > { %v2374_v62 = vpack.c.bf16 %v2120_v37, %v2119_v48  ;;  %v2011_v19 = vmul.f32 %v2906_v26, %v1963_v63  ;;  %2911 = vrcp.f32 %v4930_v49 }
 0x2e1   : > { %v2115_v8 = vmul.f32 %v2099_v5, %v4682_v60  ;;  %v1817_v25 = vsel %vm1816_vm10, %v4991_v52, %v1815_v44  ;;  %v1887_v60 = vmul.f32 0.996, %v4984_v42  ;;  %2913 = vrcp.f32 %v5021_v54 }
 0x2e2   : > { %2390 = vst [vmem:[%s4844_s5 + $0x28] sm:$0xff] %v2374_v62   ;;  %v1820_v10 = vsel %vm1818_vm11, %v1819_v6, %v1817_v25  ;;  %2915 = vlog2.f32 %v2011_v19  ;;  %v1904_v57 = vsel %vm1856_vm13, %v1888_v50, 1.0 }
 0x2e3   : > { %v2364_v28 = vpack.c.bf16 %v2116_v31, %v2115_v8  ;;  %v1836_v24 = vmax.f32 %v1820_v10, 1e-15  ;;  %v1903_v17 = vsel %vm1855_vm12, %v1887_v60, 1.0 }
 0x2e4   : > { %v2063_v12 = vmul.f32 %v2047_v45, %v1903_v17 }
 0x2e5   : > { %2388 = vst [vmem:[%s4844_s5 + $0x18] sm:$0xff] %v2364_v28   ;;  %v1852_v0 = vmin.f32 %v1836_v24, 0.996  ;;  %v2910_v9 = vpop.eup %2909  ;;  %vm1868_vm15 = vcmp.gt.f32.partialorder %v1836_v24, 0.996 }
 0x2e6   : > { %v2020_v16 = vmul.f32 0.6931472, %v2910_v9  ;;  %v2912_v53 = vpop.eup %2911 }
 0x2e7   : > { %v1980_v52 = vsub.f32 1.0, %v1852_v0  ;;  %v2914_v49 = vpop.eup %2913  ;;  %v2095_v30 = vmul.f32 %v2912_v53, %v2063_v12  ;;  %v1964_v14 = vadd.f32 1.0, %v1852_v0 }
 0x2e8   : > { %v2048_v42 = vmul.f32 0.5, %v2020_v16  ;;  %v2916_v54 = vpop.eup %2915 }
 0x2e9   : > { %2917 = vrcp.f32 %v1980_v52  ;;  %v2111_v40 = vmul.f32 %v2095_v30, %v4645_v35  ;;  %v2042_v3 = vmul.f32 0.6931472, %v2916_v54 }
 0x2ea   : > { %2919 = vrcp.f32 %v5006_v11  ;;  %v2064_v59 = vmul.f32 %v2048_v42, %v1904_v57 }
 0x2eb   : > { %2921 = vrcp.f32 %v1836_v24  ;;  %v2059_v51 = vmul.f32 0.5, %v2042_v3 }
 0x2ec   : > { %v2096_v13 = vmul.f32 %v2914_v49, %v2064_v59 }
 0x2ee   : > { %v2112_v47 = vmul.f32 %v2096_v13, %v4697_v41 }
 0x2ef   : > { %v2918_v43 = vpop.eup %2917 }
 0x2f0   : > { %v2012_v38 = vmul.f32 %v2918_v43, %v1964_v14  ;;  %v2920_v39 = vpop.eup %2919  ;;  %v2354_v15 = vpack.c.bf16 %v2112_v47, %v2111_v40 }
 0x2f1   : > { %v1899_v20 = vmul.f32 0.996, %v2920_v39  ;;  %v2922_v34 = vpop.eup %2921 }
 0x2f2   : > { %2923 = vlog2.f32 %v2012_v38  ;;  %2386 = vst [vmem:[%s4844_s5 + $0x8] sm:$0xff] %v2354_v15   ;;  %v1900_v7 = vmul.f32 0.996, %v2922_v34 }
 0x2f3   : > { %2925 = vrcp.f32 %v5017_v27  ;;  %v1915_v32 = vsel %vm1867_vm14, %v1899_v20, 1.0 }
 0x2f4   : > { %2927 = vrcp.f32 %v1852_v0  ;;  %v2075_v35 = vmul.f32 %v2059_v51, %v1915_v32  ;;  %v1916_v21 = vsel %vm1868_vm15, %v1900_v7, 1.0 }
 0x2f8   : > { %v2924_v36 = vpop.eup %2923 }
 0x2f9   : > { %v2044_v58 = vmul.f32 0.6931472, %v2924_v36  ;;  %v2926_v55 = vpop.eup %2925 }
 0x2fa   : > { %v2107_v27 = vmul.f32 %v2926_v55, %v2075_v35  ;;  %v2928_v46 = vpop.eup %2927 }
 0x2fb   : > { %v2060_v41 = vmul.f32 0.5, %v2044_v58 }
 0x2fc   : > { %v2123_v48 = vmul.f32 %v2107_v27, %v4693_v4 }
 0x2fd   : > { %v2076_v11 = vmul.f32 %v2060_v41, %v1916_v21 }
 0x2ff   : > { %v2108_v1 = vmul.f32 %v2928_v46, %v2076_v11 }
 0x301   : > { %v2124_v37 = vmul.f32 %v2108_v1, %v4705_v18 }
 0x303   : > { %v2384_v29 = vpack.c.bf16 %v2124_v37, %v2123_v48 }
 0x305   : > { %2392 = vst [vmem:[%s4844_s5 + $0x38] sm:$0xff] %v2384_v29  }
 0x306   : > { %3017 = shalt.err (!%p3014_p10)
}
 0x307   : > { %s3067_s15 = smov 64   ;;  %s3068_s25 = smov 4  }
 0x308   : > { %2423 = dma.vmem_to_hbm [thread:$0]  (%p3164_p7), %s2171_s13, 1024, %s2173_s11, %s2158_s3, %s3067_s15, %s3067_s15, %s3068_s25  }
 0x309 PF: > { %s2187_s26 = sand.u32 1, %s3048_s17   ;;  %p5263_p12 = scmp.ge.s32.totalorder %s3060_s20, 2 }
 0x30a   : > { %s2188_s28 = scalar_lea.sflag [#allocation5], %s2187_s26 }
 0x30b   : > { %p2434_p13 = pnand %p5263_p12, %p3132_p6 }
 0x30d   : > { %p2435_p0 = pneg %p2434_p13 }
 0x30f   : > { %3043 = dma.done.wait (%p2435_p0), %s2188_s28, 1024  }
 0x310   : > { %3045 = vsyncadd (%p2435_p0), %s2188_s28, 4294966272  ;;  %p19_p3 = scmp.ge.s32.totalorder %s3150_s30, 4   ;;  %s5264_s17 = smov %s3052_s18 }
 0x311   : > { %s5265_s18 = smov %s3056_s19  ;;  %s5266_s19 = smov %s3160_s9 }
 0x312   : > { %s5267_s20 = smov %s3150_s30  ;;  %21 = sbr.rel (!%p19_p3) target bundleno = 8 (0x8), region = 85 }
 0x317   :  { %2194 = vsyncpa [#allocation4], 1 }
 0x318   :  { %2196 = vsyncpa [#allocation4 + $0x1], 1 }
 0x319   :  { %2197 = vsyncpa [#allocation7], 1 }
 0x31a   :  { %2198 = vsyncpa [#allocation5], 1 }
 0x31b   :  { %2200 = vsyncpa [#allocation5 + $0x1], 1 }

</bundles_post_ra>
